<compile_context>
chip_gen: v6e
topology: v6e:2x2x1
jax: 0.10.0
libtpu: 0.0.40
codegen_flags: <defaults>
</compile_context>

<pallas_src>
import functools

import jax
import jax.numpy as jnp
from jax.experimental import pallas as pl
from jax.experimental.pallas import tpu as pltpu


_K1, _K2, _K3 = 8, 4, 3          # conv kernel sizes (fixed by the module)
_O1, _O2, _O3 = 32, 64, 64       # conv output channels
_FC_H = 512                      # fc1 hidden size


def _round_up(x, m):
    return ((x + m - 1) // m) * m


# ---------------------------------------------------------------------------
# Fused kernel: conv1 -> conv2 -> conv3 -> fc1 -> fc2, all VMEM-resident
# ---------------------------------------------------------------------------
def _dqn_fused_kernel(
    x_ref, w1_ref, b1_ref, w2_ref, b2_ref, w3_ref, b3_ref,
    fw1_ref, fb1_ref, fw2_ref, fb2_ref,                         # inputs
    out_ref,                                                    # (n, a_pad) f32
    p1_ref, act1_ref, p2_ref, act2_ref, p3_ref, act3_ref, fcin_ref,  # scratch
    *, n, h, ho1, ho2, ho3, k1, k2, k3):
    f32, bf16 = jnp.float32, jnp.bfloat16

    # ---- conv1: row-im2col (lane concat of k1 shifted rows, one lane-dense
    # ---- store per image) + ONE matmul for the whole batch + bias + ReLU ----
    for b in range(n):
        rows = [x_ref[b * h + dh: b * h + dh + ho1, :] for dh in range(k1)]
        p1_ref[b * ho1:(b + 1) * ho1, :] = jnp.concatenate(rows, axis=-1)
    y1 = jnp.dot(p1_ref[...], w1_ref[...], preferred_element_type=f32)
    act1_ref[...] = jnp.maximum(y1 + b1_ref[...], 0.0).astype(bf16)

    # ---- conv2 --------------------------------------------------------------
    for b in range(n):
        rows = [act1_ref[b * ho1 + dh: b * ho1 + dh + ho2, :] for dh in range(k2)]
        p2_ref[b * ho2:(b + 1) * ho2, :] = jnp.concatenate(rows, axis=-1)
    y2 = jnp.dot(p2_ref[...], w2_ref[...], preferred_element_type=f32)
    act2_ref[...] = jnp.maximum(y2 + b2_ref[...], 0.0).astype(bf16)

    # ---- conv3 --------------------------------------------------------------
    for b in range(n):
        rows = [act2_ref[b * ho2 + dh: b * ho2 + dh + ho3, :] for dh in range(k3)]
        p3_ref[b * ho3:(b + 1) * ho3, :] = jnp.concatenate(rows, axis=-1)
    y3 = jnp.dot(p3_ref[...], w3_ref[...], preferred_element_type=f32)
    act3_ref[...] = jnp.maximum(y3 + b3_ref[...], 0.0).astype(bf16)

    # ---- NHWC flatten: conv3 rows are already (j, c); one lane concat + one
    # ---- lane-dense store per image (no per-pixel copy loop) ----------------
    for b in range(n):
        rows = [act3_ref[b * ho3 + i: b * ho3 + i + 1, :] for i in range(ho3)]
        fcin_ref[b:b + 1, :] = jnp.concatenate(rows, axis=-1)

    # ---- fc1 + ReLU, fc2 (lane-padded, lane-dense output) -------------------
    hid = jnp.dot(fcin_ref[...], fw1_ref[...], preferred_element_type=f32)
    hid = jnp.maximum(hid + fb1_ref[...], 0.0).astype(bf16)
    q = jnp.dot(hid, fw2_ref[...], preferred_element_type=f32)
    out_ref[...] = q + fb2_ref[...]


def _full_spec(shape):
    return pl.BlockSpec(shape, lambda i, _nd=len(shape): (0,) * _nd)


# ---------------------------------------------------------------------------
# Forward wrapper
# ---------------------------------------------------------------------------
def dqn_forward(prepped, x, *, num_actions):
    """x: (N, C, H, W) f32 -> (N, num_actions) f32."""
    n, c, h, w = x.shape
    ho1, wo1 = h - _K1 + 1, w - _K1 + 1
    ho2, wo2 = ho1 - _K2 + 1, wo1 - _K2 + 1
    ho3, wo3 = ho2 - _K3 + 1, wo2 - _K3 + 1
    pad_in = _round_up(w * c, 128)
    pad1 = _round_up(wo1 * _O1, 128)
    pad2 = _round_up(wo2 * _O2, 128)
    pad3 = _round_up(wo3 * _O3, 128)
    fc_h = prepped["fc1_w"].shape[1]
    a_pad = prepped["fc2_w"].shape[1]

    # Channels-last row layout: one row per (image, scanline), lanes = (j, c),
    # zero-padded to a multiple of 128 so every in-kernel concat/store is
    # lane-aligned.  Only this tiny (8 KB) transpose stays in XLA.
    x_rows = jnp.transpose(x, (0, 2, 3, 1)).reshape(n * h, w * c)
    x_rows = jnp.pad(x_rows, ((0, 0), (0, pad_in - w * c))).astype(jnp.bfloat16)

    args = (x_rows,
            prepped["w1"], prepped["b1"], prepped["w2"], prepped["b2"],
            prepped["w3"], prepped["b3"],
            prepped["fc1_w"], prepped["fc1_b"],
            prepped["fc2_w"], prepped["fc2_b"])

    kernel = functools.partial(
        _dqn_fused_kernel, n=n, h=h, ho1=ho1, ho2=ho2, ho3=ho3,
        k1=_K1, k2=_K2, k3=_K3)

    flops = 2 * (n * ho1 * (_K1 * pad_in) * pad1 +
                 n * ho2 * (_K2 * pad1) * pad2 +
                 n * ho3 * (_K3 * pad2) * pad3 +
                 n * (ho3 * pad3) * fc_h +
                 n * fc_h * a_pad)
    bytes_accessed = sum(a.size * a.dtype.itemsize for a in args) + n * a_pad * 4
    cost = pl.CostEstimate(flops=int(flops), transcendentals=0,
                           bytes_accessed=int(bytes_accessed))

    q_pad = pl.pallas_call(
        kernel,
        out_shape=jax.ShapeDtypeStruct((n, a_pad), jnp.float32),
        grid=(1,),
        in_specs=[_full_spec(a.shape) for a in args],
        out_specs=_full_spec((n, a_pad)),
        scratch_shapes=[
            pltpu.VMEM((n * ho1, _K1 * pad_in), jnp.bfloat16),   # conv1 patches
            pltpu.VMEM((n * ho1, pad1), jnp.bfloat16),           # conv1 out
            pltpu.VMEM((n * ho2, _K2 * pad1), jnp.bfloat16),     # conv2 patches
            pltpu.VMEM((n * ho2, pad2), jnp.bfloat16),           # conv2 out
            pltpu.VMEM((n * ho3, _K3 * pad2), jnp.bfloat16),     # conv3 patches
            pltpu.VMEM((n * ho3, pad3), jnp.bfloat16),           # conv3 out
            pltpu.VMEM((n, ho3 * pad3), jnp.bfloat16),           # fc1 input
        ],
        compiler_params=pltpu.CompilerParams(
            dimension_semantics=("arbitrary",),
            vmem_limit_bytes=32 * 1024 * 1024),
        cost_estimate=cost,
    )(*args)
    # TODO(synk): for large batches add a "parallel" grid axis over images so
    # v7x's second TensorCore is used; at batch=2 a single block is optimal.
    return q_pad[:, :num_actions]


# ---------------------------------------------------------------------------
# Parameter init (torch layout) + one-time weight preparation
# ---------------------------------------------------------------------------
def init_dqn_params(input_shape, num_actions, key):
    c, h, w = input_shape
    keys = jax.random.split(key, 10)
    scale = 0.02

    def rnd(kk, shape):
        return (scale * jax.random.normal(kk, shape)).astype(jnp.float32)

    params = {
        "conv1_w": rnd(keys[0], (_O1, c, _K1, _K1)),
        "conv1_b": rnd(keys[1], (_O1,)),
        "conv2_w": rnd(keys[2], (_O2, _O1, _K2, _K2)),
        "conv2_b": rnd(keys[3], (_O2,)),
        "conv3_w": rnd(keys[4], (_O3, _O2, _K3, _K3)),
        "conv3_b": rnd(keys[5], (_O3,)),
    }
    ho = h - _K1 + 1 - _K2 + 1 - _K3 + 1
    wo = w - _K1 + 1 - _K2 + 1 - _K3 + 1
    conv_out = _O3 * ho * wo
    params["fc1_w"] = rnd(keys[6], (_FC_H, conv_out))   # torch Linear: (out, in)
    params["fc1_b"] = rnd(keys[7], (_FC_H,))
    params["fc2_w"] = rnd(keys[8], (num_actions, _FC_H))
    params["fc2_b"] = rnd(keys[9], (num_actions,))
    return params


def _row_conv_weight(wt, row_in, row_pad_in, out_pad):
    """Toeplitz 'row conv' weight for stride-1 VALID conv.

    wt: (C_out, C_in, kh, kw) torch layout.
    Input row layout : (j_in, c_in), zero-padded to row_pad_in lanes.
    Output row layout: (j_out, c_out), zero-padded to out_pad lanes.
    Returns (kh * row_pad_in, out_pad) bf16.
    """
    c_out, c_in, kh, kw = wt.shape
    w_in = row_in // c_in
    w_out = w_in - kw + 1
    wt_t = jnp.transpose(wt, (2, 3, 1, 0)).reshape(kh, kw * c_in, c_out)
    full = jnp.zeros((kh, row_pad_in, w_out, c_out), jnp.float32)
    for j in range(w_out):
        full = full.at[:, j * c_in: j * c_in + kw * c_in, j, :].set(wt_t)
    full = full.reshape(kh * row_pad_in, w_out * c_out)
    full = jnp.pad(full, ((0, 0), (0, out_pad - w_out * c_out)))
    return full.astype(jnp.bfloat16)


def _row_conv_bias(bias, w_out, out_pad):
    row = jnp.tile(bias.astype(jnp.float32), (w_out,))
    return jnp.pad(row, (0, out_pad - row.shape[0])).reshape(1, -1)


def prepare_params(params, input_shape):
    """One-time prep: Toeplitz row-conv weights, permuted fc1, lane-padded fc2."""
    c, h, w = input_shape
    ho1, wo1 = h - _K1 + 1, w - _K1 + 1
    ho2, wo2 = ho1 - _K2 + 1, wo1 - _K2 + 1
    ho3, wo3 = ho2 - _K3 + 1, wo2 - _K3 + 1
    pad_in = _round_up(w * c, 128)
    pad1 = _round_up(wo1 * _O1, 128)
    pad2 = _round_up(wo2 * _O2, 128)
    pad3 = _round_up(wo3 * _O3, 128)

    fc_h = params["fc1_w"].shape[0]
    na = params["fc2_w"].shape[0]
    a_pad = _round_up(na, 128)

    # fc1: torch flatten order (c, i, j) -> kernel fcin order (i, j*o3+c),
    # with zero rows at the lane-padding positions of each scanline.
    fw1 = params["fc1_w"].reshape(fc_h, _O3, ho3, wo3)
    fw1 = jnp.transpose(fw1, (2, 3, 1, 0)).reshape(ho3, wo3 * _O3, fc_h)
    fw1 = jnp.pad(fw1, ((0, 0), (0, pad3 - wo3 * _O3), (0, 0)))
    fw1 = fw1.reshape(ho3 * pad3, fc_h).astype(jnp.bfloat16)

    fw2 = jnp.zeros((fc_h, a_pad), jnp.float32)
    fw2 = fw2.at[:, :na].set(jnp.transpose(params["fc2_w"])).astype(jnp.bfloat16)
    fb2 = jnp.zeros((1, a_pad), jnp.float32).at[0, :na].set(params["fc2_b"])

    return {
        "w1": _row_conv_weight(params["conv1_w"], w * c, pad_in, pad1),
        "b1": _row_conv_bias(params["conv1_b"], wo1, pad1),
        "w2": _row_conv_weight(params["conv2_w"], wo1 * _O1, pad1, pad2),
        "b2": _row_conv_bias(params["conv2_b"], wo2, pad2),
        "w3": _row_conv_weight(params["conv3_w"], wo2 * _O2, pad2, pad3),
        "b3": _row_conv_bias(params["conv3_b"], wo3, pad3),
        "fc1_w": fw1,
        "fc1_b": params["fc1_b"].reshape(1, -1).astype(jnp.float32),
        "fc2_w": fw2,
        "fc2_b": fb2,
    }


def dqn_forward_ref(params, x):
    """Pure-JAX reference (original torch-layout params)."""
    def conv(x, w, b):
        y = jax.lax.conv_general_dilated(
            x, w, window_strides=(1, 1), padding="VALID",
            dimension_numbers=("NCHW", "OIHW", "NCHW"))
        return jax.nn.relu(y + b.reshape(1, -1, 1, 1))

    x = conv(x, params["conv1_w"], params["conv1_b"])
    x = conv(x, params["conv2_w"], params["conv2_b"])
    x = conv(x, params["conv3_w"], params["conv3_b"])
    x = x.reshape(x.shape[0], -1)
    x = jax.nn.relu(x @ params["fc1_w"].T + params["fc1_b"])
    return x @ params["fc2_w"].T + params["fc2_b"]


if __name__ == "__main__":
    input_shape = (4, 16, 16)     # (C, H, W) — small PacMan-style frame stack
    num_actions = 6
    batch = 2

    key = jax.random.PRNGKey(0)
    k_param, k_x = jax.random.split(key)
    params = init_dqn_params(input_shape, num_actions, k_param)
    prepped = prepare_params(params, input_shape)   # one-time weight prep
    x = jax.random.normal(k_x, (batch, *input_shape), dtype=jnp.float32)

    fwd = jax.jit(functools.partial(dqn_forward, num_actions=num_actions))
    q_vals = jax.block_until_ready(fwd(prepped, x))

    q_ref = dqn_forward_ref(params, x)
    assert q_vals.shape == (batch, num_actions)
    assert jnp.allclose(q_vals, q_ref, rtol=1e-2, atol=1e-2)

    print("KERNEL_OK")
</pallas_src>

<mosaic_0001>
module attributes {stable_mosaic.version = 11 : i64} {
  func.func @_dqn_fused_kernel(%arg0: i32, %arg1: memref<32x128xbf16, #tpu.memory_space<vmem>>, %arg2: memref<1024x384xbf16, #tpu.memory_space<vmem>>, %arg3: memref<1x384xf32, #tpu.memory_space<vmem>>, %arg4: memref<1536x384xbf16, #tpu.memory_space<vmem>>, %arg5: memref<1x384xf32, #tpu.memory_space<vmem>>, %arg6: memref<1152x256xbf16, #tpu.memory_space<vmem>>, %arg7: memref<1x256xf32, #tpu.memory_space<vmem>>, %arg8: memref<1024x512xbf16, #tpu.memory_space<vmem>>, %arg9: memref<1x512xf32, #tpu.memory_space<vmem>>, %arg10: memref<512x128xbf16, #tpu.memory_space<vmem>>, %arg11: memref<1x128xf32, #tpu.memory_space<vmem>>, %arg12: memref<2x128xf32, #tpu.memory_space<vmem>>, %arg13: memref<18x1024xbf16, #tpu.memory_space<vmem>>, %arg14: memref<18x384xbf16, #tpu.memory_space<vmem>>, %arg15: memref<12x1536xbf16, #tpu.memory_space<vmem>>, %arg16: memref<12x384xbf16, #tpu.memory_space<vmem>>, %arg17: memref<8x1152xbf16, #tpu.memory_space<vmem>>, %arg18: memref<8x256xbf16, #tpu.memory_space<vmem>>, %arg19: memref<2x1024xbf16, #tpu.memory_space<vmem>>) attributes {dimension_semantics = [#tpu.dimension_semantics<arbitrary>], iteration_bounds = array<i64: 1>, scalar_prefetch = 0 : i64, scratch_operands = 7 : i64, tpu.core_type = #tpu.core_type<tc>, window_params = [{pipeline_mode = #tpu.pipeline_mode<synchronous>, transform_indices = @transform_0, window_bounds = array<i64: 32, 128>}, {pipeline_mode = #tpu.pipeline_mode<synchronous>, transform_indices = @transform_1, window_bounds = array<i64: 1024, 384>}, {pipeline_mode = #tpu.pipeline_mode<synchronous>, transform_indices = @transform_2, window_bounds = array<i64: 1, 384>}, {pipeline_mode = #tpu.pipeline_mode<synchronous>, transform_indices = @transform_3, window_bounds = array<i64: 1536, 384>}, {pipeline_mode = #tpu.pipeline_mode<synchronous>, transform_indices = @transform_4, window_bounds = array<i64: 1, 384>}, {pipeline_mode = #tpu.pipeline_mode<synchronous>, transform_indices = @transform_5, window_bounds = array<i64: 1152, 256>}, {pipeline_mode = #tpu.pipeline_mode<synchronous>, transform_indices = @transform_6, window_bounds = array<i64: 1, 256>}, {pipeline_mode = #tpu.pipeline_mode<synchronous>, transform_indices = @transform_7, window_bounds = array<i64: 1024, 512>}, {pipeline_mode = #tpu.pipeline_mode<synchronous>, transform_indices = @transform_8, window_bounds = array<i64: 1, 512>}, {pipeline_mode = #tpu.pipeline_mode<synchronous>, transform_indices = @transform_9, window_bounds = array<i64: 512, 128>}, {pipeline_mode = #tpu.pipeline_mode<synchronous>, transform_indices = @transform_10, window_bounds = array<i64: 1, 128>}, {pipeline_mode = #tpu.pipeline_mode<synchronous>, transform_indices = @transform_11, window_bounds = array<i64: 2, 128>}]} {
    %c0 = arith.constant 0 : index
    %c0_0 = arith.constant 0 : index
    %0 = vector.load %arg1[%c0, %c0_0] : memref<32x128xbf16, #tpu.memory_space<vmem>>, vector<9x128xbf16>
    %c1 = arith.constant 1 : index
    %c0_1 = arith.constant 0 : index
    %1 = vector.load %arg1[%c1, %c0_1] : memref<32x128xbf16, #tpu.memory_space<vmem>>, vector<9x128xbf16>
    %c2 = arith.constant 2 : index
    %c0_2 = arith.constant 0 : index
    %2 = vector.load %arg1[%c2, %c0_2] : memref<32x128xbf16, #tpu.memory_space<vmem>>, vector<9x128xbf16>
    %c3 = arith.constant 3 : index
    %c0_3 = arith.constant 0 : index
    %3 = vector.load %arg1[%c3, %c0_3] : memref<32x128xbf16, #tpu.memory_space<vmem>>, vector<9x128xbf16>
    %c4 = arith.constant 4 : index
    %c0_4 = arith.constant 0 : index
    %4 = vector.load %arg1[%c4, %c0_4] : memref<32x128xbf16, #tpu.memory_space<vmem>>, vector<9x128xbf16>
    %c5 = arith.constant 5 : index
    %c0_5 = arith.constant 0 : index
    %5 = vector.load %arg1[%c5, %c0_5] : memref<32x128xbf16, #tpu.memory_space<vmem>>, vector<9x128xbf16>
    %c6 = arith.constant 6 : index
    %c0_6 = arith.constant 0 : index
    %6 = vector.load %arg1[%c6, %c0_6] : memref<32x128xbf16, #tpu.memory_space<vmem>>, vector<9x128xbf16>
    %c7 = arith.constant 7 : index
    %c0_7 = arith.constant 0 : index
    %7 = vector.load %arg1[%c7, %c0_7] : memref<32x128xbf16, #tpu.memory_space<vmem>>, vector<9x128xbf16>
    %8 = tpu.concatenate %0, %1, %2, %3, %4, %5, %6, %7 in 1 : vector<9x128xbf16>, vector<9x128xbf16>, vector<9x128xbf16>, vector<9x128xbf16>, vector<9x128xbf16>, vector<9x128xbf16>, vector<9x128xbf16>, vector<9x128xbf16> -> vector<9x1024xbf16>
    %c0_8 = arith.constant 0 : index
    %c0_9 = arith.constant 0 : index
    %9 = vector.load %arg13[%c0_8, %c0_9] : memref<18x1024xbf16, #tpu.memory_space<vmem>>, vector<9x1024xbf16>
    tpu.vector_store %arg13[%c0_8, %c0_9], %8 {strides = array<i32>} : memref<18x1024xbf16, #tpu.memory_space<vmem>>, vector<9x1024xbf16>,
    %c16 = arith.constant 16 : index
    %c0_10 = arith.constant 0 : index
    %10 = vector.load %arg1[%c16, %c0_10] : memref<32x128xbf16, #tpu.memory_space<vmem>>, vector<9x128xbf16>
    %c17 = arith.constant 17 : index
    %c0_11 = arith.constant 0 : index
    %11 = vector.load %arg1[%c17, %c0_11] : memref<32x128xbf16, #tpu.memory_space<vmem>>, vector<9x128xbf16>
    %c18 = arith.constant 18 : index
    %c0_12 = arith.constant 0 : index
    %12 = vector.load %arg1[%c18, %c0_12] : memref<32x128xbf16, #tpu.memory_space<vmem>>, vector<9x128xbf16>
    %c19 = arith.constant 19 : index
    %c0_13 = arith.constant 0 : index
    %13 = vector.load %arg1[%c19, %c0_13] : memref<32x128xbf16, #tpu.memory_space<vmem>>, vector<9x128xbf16>
    %c20 = arith.constant 20 : index
    %c0_14 = arith.constant 0 : index
    %14 = vector.load %arg1[%c20, %c0_14] : memref<32x128xbf16, #tpu.memory_space<vmem>>, vector<9x128xbf16>
    %c21 = arith.constant 21 : index
    %c0_15 = arith.constant 0 : index
    %15 = vector.load %arg1[%c21, %c0_15] : memref<32x128xbf16, #tpu.memory_space<vmem>>, vector<9x128xbf16>
    %c22 = arith.constant 22 : index
    %c0_16 = arith.constant 0 : index
    %16 = vector.load %arg1[%c22, %c0_16] : memref<32x128xbf16, #tpu.memory_space<vmem>>, vector<9x128xbf16>
    %c23 = arith.constant 23 : index
    %c0_17 = arith.constant 0 : index
    %17 = vector.load %arg1[%c23, %c0_17] : memref<32x128xbf16, #tpu.memory_space<vmem>>, vector<9x128xbf16>
    %18 = tpu.concatenate %10, %11, %12, %13, %14, %15, %16, %17 in 1 : vector<9x128xbf16>, vector<9x128xbf16>, vector<9x128xbf16>, vector<9x128xbf16>, vector<9x128xbf16>, vector<9x128xbf16>, vector<9x128xbf16>, vector<9x128xbf16> -> vector<9x1024xbf16>
    %c9 = arith.constant 9 : index
    %c0_18 = arith.constant 0 : index
    %19 = vector.load %arg13[%c9, %c0_18] : memref<18x1024xbf16, #tpu.memory_space<vmem>>, vector<9x1024xbf16>
    tpu.vector_store %arg13[%c9, %c0_18], %18 {strides = array<i32>} : memref<18x1024xbf16, #tpu.memory_space<vmem>>, vector<9x1024xbf16>,
    %c0_19 = arith.constant 0 : index
    %c0_20 = arith.constant 0 : index
    %20 = vector.load %arg13[%c0_19, %c0_20] : memref<18x1024xbf16, #tpu.memory_space<vmem>>, vector<18x1024xbf16>
    %c0_21 = arith.constant 0 : index
    %c0_22 = arith.constant 0 : index
    %21 = vector.load %arg2[%c0_21, %c0_22] : memref<1024x384xbf16, #tpu.memory_space<vmem>>, vector<1024x384xbf16>
    %cst = arith.constant dense<0.000000e+00> : vector<18x384xf32>
    %22 = tpu.matmul %20, %21, %cst {dimension_numbers = #tpu.dot_dimension_numbers<[1], [0], [0], [1], [0, 0, 1, 1], [], []>} : vector<18x1024xbf16>, vector<1024x384xbf16>, vector<18x384xf32> -> vector<18x384xf32>
    %c0_23 = arith.constant 0 : index
    %c0_24 = arith.constant 0 : index
    %23 = vector.load %arg3[%c0_23, %c0_24] : memref<1x384xf32, #tpu.memory_space<vmem>>, vector<1x384xf32>
    %24 = vector.broadcast %23 : vector<1x384xf32> to vector<18x384xf32>
    %25 = arith.addf %22, %24 : vector<18x384xf32>
    %cst_25 = arith.constant 0.000000e+00 : f32
    %26 = vector.broadcast %cst_25 : f32 to vector<18x384xf32>
    %27 = arith.maximumf %25, %26 : vector<18x384xf32>
    %28 = arith.truncf %27 : vector<18x384xf32> to vector<18x384xbf16>
    %c0_26 = arith.constant 0 : index
    %c0_27 = arith.constant 0 : index
    %29 = vector.load %arg14[%c0_26, %c0_27] : memref<18x384xbf16, #tpu.memory_space<vmem>>, vector<18x384xbf16>
    tpu.vector_store %arg14[%c0_26, %c0_27], %28 {strides = array<i32>} : memref<18x384xbf16, #tpu.memory_space<vmem>>, vector<18x384xbf16>,
    %c0_28 = arith.constant 0 : index
    %c0_29 = arith.constant 0 : index
    %30 = vector.load %arg14[%c0_28, %c0_29] : memref<18x384xbf16, #tpu.memory_space<vmem>>, vector<6x384xbf16>
    %c1_30 = arith.constant 1 : index
    %c0_31 = arith.constant 0 : index
    %31 = vector.load %arg14[%c1_30, %c0_31] : memref<18x384xbf16, #tpu.memory_space<vmem>>, vector<6x384xbf16>
    %c2_32 = arith.constant 2 : index
    %c0_33 = arith.constant 0 : index
    %32 = vector.load %arg14[%c2_32, %c0_33] : memref<18x384xbf16, #tpu.memory_space<vmem>>, vector<6x384xbf16>
    %c3_34 = arith.constant 3 : index
    %c0_35 = arith.constant 0 : index
    %33 = vector.load %arg14[%c3_34, %c0_35] : memref<18x384xbf16, #tpu.memory_space<vmem>>, vector<6x384xbf16>
    %34 = tpu.concatenate %30, %31, %32, %33 in 1 : vector<6x384xbf16>, vector<6x384xbf16>, vector<6x384xbf16>, vector<6x384xbf16> -> vector<6x1536xbf16>
    %c0_36 = arith.constant 0 : index
    %c0_37 = arith.constant 0 : index
    %35 = vector.load %arg15[%c0_36, %c0_37] : memref<12x1536xbf16, #tpu.memory_space<vmem>>, vector<6x1536xbf16>
    tpu.vector_store %arg15[%c0_36, %c0_37], %34 {strides = array<i32>} : memref<12x1536xbf16, #tpu.memory_space<vmem>>, vector<6x1536xbf16>,
    %c9_38 = arith.constant 9 : index
    %c0_39 = arith.constant 0 : index
    %36 = vector.load %arg14[%c9_38, %c0_39] : memref<18x384xbf16, #tpu.memory_space<vmem>>, vector<6x384xbf16>
    %c10 = arith.constant 10 : index
    %c0_40 = arith.constant 0 : index
    %37 = vector.load %arg14[%c10, %c0_40] : memref<18x384xbf16, #tpu.memory_space<vmem>>, vector<6x384xbf16>
    %c11 = arith.constant 11 : index
    %c0_41 = arith.constant 0 : index
    %38 = vector.load %arg14[%c11, %c0_41] : memref<18x384xbf16, #tpu.memory_space<vmem>>, vector<6x384xbf16>
    %c12 = arith.constant 12 : index
    %c0_42 = arith.constant 0 : index
    %39 = vector.load %arg14[%c12, %c0_42] : memref<18x384xbf16, #tpu.memory_space<vmem>>, vector<6x384xbf16>
    %40 = tpu.concatenate %36, %37, %38, %39 in 1 : vector<6x384xbf16>, vector<6x384xbf16>, vector<6x384xbf16>, vector<6x384xbf16> -> vector<6x1536xbf16>
    %c6_43 = arith.constant 6 : index
    %c0_44 = arith.constant 0 : index
    %41 = vector.load %arg15[%c6_43, %c0_44] : memref<12x1536xbf16, #tpu.memory_space<vmem>>, vector<6x1536xbf16>
    tpu.vector_store %arg15[%c6_43, %c0_44], %40 {strides = array<i32>} : memref<12x1536xbf16, #tpu.memory_space<vmem>>, vector<6x1536xbf16>,
    %c0_45 = arith.constant 0 : index
    %c0_46 = arith.constant 0 : index
    %42 = vector.load %arg15[%c0_45, %c0_46] : memref<12x1536xbf16, #tpu.memory_space<vmem>>, vector<12x1536xbf16>
    %c0_47 = arith.constant 0 : index
    %c0_48 = arith.constant 0 : index
    %43 = vector.load %arg4[%c0_47, %c0_48] : memref<1536x384xbf16, #tpu.memory_space<vmem>>, vector<1536x384xbf16>
    %cst_49 = arith.constant dense<0.000000e+00> : vector<12x384xf32>
    %44 = tpu.matmul %42, %43, %cst_49 {dimension_numbers = #tpu.dot_dimension_numbers<[1], [0], [0], [1], [0, 0, 1, 1], [], []>} : vector<12x1536xbf16>, vector<1536x384xbf16>, vector<12x384xf32> -> vector<12x384xf32>
    %c0_50 = arith.constant 0 : index
    %c0_51 = arith.constant 0 : index
    %45 = vector.load %arg5[%c0_50, %c0_51] : memref<1x384xf32, #tpu.memory_space<vmem>>, vector<1x384xf32>
    %46 = vector.broadcast %45 : vector<1x384xf32> to vector<12x384xf32>
    %47 = arith.addf %44, %46 : vector<12x384xf32>
    %cst_52 = arith.constant 0.000000e+00 : f32
    %48 = vector.broadcast %cst_52 : f32 to vector<12x384xf32>
    %49 = arith.maximumf %47, %48 : vector<12x384xf32>
    %50 = arith.truncf %49 : vector<12x384xf32> to vector<12x384xbf16>
    %c0_53 = arith.constant 0 : index
    %c0_54 = arith.constant 0 : index
    %51 = vector.load %arg16[%c0_53, %c0_54] : memref<12x384xbf16, #tpu.memory_space<vmem>>, vector<12x384xbf16>
    tpu.vector_store %arg16[%c0_53, %c0_54], %50 {strides = array<i32>} : memref<12x384xbf16, #tpu.memory_space<vmem>>, vector<12x384xbf16>,
    %c0_55 = arith.constant 0 : index
    %c0_56 = arith.constant 0 : index
    %52 = vector.load %arg16[%c0_55, %c0_56] : memref<12x384xbf16, #tpu.memory_space<vmem>>, vector<4x384xbf16>
    %c1_57 = arith.constant 1 : index
    %c0_58 = arith.constant 0 : index
    %53 = vector.load %arg16[%c1_57, %c0_58] : memref<12x384xbf16, #tpu.memory_space<vmem>>, vector<4x384xbf16>
    %c2_59 = arith.constant 2 : index
    %c0_60 = arith.constant 0 : index
    %54 = vector.load %arg16[%c2_59, %c0_60] : memref<12x384xbf16, #tpu.memory_space<vmem>>, vector<4x384xbf16>
    %55 = tpu.concatenate %52, %53, %54 in 1 : vector<4x384xbf16>, vector<4x384xbf16>, vector<4x384xbf16> -> vector<4x1152xbf16>
    %c0_61 = arith.constant 0 : index
    %c0_62 = arith.constant 0 : index
    %56 = vector.load %arg17[%c0_61, %c0_62] : memref<8x1152xbf16, #tpu.memory_space<vmem>>, vector<4x1152xbf16>
    tpu.vector_store %arg17[%c0_61, %c0_62], %55 {strides = array<i32>} : memref<8x1152xbf16, #tpu.memory_space<vmem>>, vector<4x1152xbf16>,
    %c6_63 = arith.constant 6 : index
    %c0_64 = arith.constant 0 : index
    %57 = vector.load %arg16[%c6_63, %c0_64] : memref<12x384xbf16, #tpu.memory_space<vmem>>, vector<4x384xbf16>
    %c7_65 = arith.constant 7 : index
    %c0_66 = arith.constant 0 : index
    %58 = vector.load %arg16[%c7_65, %c0_66] : memref<12x384xbf16, #tpu.memory_space<vmem>>, vector<4x384xbf16>
    %c8 = arith.constant 8 : index
    %c0_67 = arith.constant 0 : index
    %59 = vector.load %arg16[%c8, %c0_67] : memref<12x384xbf16, #tpu.memory_space<vmem>>, vector<4x384xbf16>
    %60 = tpu.concatenate %57, %58, %59 in 1 : vector<4x384xbf16>, vector<4x384xbf16>, vector<4x384xbf16> -> vector<4x1152xbf16>
    %c4_68 = arith.constant 4 : index
    %c0_69 = arith.constant 0 : index
    %61 = vector.load %arg17[%c4_68, %c0_69] : memref<8x1152xbf16, #tpu.memory_space<vmem>>, vector<4x1152xbf16>
    tpu.vector_store %arg17[%c4_68, %c0_69], %60 {strides = array<i32>} : memref<8x1152xbf16, #tpu.memory_space<vmem>>, vector<4x1152xbf16>,
    %c0_70 = arith.constant 0 : index
    %c0_71 = arith.constant 0 : index
    %62 = vector.load %arg17[%c0_70, %c0_71] : memref<8x1152xbf16, #tpu.memory_space<vmem>>, vector<8x1152xbf16>
    %c0_72 = arith.constant 0 : index
    %c0_73 = arith.constant 0 : index
    %63 = vector.load %arg6[%c0_72, %c0_73] : memref<1152x256xbf16, #tpu.memory_space<vmem>>, vector<1152x256xbf16>
    %cst_74 = arith.constant dense<0.000000e+00> : vector<8x256xf32>
    %64 = tpu.matmul %62, %63, %cst_74 {dimension_numbers = #tpu.dot_dimension_numbers<[1], [0], [0], [1], [0, 0, 1, 1], [], []>} : vector<8x1152xbf16>, vector<1152x256xbf16>, vector<8x256xf32> -> vector<8x256xf32>
    %c0_75 = arith.constant 0 : index
    %c0_76 = arith.constant 0 : index
    %65 = vector.load %arg7[%c0_75, %c0_76] : memref<1x256xf32, #tpu.memory_space<vmem>>, vector<1x256xf32>
    %66 = vector.broadcast %65 : vector<1x256xf32> to vector<8x256xf32>
    %67 = arith.addf %64, %66 : vector<8x256xf32>
    %cst_77 = arith.constant 0.000000e+00 : f32
    %68 = vector.broadcast %cst_77 : f32 to vector<8x256xf32>
    %69 = arith.maximumf %67, %68 : vector<8x256xf32>
    %70 = arith.truncf %69 : vector<8x256xf32> to vector<8x256xbf16>
    %c0_78 = arith.constant 0 : index
    %c0_79 = arith.constant 0 : index
    %71 = vector.load %arg18[%c0_78, %c0_79] : memref<8x256xbf16, #tpu.memory_space<vmem>>, vector<8x256xbf16>
    tpu.vector_store %arg18[%c0_78, %c0_79], %70 {strides = array<i32>} : memref<8x256xbf16, #tpu.memory_space<vmem>>, vector<8x256xbf16>,
    %c0_80 = arith.constant 0 : index
    %c0_81 = arith.constant 0 : index
    %72 = vector.load %arg18[%c0_80, %c0_81] : memref<8x256xbf16, #tpu.memory_space<vmem>>, vector<1x256xbf16>
    %c1_82 = arith.constant 1 : index
    %c0_83 = arith.constant 0 : index
    %73 = vector.load %arg18[%c1_82, %c0_83] : memref<8x256xbf16, #tpu.memory_space<vmem>>, vector<1x256xbf16>
    %c2_84 = arith.constant 2 : index
    %c0_85 = arith.constant 0 : index
    %74 = vector.load %arg18[%c2_84, %c0_85] : memref<8x256xbf16, #tpu.memory_space<vmem>>, vector<1x256xbf16>
    %c3_86 = arith.constant 3 : index
    %c0_87 = arith.constant 0 : index
    %75 = vector.load %arg18[%c3_86, %c0_87] : memref<8x256xbf16, #tpu.memory_space<vmem>>, vector<1x256xbf16>
    %76 = tpu.concatenate %72, %73, %74, %75 in 1 : vector<1x256xbf16>, vector<1x256xbf16>, vector<1x256xbf16>, vector<1x256xbf16> -> vector<1x1024xbf16>
    %c0_88 = arith.constant 0 : index
    %c0_89 = arith.constant 0 : index
    %77 = vector.load %arg19[%c0_88, %c0_89] : memref<2x1024xbf16, #tpu.memory_space<vmem>>, vector<1x1024xbf16>
    tpu.vector_store %arg19[%c0_88, %c0_89], %76 {strides = array<i32>} : memref<2x1024xbf16, #tpu.memory_space<vmem>>, vector<1x1024xbf16>,
    %c4_90 = arith.constant 4 : index
    %c0_91 = arith.constant 0 : index
    %78 = vector.load %arg18[%c4_90, %c0_91] : memref<8x256xbf16, #tpu.memory_space<vmem>>, vector<1x256xbf16>
    %c5_92 = arith.constant 5 : index
    %c0_93 = arith.constant 0 : index
    %79 = vector.load %arg18[%c5_92, %c0_93] : memref<8x256xbf16, #tpu.memory_space<vmem>>, vector<1x256xbf16>
    %c6_94 = arith.constant 6 : index
    %c0_95 = arith.constant 0 : index
    %80 = vector.load %arg18[%c6_94, %c0_95] : memref<8x256xbf16, #tpu.memory_space<vmem>>, vector<1x256xbf16>
    %c7_96 = arith.constant 7 : index
    %c0_97 = arith.constant 0 : index
    %81 = vector.load %arg18[%c7_96, %c0_97] : memref<8x256xbf16, #tpu.memory_space<vmem>>, vector<1x256xbf16>
    %82 = tpu.concatenate %78, %79, %80, %81 in 1 : vector<1x256xbf16>, vector<1x256xbf16>, vector<1x256xbf16>, vector<1x256xbf16> -> vector<1x1024xbf16>
    %c1_98 = arith.constant 1 : index
    %c0_99 = arith.constant 0 : index
    %83 = vector.load %arg19[%c1_98, %c0_99] : memref<2x1024xbf16, #tpu.memory_space<vmem>>, vector<1x1024xbf16>
    tpu.vector_store %arg19[%c1_98, %c0_99], %82 {strides = array<i32>} : memref<2x1024xbf16, #tpu.memory_space<vmem>>, vector<1x1024xbf16>,
    %c0_100 = arith.constant 0 : index
    %c0_101 = arith.constant 0 : index
    %84 = vector.load %arg19[%c0_100, %c0_101] : memref<2x1024xbf16, #tpu.memory_space<vmem>>, vector<2x1024xbf16>
    %c0_102 = arith.constant 0 : index
    %c0_103 = arith.constant 0 : index
    %85 = vector.load %arg8[%c0_102, %c0_103] : memref<1024x512xbf16, #tpu.memory_space<vmem>>, vector<1024x512xbf16>
    %cst_104 = arith.constant dense<0.000000e+00> : vector<2x512xf32>
    %86 = tpu.matmul %84, %85, %cst_104 {dimension_numbers = #tpu.dot_dimension_numbers<[1], [0], [0], [1], [0, 0, 1, 1], [], []>} : vector<2x1024xbf16>, vector<1024x512xbf16>, vector<2x512xf32> -> vector<2x512xf32>
    %c0_105 = arith.constant 0 : index
    %c0_106 = arith.constant 0 : index
    %87 = vector.load %arg9[%c0_105, %c0_106] : memref<1x512xf32, #tpu.memory_space<vmem>>, vector<1x512xf32>
    %88 = vector.broadcast %87 : vector<1x512xf32> to vector<2x512xf32>
    %89 = arith.addf %86, %88 : vector<2x512xf32>
    %cst_107 = arith.constant 0.000000e+00 : f32
    %90 = vector.broadcast %cst_107 : f32 to vector<2x512xf32>
    %91 = arith.maximumf %89, %90 : vector<2x512xf32>
    %92 = arith.truncf %91 : vector<2x512xf32> to vector<2x512xbf16>
    %c0_108 = arith.constant 0 : index
    %c0_109 = arith.constant 0 : index
    %93 = vector.load %arg10[%c0_108, %c0_109] : memref<512x128xbf16, #tpu.memory_space<vmem>>, vector<512x128xbf16>
    %cst_110 = arith.constant dense<0.000000e+00> : vector<2x128xf32>
    %94 = tpu.matmul %92, %93, %cst_110 {dimension_numbers = #tpu.dot_dimension_numbers<[1], [0], [0], [1], [0, 0, 1, 1], [], []>} : vector<2x512xbf16>, vector<512x128xbf16>, vector<2x128xf32> -> vector<2x128xf32>
    %c0_111 = arith.constant 0 : index
    %c0_112 = arith.constant 0 : index
    %95 = vector.load %arg11[%c0_111, %c0_112] : memref<1x128xf32, #tpu.memory_space<vmem>>, vector<1x128xf32>
    %96 = vector.broadcast %95 : vector<1x128xf32> to vector<2x128xf32>
    %97 = arith.addf %94, %96 : vector<2x128xf32>
    %c0_113 = arith.constant 0 : index
    %c0_114 = arith.constant 0 : index
    %98 = vector.load %arg12[%c0_113, %c0_114] : memref<2x128xf32, #tpu.memory_space<vmem>>, vector<2x128xf32>
    tpu.vector_store %arg12[%c0_113, %c0_114], %97 {strides = array<i32>} : memref<2x128xf32, #tpu.memory_space<vmem>>, vector<2x128xf32>,
    return
  }
  func.func @transform_0(%arg0: i32) -> (i32, i32) {
    %c0_i32 = arith.constant 0 : i32
    %c0_i32_0 = arith.constant 0 : i32
    %c0_i32_1 = arith.constant 0 : i32
    return %c0_i32, %c0_i32_0 : i32, i32
  }
  func.func @transform_1(%arg0: i32) -> (i32, i32) {
    %c0_i32 = arith.constant 0 : i32
    %c0_i32_0 = arith.constant 0 : i32
    %c0_i32_1 = arith.constant 0 : i32
    return %c0_i32, %c0_i32_0 : i32, i32
  }
  func.func @transform_2(%arg0: i32) -> (i32, i32) {
    %c0_i32 = arith.constant 0 : i32
    %c0_i32_0 = arith.constant 0 : i32
    %c0_i32_1 = arith.constant 0 : i32
    return %c0_i32, %c0_i32_0 : i32, i32
  }
  func.func @transform_3(%arg0: i32) -> (i32, i32) {
    %c0_i32 = arith.constant 0 : i32
    %c0_i32_0 = arith.constant 0 : i32
    %c0_i32_1 = arith.constant 0 : i32
    return %c0_i32, %c0_i32_0 : i32, i32
  }
  func.func @transform_4(%arg0: i32) -> (i32, i32) {
    %c0_i32 = arith.constant 0 : i32
    %c0_i32_0 = arith.constant 0 : i32
    %c0_i32_1 = arith.constant 0 : i32
    return %c0_i32, %c0_i32_0 : i32, i32
  }
  func.func @transform_5(%arg0: i32) -> (i32, i32) {
    %c0_i32 = arith.constant 0 : i32
    %c0_i32_0 = arith.constant 0 : i32
    %c0_i32_1 = arith.constant 0 : i32
    return %c0_i32, %c0_i32_0 : i32, i32
  }
  func.func @transform_6(%arg0: i32) -> (i32, i32) {
    %c0_i32 = arith.constant 0 : i32
    %c0_i32_0 = arith.constant 0 : i32
    %c0_i32_1 = arith.constant 0 : i32
    return %c0_i32, %c0_i32_0 : i32, i32
  }
  func.func @transform_7(%arg0: i32) -> (i32, i32) {
    %c0_i32 = arith.constant 0 : i32
    %c0_i32_0 = arith.constant 0 : i32
    %c0_i32_1 = arith.constant 0 : i32
    return %c0_i32, %c0_i32_0 : i32, i32
  }
  func.func @transform_8(%arg0: i32) -> (i32, i32) {
    %c0_i32 = arith.constant 0 : i32
    %c0_i32_0 = arith.constant 0 : i32
    %c0_i32_1 = arith.constant 0 : i32
    return %c0_i32, %c0_i32_0 : i32, i32
  }
  func.func @transform_9(%arg0: i32) -> (i32, i32) {
    %c0_i32 = arith.constant 0 : i32
    %c0_i32_0 = arith.constant 0 : i32
    %c0_i32_1 = arith.constant 0 : i32
    return %c0_i32, %c0_i32_0 : i32, i32
  }
  func.func @transform_10(%arg0: i32) -> (i32, i32) {
    %c0_i32 = arith.constant 0 : i32
    %c0_i32_0 = arith.constant 0 : i32
    %c0_i32_1 = arith.constant 0 : i32
    return %c0_i32, %c0_i32_0 : i32, i32
  }
  func.func @transform_11(%arg0: i32) -> (i32, i32) {
    %c0_i32 = arith.constant 0 : i32
    %c0_i32_0 = arith.constant 0 : i32
    %c0_i32_1 = arith.constant 0 : i32
    return %c0_i32, %c0_i32_0 : i32, i32
  }
}

</mosaic_0001>

<bundles_post_ra>
// kernel: dqn_forward.1
= control target key start
LH: loop header
LB: loop body
LE: loop exit
PB: predicated region body
PF: predicated region fallthrough
CT: control target
= control target key end

     0   :  { %16 = vsyncpa [#allocation10], 0  ;;  %s12547_s0 = inlined_call_operand.vmem [shape: bf16[32,128], index: 0, kind: input, shape index: {}]   ;;  %s12548_s1 = inlined_call_operand.hbm [shape: bf16[1024,384], index: 1, kind: input, shape index: {}]   ;;  %s12549_s2 = inlined_call_operand.hbm [shape: f32[1,384], index: 2, kind: input, shape index: {}]   ;;  %s12550_s3 = inlined_call_operand.hbm [shape: bf16[1536,384], index: 3, kind: input, shape index: {}]   ;;  %s12551_s4 = inlined_call_operand.hbm [shape: f32[1,384], index: 4, kind: input, shape index: {}]   ;;  %s12552_s5 = inlined_call_operand.hbm [shape: bf16[1152,256], index: 5, kind: input, shape index: {}]   ;;  %s12553_s6 = inlined_call_operand.hbm [shape: f32[1,256], index: 6, kind: input, shape index: {}]   ;;  %s12554_s7 = inlined_call_operand.hbm [shape: bf16[1024,512], index: 7, kind: input, shape index: {}]   ;;  %s12555_s8 = inlined_call_operand.hbm [shape: f32[1,512], index: 8, kind: input, shape index: {}]   ;;  %s12556_s9 = inlined_call_operand.hbm [shape: bf16[512,128], index: 9, kind: input, shape index: {}]   ;;  %s12557_s10 = inlined_call_operand.hbm [shape: f32[1,128], index: 10, kind: input, shape index: {}]   ;;  %s12558_s11 = inlined_call_operand.hbm [shape: f32[2,128], index: 11, kind: output, shape index: {}]  }
   0x1   :  { %17 = vsyncpa [#allocation13], 0 }
   0x2   :  { %18 = vsyncpa [#allocation16], 0 }
   0x3   :  { %19 = vsyncpa [#allocation19], 0 }
   0x4   :  { %20 = vsyncpa [#allocation22], 0 }
   0x5   :  { %21 = vsyncpa [#allocation25], 0 }
   0x6   :  { %22 = vsyncpa [#allocation11], 0  ;;  %s11889_s17 = smov [#allocation12]   ;;  %s11890_s19 = smov [#allocation15]  }
   0x7   :  { %s43_s18 = sshll.u32 %s11889_s17, 4  ;;  %s65_s20 = sshll.u32 %s11890_s19, 4  ;;  %s44_s18 = int_to_ptr.vmem [resolvable:$true] %s43_s18  ;;  %s66_s20 = int_to_ptr.vmem [resolvable:$true] %s65_s20 }
   0x8   :  { %s11663_s21 = scalar_lea.vmem %s44_s18, 48  ;;  %s11667_s22 = scalar_lea.vmem %s44_s18, 64 }
   0x9   :  { %p11664_p0 = scmp.ne.s32.totalorder %s44_s18, %s11663_s21  ;;  %p11668_p1 = scmp.lt.s32.totalorder %s44_s18, %s44_s18 }
   0xa   :  { %p11669_p2 = scmp.lt.s32.totalorder %s11667_s22, %s11663_s21 }
   0xc   :  { %p11670_p3 = por %p11669_p2, %p11668_p1 }
   0xe   :  { %p11671_p4 = pnand %p11670_p3, %p11664_p0 }
  0x10   :  { %11674 = shalt.err (!%p11671_p4)
}
  0x11   :  { %46 = dma.hbm_to_vmem [thread:$0]  %s12549_s2, 48, %s44_s18, [#allocation13]  }
  0x12   :  { %s11683_s25 = scalar_lea.vmem %s66_s20, 48  ;;  %s11687_s26 = scalar_lea.vmem %s66_s20, 64 }
  0x13   :  { %p11684_p5 = scmp.ne.s32.totalorder %s66_s20, %s11683_s25  ;;  %p11688_p6 = scmp.lt.s32.totalorder %s66_s20, %s66_s20 }
  0x14   :  { %p11689_p7 = scmp.lt.s32.totalorder %s11687_s26, %s11683_s25 }
  0x16   :  { %p11690_p8 = por %p11689_p7, %p11688_p6 }
  0x18   :  { %p11691_p9 = pnand %p11690_p8, %p11684_p5 }
  0x1a   :  { %11694 = shalt.err (!%p11691_p9)
}
  0x1b   :  { %68 = dma.hbm_to_vmem [thread:$0]  %s12551_s4, 48, %s66_s20, [#allocation16]  }
  0x1c   :  { %s11891_s29 = smov [#allocation18]   ;;  %s11892_s12 = smov [#allocation21]  }
  0x1d   :  { %s87_s30 = sshll.u32 %s11891_s29, 4  ;;  %s109_s13 = sshll.u32 %s11892_s12, 4  ;;  %s88_s30 = int_to_ptr.vmem [resolvable:$true] %s87_s30  ;;  %s110_s13 = int_to_ptr.vmem [resolvable:$true] %s109_s13 }
  0x1e   :  { %s11703_s14 = scalar_lea.vmem %s88_s30, 32  ;;  %p11708_p11 = scmp.lt.s32.totalorder %s88_s30, %s88_s30 }
  0x1f   :  { %p11704_p10 = scmp.ne.s32.totalorder %s88_s30, %s11703_s14  ;;  %p11709_p12 = scmp.lt.s32.totalorder %s11703_s14, %s11703_s14 }
  0x21   :  { %p11710_p13 = por %p11709_p12, %p11708_p11 }
  0x23   :  { %p11711_p0 = pnand %p11710_p13, %p11704_p10 }
  0x25   :  { %11714 = shalt.err (!%p11711_p0)
}
  0x26   :  { %90 = dma.hbm_to_vmem [thread:$0]  %s12553_s6, 32, %s88_s30, [#allocation19]  }
  0x27   :  { %s11723_s16 = scalar_lea.vmem %s110_s13, 64  ;;  %p11728_p2 = scmp.lt.s32.totalorder %s110_s13, %s110_s13 }
  0x28   :  { %p11724_p1 = scmp.ne.s32.totalorder %s110_s13, %s11723_s16  ;;  %p11729_p3 = scmp.lt.s32.totalorder %s11723_s16, %s11723_s16 }
  0x2a   :  { %p11730_p4 = por %p11729_p3, %p11728_p2 }
  0x2c   :  { %p11731_p5 = pnand %p11730_p4, %p11724_p1 }
  0x2e   :  { %11734 = shalt.err (!%p11731_p5)
}
  0x2f   :  { %112 = dma.hbm_to_vmem [thread:$0]  %s12555_s8, 64, %s110_s13, [#allocation22]  }
  0x30   :  { %s11893_s18 = smov [#allocation9]  }
  0x31   :  { %s30_s19 = sshll.u32 %s11893_s18, 4  ;;  %s31_s19 = int_to_ptr.vmem [resolvable:$true] %s30_s19 }
  0x32   :  { %s11743_s20 = scalar_lea.vmem %s31_s19, 24576  ;;  %p11748_p7 = scmp.lt.s32.totalorder %s31_s19, %s31_s19 }
  0x33   :  { %p11744_p6 = scmp.ne.s32.totalorder %s31_s19, %s11743_s20  ;;  %p11749_p8 = scmp.lt.s32.totalorder %s11743_s20, %s11743_s20 }
  0x35   :  { %p11750_p9 = por %p11749_p8, %p11748_p7 }
  0x37   :  { %p11751_p10 = pnand %p11750_p9, %p11744_p6 }
  0x39   :  { %11754 = shalt.err (!%p11751_p10)
}
  0x3a   :  { %s11894_s6 = smov 192   ;;  %s11895_s21 = smov 12  }
  0x3b   :  { %36 = dma.hbm_to_vmem [thread:$0]  %s12548_s1, 24576, %s31_s19, [#allocation10], %s11894_s6, %s11894_s6, %s11895_s21  }
  0x3c   :  { %s11896_s24 = smov [#allocation14]   ;;  %s11897_s8 = smov [#allocation17]  }
  0x3d   :  { %s52_s25 = sshll.u32 %s11896_s24, 4  ;;  %s74_s26 = sshll.u32 %s11897_s8, 4  ;;  %s53_s25 = int_to_ptr.vmem [resolvable:$true] %s52_s25  ;;  %s75_s26 = int_to_ptr.vmem [resolvable:$true] %s74_s26 }
  0x3e   :  { %s11763_s27 = scalar_lea.vmem %s53_s25, 36864  ;;  %p11768_p12 = scmp.lt.s32.totalorder %s53_s25, %s53_s25 }
  0x3f   :  { %p11764_p11 = scmp.ne.s32.totalorder %s53_s25, %s11763_s27  ;;  %p11769_p13 = scmp.lt.s32.totalorder %s11763_s27, %s11763_s27 }
  0x41   :  { %p11770_p0 = por %p11769_p13, %p11768_p12 }
  0x43   :  { %p11771_p1 = pnand %p11770_p0, %p11764_p11 }
  0x45   :  { %11774 = shalt.err (!%p11771_p1)
}
  0x46   :  { %58 = dma.hbm_to_vmem [thread:$0]  %s12550_s3, 36864, %s53_s25, [#allocation13], %s11894_s6, %s11894_s6, %s11895_s21  }
  0x47   :  { %s11783_s30 = scalar_lea.vmem %s75_s26, 18432  ;;  %p11788_p3 = scmp.lt.s32.totalorder %s75_s26, %s75_s26 }
  0x48   :  { %p11784_p2 = scmp.ne.s32.totalorder %s75_s26, %s11783_s30  ;;  %p11789_p4 = scmp.lt.s32.totalorder %s11783_s30, %s11783_s30 }
  0x4a   :  { %p11790_p5 = por %p11789_p4, %p11788_p3 }
  0x4c   :  { %p11791_p6 = pnand %p11790_p5, %p11784_p2 }
  0x4e   :  { %11794 = shalt.err (!%p11791_p6)
}
  0x4f   :  { %s11898_s1 = smov 128   ;;  %s11899_s12 = smov 8  }
  0x50   :  { %80 = dma.hbm_to_vmem [thread:$0]  %s12552_s5, 18432, %s75_s26, [#allocation16], %s11898_s1, %s11898_s1, %s11899_s12  }
  0x51   :  { %s11900_s2 = smov [#allocation20]  }
  0x52   :  { %s96_s15 = sshll.u32 %s11900_s2, 4  ;;  %s97_s15 = int_to_ptr.vmem [resolvable:$true] %s96_s15 }
  0x53   :  { %s11803_s16 = scalar_lea.vmem %s97_s15, 32768  ;;  %p11808_p8 = scmp.lt.s32.totalorder %s97_s15, %s97_s15 }
  0x54   :  { %p11804_p7 = scmp.ne.s32.totalorder %s97_s15, %s11803_s16  ;;  %p11809_p9 = scmp.lt.s32.totalorder %s11803_s16, %s11803_s16 }
  0x56   :  { %p11810_p10 = por %p11809_p9, %p11808_p8 }
  0x58   :  { %p11811_p11 = pnand %p11810_p10, %p11804_p7 }
  0x5a   :  { %11814 = shalt.err (!%p11811_p11)
}
  0x5b   :  { %s11901_s3 = smov 256   ;;  %s11902_s4 = smov 16  }
  0x5c   :  { %102 = dma.hbm_to_vmem [thread:$0]  %s12554_s7, 32768, %s97_s15, [#allocation19], %s11901_s3, %s11901_s3, %s11902_s4  }
  0x5d   :  { %s11903_s19 = smov [#allocation23]  }
  0x5e   :  { %s118_s20 = sshll.u32 %s11903_s19, 4  ;;  %s119_s20 = int_to_ptr.vmem [resolvable:$true] %s118_s20 }
  0x5f   :  { %s11823_s5 = scalar_lea.vmem %s119_s20, 4096  ;;  %p11828_p13 = scmp.lt.s32.totalorder %s119_s20, %s119_s20 }
  0x60   :  { %p11824_p12 = scmp.ne.s32.totalorder %s119_s20, %s11823_s5  ;;  %p11829_p0 = scmp.lt.s32.totalorder %s11823_s5, %s11823_s5 }
  0x62   :  { %p11830_p1 = por %p11829_p0, %p11828_p13 }
  0x64   :  { %p11831_p2 = pnand %p11830_p1, %p11824_p12 }
  0x66   :  { %11834 = shalt.err (!%p11831_p2)
}
  0x67   :  { %s11904_s6 = smov 64   ;;  %s11905_s21 = smov 4  }
  0x68   :  { %124 = dma.hbm_to_vmem [thread:$0]  %s12556_s9, 4096, %s119_s20, [#allocation22], %s11904_s6, %s11904_s6, %s11905_s21  }
  0x69   :  { %s11906_s24 = smov [#allocation24]  }
  0x6a   :  { %s131_s25 = sshll.u32 %s11906_s24, 4  ;;  %s132_s25 = int_to_ptr.vmem [resolvable:$true] %s131_s25 }
  0x6b   :  { %s11843_s7 = scalar_lea.vmem %s132_s25, 16  ;;  %s11847_s8 = scalar_lea.vmem %s132_s25, 32 }
  0x6c   :  { %p11844_p3 = scmp.ne.s32.totalorder %s132_s25, %s11843_s7  ;;  %p11848_p4 = scmp.lt.s32.totalorder %s132_s25, %s132_s25 }
  0x6d   :  { %p11849_p5 = scmp.lt.s32.totalorder %s11847_s8, %s11843_s7 }
  0x6f   :  { %p11850_p6 = por %p11849_p5, %p11848_p4 }
  0x71   :  { %p11851_p7 = pnand %p11850_p6, %p11844_p3 }
  0x73   :  { %11854 = shalt.err (!%p11851_p7)
}
  0x74   :  { %134 = dma.hbm_to_vmem [thread:$0]  %s12557_s10, 16, %s132_s25, [#allocation25]  }
  0x75   :  { %11875 = dma.done.wait [#allocation10], 24576  }
  0x76   :  { %11876 = vsyncadd [#allocation10], 4294942720 }
  0x77   :  { %11877 = dma.done.wait [#allocation13], 36912  }
  0x78   :  { %11878 = vsyncadd [#allocation13], 4294930384 }
  0x79   :  { %11879 = dma.done.wait [#allocation16], 18480  }
  0x7a   :  { %11880 = vsyncadd [#allocation16], 4294948816 }
  0x7b   :  { %11881 = dma.done.wait [#allocation19], 32800  }
  0x7c   :  { %11882 = vsyncadd [#allocation19], 4294934496 }
  0x7d   :  { %11883 = dma.done.wait [#allocation22], 4160  }
  0x7e   :  { %11884 = vsyncadd [#allocation22], 4294963136 }
  0x7f   :  { %11885 = dma.done.wait [#allocation25], 16  }
  0x80   :  { %11886 = vsyncadd [#allocation25], 4294967280  ;;  %v10308_v0 = vld [vmem:[#allocation9 + $0xac] ss:$12 sps:$4 sm:$0xff]   ;;  %v10312_v2 = vld [vmem:[#allocation9 + $0xa8] ss:$12 sps:$4 sm:$0xff]  }
  0x81   :  { %v10310_v1 = vld [vmem:[#allocation9 + $0x22c] ss:$12 sps:$4 sm:$0xff]   ;;  %1823 = vmatprep.subr.bf16.mxu0 %v10308_v0  ;;  %v10313_v3 = vld [vmem:[#allocation9 + $0x228] ss:$12 sps:$4 sm:$0xff]   ;;  %v10318_v6 = vld [vmem:[#allocation9 + $0x90] ss:$12 sps:$4 sm:$0xff]  }
  0x82   :  { %1874 = vmatprep.subr.bf16.mxu1 %v10310_v1  ;;  %v10314_v4 = vld [vmem:[#allocation9 + $0x94] ss:$12 sps:$4 sm:$0xff]   ;;  %1824 = vmatpush1.bf16.msra.mxu0 %v10312_v2  ;;  %v10319_v7 = vld [vmem:[#allocation9 + $0x210] ss:$12 sps:$4 sm:$0xff]   ;;  %v10324_v10 = vld [vmem:[#allocation9 + $0x78] ss:$12 sps:$4 sm:$0xff]  }
  0x83   :  { %1875 = vmatpush1.bf16.msra.mxu1 %v10313_v3  ;;  %v10316_v5 = vld [vmem:[#allocation9 + $0x214] ss:$12 sps:$4 sm:$0xff]   ;;  %1825 = vmatprep.subr.bf16.mxu0 %v10314_v4  ;;  %v10320_v8 = vld [vmem:[#allocation9 + $0x7c] ss:$12 sps:$4 sm:$0xff]   ;;  %v10325_v11 = vld [vmem:[#allocation9 + $0x1f8] ss:$12 sps:$4 sm:$0xff]  }
  0x84   :  { %1876 = vmatprep.subr.bf16.mxu1 %v10316_v5  ;;  %v10322_v9 = vld [vmem:[#allocation9 + $0x1fc] ss:$12 sps:$4 sm:$0xff]   ;;  %v10326_v12 = vld [vmem:[#allocation9 + $0x64] ss:$12 sps:$4 sm:$0xff]   ;;  %v10330_v14 = vld [vmem:[#allocation9 + $0x60] ss:$12 sps:$4 sm:$0xff]  }
  0x85   :  { %v10328_v13 = vld [vmem:[#allocation9 + $0x1e4] ss:$12 sps:$4 sm:$0xff]   ;;  %v10331_v15 = vld [vmem:[#allocation9 + $0x1e0] ss:$12 sps:$4 sm:$0xff]   ;;  %v10336_v18 = vld [vmem:[#allocation9 + $0x48] ss:$12 sps:$4 sm:$0xff]  }
  0x86   :  { %1826 = vmatpush1.bf16.msra.mxu0 %v10318_v6  ;;  %v10332_v16 = vld [vmem:[#allocation9 + $0x4c] ss:$12 sps:$4 sm:$0xff]   ;;  %v10337_v19 = vld [vmem:[#allocation9 + $0x1c8] ss:$12 sps:$4 sm:$0xff]   ;;  %v10342_v22 = vld [vmem:[#allocation9 + $0x30] ss:$12 sps:$4 sm:$0xff]  }
  0x87   :  { %1877 = vmatpush1.bf16.msra.mxu1 %v10319_v7  ;;  %1827 = vmatprep.subr.bf16.mxu0 %v10320_v8  ;;  %v10334_v17 = vld [vmem:[#allocation9 + $0x1cc] ss:$12 sps:$4 sm:$0xff]   ;;  %v10338_v20 = vld [vmem:[#allocation9 + $0x34] ss:$12 sps:$4 sm:$0xff]   ;;  %v10343_v23 = vld [vmem:[#allocation9 + $0x1b0] ss:$12 sps:$4 sm:$0xff]  }
  0x88   :  { %1878 = vmatprep.subr.bf16.mxu1 %v10322_v9  ;;  %v10340_v21 = vld [vmem:[#allocation9 + $0x1b4] ss:$12 sps:$4 sm:$0xff]   ;;  %v10344_v24 = vld [vmem:[#allocation9 + $0x1c] ss:$12 sps:$4 sm:$0xff]   ;;  %v10348_v26 = vld [vmem:[#allocation9 + $0x18] ss:$12 sps:$4 sm:$0xff]  }
  0x89   :  { %v10346_v25 = vld [vmem:[#allocation9 + $0x19c] ss:$12 sps:$4 sm:$0xff]   ;;  %v10349_v27 = vld [vmem:[#allocation9 + $0x198] ss:$12 sps:$4 sm:$0xff]   ;;  %v10354_v30 = vld [vmem:[#allocation9] ss:$12 sps:$4 sm:$0xff]  }
  0x8a   :  { %1828 = vmatpush1.bf16.msra.mxu0 %v10324_v10  ;;  %v10350_v28 = vld [vmem:[#allocation9 + $0x4] ss:$12 sps:$4 sm:$0xff]   ;;  %v10355_v31 = vld [vmem:[#allocation9 + $0x180] ss:$12 sps:$4 sm:$0xff]   ;;  %v10360_v34 = vld [vmem:[#allocation9 + $0x168] ss:$12 sps:$4 sm:$0xff]  }
  0x8b   :  { %1879 = vmatpush1.bf16.msra.mxu1 %v10325_v11  ;;  %1829 = vmatprep.subr.bf16.mxu0 %v10326_v12  ;;  %v10352_v29 = vld [vmem:[#allocation9 + $0x184] ss:$12 sps:$4 sm:$0xff]   ;;  %v10356_v32 = vld [vmem:[#allocation9 + $0x16c] ss:$12 sps:$4 sm:$0xff]   ;;  %v10361_v35 = vld [vmem:[#allocation9 + $0x2e8] ss:$12 sps:$4 sm:$0xff]  }
  0x8c   :  { %1880 = vmatprep.subr.bf16.mxu1 %v10328_v13  ;;  %v10358_v33 = vld [vmem:[#allocation9 + $0x2ec] ss:$12 sps:$4 sm:$0xff]   ;;  %v10362_v36 = vld [vmem:[#allocation9 + $0x154] ss:$12 sps:$4 sm:$0xff]   ;;  %vm12562_vm0 = vcmask 1040384   ;;  %vm12560_vm2 = vcmask 1044484  }
  0x8d   :  { %v10364_v37 = vld [vmem:[#allocation9 + $0x2d4] ss:$12 sps:$4 sm:$0xff]   ;;  %vm12559_vm1 = vsmask.f32 256  ;;  %vm266_vm3 = vsmask.f32 4352 }
  0x8e   :  { %1830 = vmatpush1.bf16.msra.mxu0 %v10330_v14  ;;  %v10366_v38 = vld [vmem:[#allocation9 + $0x150] ss:$12 sps:$4 sm:$0xff]   ;;  %vm12563_vm4 = vsmask.f32 7938  ;;  %vm426_vm5 = vcmask 1047556   ;;  %vm8943_vm7 = vcmask 1043456  ;;  %vm12002_vm8 = vmand %vm12562_vm0, %vm12559_vm1 }
  0x8f   :  { %1881 = vmatpush1.bf16.msra.mxu1 %v10331_v15  ;;  %1831 = vmatprep.subr.bf16.mxu0 %v10332_v16  ;;  %v10367_v39 = vld [vmem:[#allocation9 + $0x2d0] ss:$12 sps:$4 sm:$0xff]   ;;  %vm12561_vm6 = vsmask.f32 7954  ;;  %vm12564_vm9 = vcmask 1041409   ;;  %vm12008_vm11 = vmand %vm12560_vm2, %vm266_vm3  ;;  %vm6489_vm15 = vcmask 1042434  }
  0x90   :  { %1882 = vmatprep.subr.bf16.mxu1 %v10334_v17  ;;  %v10368_v40 = vld [vmem:[#allocation9 + $0x13c] ss:$12 sps:$4 sm:$0xff]   ;;  %vm6486_vm10 = vsmask.f32 1280  ;;  %v10372_v43 = vld [vmem:[#allocation9 + $0x138] ss:$12 sps:$4 sm:$0xff]   ;;  %vm12014_vm13 = vmand %vm8943_vm7, %vm12563_vm4 }
  0x91   :  { %v10370_v41 = vld [vmem:[#allocation9 + $0x2bc] ss:$12 sps:$4 sm:$0xff]   ;;  %v10373_v44 = vld [vmem:[#allocation9 + $0x2b8] ss:$12 sps:$4 sm:$0xff]   ;;  %vm6490_vm12 = vsmask.f32 2304  ;;  %vm12020_vm14 = vmand %vm426_vm5, %vm12561_vm6 }
  0x92   :  { %1832 = vmatpush1.bf16.msra.mxu0 %v10336_v18  ;;  %v10374_v46 = vld [vmem:[#allocation9 + $0x124] ss:$12 sps:$4 sm:$0xff]   ;;  %vm6493_vm3 = vcmask 1043459   ;;  %vm6494_vm1 = vsmask.f32 3328  ;;  %vm12033_vm5 = vmor %vm12008_vm11, %vm12002_vm8 }
  0x93   :  { %1883 = vmatpush1.bf16.msra.mxu1 %v10337_v19  ;;  %1833 = vmatprep.subr.bf16.mxu0 %v10338_v20  ;;  %v10376_v49 = vld [vmem:[#allocation9 + $0x2a4] ss:$12 sps:$4 sm:$0xff]   ;;  %v10378_v50 = vld [vmem:[#allocation9 + $0x120] ss:$12 sps:$4 sm:$0xff]   ;;  %v167_v56 = vld [vmem:[%s12547_s0 + $0x4] sm:$0x1] }
  0x94   :  { %1884 = vmatprep.subr.bf16.mxu1 %v10340_v21  ;;  %v10379_v51 = vld [vmem:[#allocation9 + $0x2a0] ss:$12 sps:$4 sm:$0xff]   ;;  %v12027_v52 = vld [vmem:[%s12547_s0] sm:$0xf]  ;;  %v281_v57 = vld [vmem:[%s12547_s0 + $0x8] sm:$0xf] }
  0x95   :  { %v10380_v54 = vld [vmem:[#allocation9 + $0x10c] ss:$12 sps:$4 sm:$0xff]   ;;  %v8935_v58 = vcombine.low %v12027_v52, %v167_v56  ;;  %v12047_v59 = vld [vmem:[%s12547_s0 + $0xc] sm:$0x1]  ;;  %vm12051_vm2 = vmand %vm12564_vm9, %vm6486_vm10  ;;  %vm6595_vm6 = vsmask.f32 7942 }
  0x96   :  { %1834 = vmatpush1.bf16.msra.mxu0 %v10342_v22  ;;  %v10382_v55 = vld [vmem:[#allocation9 + $0x28c] ss:$12 sps:$4 sm:$0xff]   ;;  %v8948_v61 = vcombine.low %v281_v57, %v12047_v59  ;;  %vm6488_vm0 = vmor %vm12051_vm2, %vm12002_vm8  ;;  %vm6598_vm4 = vsmask.f32 7946  ;;  %v10406_v62 = vld [vmem:[%s12547_s0] sm:$0x3e]  }
  0x97   :  { %1885 = vmatpush1.bf16.msra.mxu1 %v10343_v23  ;;  %1835 = vmatprep.subr.bf16.mxu0 %v10344_v24  ;;  %v10384_v63 = vld [vmem:[#allocation9 + $0x108] ss:$12 sps:$4 sm:$0xff]   ;;  %v180_v1 = vshrl.u32 %v8935_v58, 16  ;;  %v182_v2 = vshll.u32 %v8935_v58, 16  ;;  %vm6491_vm10 = vmand %vm6489_vm15, %vm6490_vm12  ;;  %v193_v7 = vshrl.u32 %v10406_v62, 16  ;;  %v196_v9 = vshll.u32 %v10406_v62, 16 }
  0x98   :  { %1886 = vmatprep.subr.bf16.mxu1 %v10346_v25  ;;  %v10385_v0 = vld [vmem:[#allocation9 + $0x288] ss:$12 sps:$4 sm:$0xff]   ;;  %v295_v4 = vshrl.u32 %v8948_v61, 16  ;;  %v297_v5 = vshll.u32 %v8948_v61, 16  ;;  %vm12065_vm9 = vmor %vm6491_vm10, %vm6488_vm0  ;;  %v12074_v10 = vld [vmem:[%s12547_s0 + $0x8] sm:$0x3e]  }
  0x99   :  { %v10386_v3 = vld [vmem:[#allocation9 + $0xf4] ss:$12 sps:$4 sm:$0xff]   ;;  %v184_v8 = vrot.slane %v182_v2, 1  ;;  %vm6495_vm2 = vmand %vm6493_vm3, %vm6494_vm1  ;;  %v195_v13 = vrot.slane %v193_v7, 1  ;;  %v12086_v17 = vrot.slane %v10406_v62, 1  ;;  %v198_v18 = vrot.slane %v196_v9, 2 }
  0x9a   :  { %1836 = vmatpush1.bf16.msra.mxu0 %v10348_v26  ;;  %v10388_v11 = vld [vmem:[#allocation9 + $0x274] ss:$12 sps:$4 sm:$0xff]   ;;  %v299_v12 = vrot.slane %v297_v5, 1  ;;  %vm6496_vm0 = vmor %vm6495_vm2, %vm12065_vm9  ;;  %v308_v19 = vshrl.u32 %v12074_v10, 16  ;;  %v10390_v20 = vld [vmem:[#allocation9 + $0xf0] ss:$12 sps:$4 sm:$0xff]  }
  0x9b   :  { %1887 = vmatpush1.bf16.msra.mxu1 %v10349_v27  ;;  %1837 = vmatprep.subr.bf16.mxu0 %v10350_v28  ;;  %v12078_v14 = vor.u32 %v184_v8, %v180_v1  ;;  %v269_v15 = vld [vmem:[#allocation2 + $0x50] sm:$0x11]  ;;  %vm12082_vm1 = vmor %vm12008_vm11, %vm6496_vm0  ;;  %v10391_v21 = vld [vmem:[#allocation9 + $0x270] ss:$12 sps:$4 sm:$0xff]   ;;  %v311_v24 = vshll.u32 %v12074_v10, 16  ;;  %vm12584_vm11 = vcmask 1040384  }
  0x9c   :  { %1888 = vmatprep.subr.bf16.mxu1 %v10352_v29  ;;  %v12089_v22 = vor.u32 %v299_v12, %v295_v4  ;;  %vm12095_vm8 = vmor %vm12020_vm14, %vm12014_vm13  ;;  %v10392_v25 = vld [vmem:[#allocation9 + $0xdc] ss:$12 sps:$4 sm:$0xff]   ;;  %v12104_v29 = vor.u32 %v198_v18, %v195_v13  ;;  %vm12583_vm9 = vsmask.f32 7938  ;;  %vm12587_vm13 = vcmask 1041409  }
  0x9d   :  { %v10394_v26 = vld [vmem:[#allocation9 + $0x25c] ss:$12 sps:$4 sm:$0xff]   ;;  %v8939_v27 = vcombine.low %v12027_v52, %v12078_v14  ;;  %v8944_v28 = vsel %vm8943_vm7, %v167_v56, %v12078_v14  ;;  %vm12111_vm12 = vmand %vm12584_vm11, %vm12583_vm9  ;;  %vm6601_vm10 = vsmask.f32 7950  ;;  %v10398_v45 = vld [vmem:[#allocation9 + $0xc4] ss:$12 sps:$4 sm:$0xff]  }
  0x9e   :  { %1838 = vmatpush1.bf16.msra.mxu0 %v10354_v30  ;;  %v310_v30 = vrot.slane %v308_v19, 1  ;;  %vm12118_vm14 = vmand %vm12587_vm13, %vm6595_vm6  ;;  %v10400_v47 = vld [vmem:[#allocation9 + $0x244] ss:$12 sps:$4 sm:$0xff]   ;;  %vm12592_vm9 = vsmask.f32 7954  ;;  %vm12593_vm11 = vcmask 1044484  }
  0x9f   :  { %1889 = vmatpush1.bf16.msra.mxu1 %v10355_v31  ;;  %1839 = vmatprep.subr.bf16.mxu0 %v10356_v32  ;;  %v270_v31 = vsel %vm12033_vm5, %v8944_v28, %v269_v15  ;;  %v8952_v32 = vcombine.low %v281_v57, %v12089_v22  ;;  %vm6597_vm2 = vmor %vm12118_vm14, %vm12111_vm12  ;;  %v10410_v58 = vld [vmem:[#allocation9 + $0x3ac] ss:$12 sps:$4 sm:$0xff]   ;;  %v10408_v4 = vld [vmem:[#allocation9 + $0x3a8] ss:$12 sps:$4 sm:$0xff]   ;;  %vm12596_vm14 = vsmask.f32 256 }
  0xa0   :  { %1890 = vmatprep.subr.bf16.mxu1 %v10358_v33  ;;  %271 = vst [vmem:[#allocation2 + $0x50] sm:$0x11] %v270_v31  ;;  %vm6599_vm6 = vmand %vm6489_vm15, %vm6598_vm4  ;;  %v10416_v7 = vld [vmem:[#allocation9 + $0x394] ss:$12 sps:$4 sm:$0xff]   ;;  %v10414_v12 = vld [vmem:[#allocation9 + $0x390] ss:$12 sps:$4 sm:$0xff]  }
  0xa1   :  { %v368_v42 = vshrl.u32 %v8952_v32, 16  ;;  %vm12138_vm0 = vmor %vm6599_vm6, %vm6597_vm2  ;;  %v10411_v9 = vld [vmem:[#allocation9 + $0x528] ss:$12 sps:$4 sm:$0xff]   ;;  %v10417_v14 = vld [vmem:[#allocation9 + $0x510] ss:$12 sps:$4 sm:$0xff]  }
  0xa2   :  { %1840 = vmatpush2.bf16.msra.mxu0 %v10360_v34  ;;  %v272_v34 = vld [vmem:[#allocation2 + $0x20] sm:$0x11]  ;;  %vm6602_vm4 = vmand %vm6493_vm3, %vm6601_vm10  ;;  %v10422_v13 = vld [vmem:[#allocation9 + $0x37c] ss:$12 sps:$4 sm:$0xff]   ;;  %vm365_vm3 = vsmask.f32 4368 }
  0xa3   :  { %1891 = vmatpush2.bf16.msra.mxu1 %v10361_v35  ;;  %1841 = vmatprep.subr.bf16.mxu0 %v10362_v36  ;;  %v306_v35 = vrot.slane %v12074_v10, 1  ;;  %v313_v36 = vrot.slane %v311_v24, 2  ;;  %v12136_v48 = vrot.slane %v368_v42, 7  ;;  %vm6603_vm15 = vmor %vm6602_vm4, %vm12138_vm0  ;;  %v10425_v15 = vld [vmem:[#allocation9 + $0x4fc] ss:$12 sps:$4 sm:$0xff]   ;;  %vm6502_vm0 = vcmask 1046534  }
  0xa4   :  { %1892 = vmatprep.subr.bf16.mxu1 %v10364_v37  ;;  %v10396_v37 = vld [vmem:[#allocation9 + $0xd8] ss:$12 sps:$4 sm:$0xff]   ;;  %vm6604_vm12 = vmand %vm12593_vm11, %vm12592_vm9  ;;  %v10440_v28 = vld [vmem:[#allocation9 + $0x334] ss:$12 sps:$4 sm:$0xff]   ;;  %vm6499_vm6 = vsmask.f32 5376 }
  0xa5   :  { %vm12152_vm13 = vmor %vm6604_vm12, %vm6603_vm15  ;;  %v10428_v18 = vld [vmem:[#allocation9 + $0x364] ss:$12 sps:$4 sm:$0xff]   ;;  %v10434_v24 = vld [vmem:[#allocation9 + $0x34c] ss:$12 sps:$4 sm:$0xff]   ;;  %vm6503_vm4 = vsmask.f32 6400 }
  0xa6   :  { %1842 = vmatpush2.bf16.msra.mxu0 %v10366_v38  ;;  %v10423_v19 = vld [vmem:[#allocation9 + $0x4f8] ss:$12 sps:$4 sm:$0xff]   ;;  %v10435_v31 = vld [vmem:[#allocation9 + $0x4c8] ss:$12 sps:$4 sm:$0xff]   ;;  %v10438_v33 = vld [vmem:[#allocation9 + $0x330] ss:$12 sps:$4 sm:$0xff]  }
  0xa7   :  { %1893 = vmatpush2.bf16.msra.mxu1 %v10367_v39  ;;  %1843 = vmatprep.subr.bf16.mxu0 %v10368_v40  ;;  %v8940_v39 = vcombine.low %v12086_v17, %v12104_v29  ;;  %v8945_v40 = vcombine.high %v12086_v17, %v12104_v29  ;;  %v430_v60 = vld [vmem:[#allocation2 + $0x50] sm:$0xff]  ;;  %v8957_v29 = vsel %vm8943_vm7, %v12047_v59, %v12089_v22  ;;  %v10441_v59 = vld [vmem:[#allocation9 + $0x4b0] ss:$12 sps:$4 sm:$0xff]   ;;  %vm12187_vm10 = vmor %vm12596_vm14, %vm365_vm3  ;;  %vm6606_vm15 = vsmask.f32 7958 }
  0xa8   :  { %1894 = vmatprep.subr.bf16.mxu1 %v10370_v41  ;;  %v10397_v41 = vld [vmem:[#allocation9 + $0x258] ss:$12 sps:$4 sm:$0xff]   ;;  %v10449_v10 = vld [vmem:[#allocation9 + $0x49c] ss:$12 sps:$4 sm:$0xff]   ;;  %vm6504_vm12 = vmand %vm6502_vm0, %vm6503_vm4  ;;  %vm6506_vm3 = vcmask 1047559  }
  0xa9   :  { %v10444_v22 = vld [vmem:[#allocation9 + $0x318] ss:$12 sps:$4 sm:$0xff]   ;;  %v10513_v23 = vld [vmem:[#allocation9 + $0x2f0] ss:$12 sps:$4 sm:$0xff]   ;;  %vm6507_vm14 = vsmask.f32 7424 }
  0xaa   :  { %1844 = vmatpush2.bf16.msra.mxu0 %v10372_v43  ;;  %v371_v43 = vshll.u32 %v8952_v32, 16  ;;  %v10443_v32 = vld [vmem:[#allocation9 + $0x4b4] ss:$12 sps:$4 sm:$0xff]  }
  0xab   :  { %1895 = vmatpush2.bf16.msra.mxu1 %v10373_v44  ;;  %1845 = vmatprep.subr.bf16.mxu0 %v10374_v46  ;;  %v12130_v44 = vor.u32 %v313_v36, %v310_v30  ;;  %v273_v46 = vsel %vm12033_vm5, %v8945_v40, %v272_v34  ;;  %v397_v34 = vshll.u32 %v8957_v29, 16  ;;  %v10446_v36 = vld [vmem:[#allocation9 + $0x31c] ss:$12 sps:$4 sm:$0xff]   ;;  %v10452_v40 = vld [vmem:[#allocation9 + $0x304] ss:$12 sps:$4 sm:$0xff]  }
  0xac   :  { %1896 = vmatprep.subr.bf16.mxu1 %v10376_v49  ;;  %274 = vst [vmem:[#allocation2 + $0x20] sm:$0x11] %v273_v46  ;;  %v10453_v46 = vld [vmem:[#allocation9 + $0x480] ss:$12 sps:$4 sm:$0xff]   ;;  %v10511_v29 = vld [vmem:[%s12547_s0 + $0x8] sm:$0xf8]  }
  0xad   :  { %v8958_v30 = vcombine.high %v306_v35, %v12130_v44  ;;  %v10461_v49 = vld [vmem:[#allocation9 + $0x5ec] ss:$12 sps:$4 sm:$0xff]  }
  0xae   :  { %1846 = vmatpush2.bf16.msra.mxu0 %v10378_v50  ;;  %v8953_v50 = vcombine.low %v306_v35, %v12130_v44  ;;  %v10455_v44 = vld [vmem:[#allocation9 + $0x484] ss:$12 sps:$4 sm:$0xff]  }
  0xaf   :  { %1897 = vmatpush2.bf16.msra.mxu1 %v10379_v51  ;;  %1847 = vmatprep.subr.bf16.mxu0 %v10380_v54  ;;  %v10402_v51 = vld [vmem:[#allocation9 + $0xc0] ss:$12 sps:$4 sm:$0xff]  }
  0xb0   :  { %1898 = vmatprep.subr.bf16.mxu1 %v10382_v55  ;;  %v10403_v54 = vld [vmem:[#allocation9 + $0x240] ss:$12 sps:$4 sm:$0xff]   ;;  %v373_v55 = vor.u32 %v371_v43, %v12136_v48  ;;  %v375_v56 = vshrl.u32 %v8953_v50, 16  ;;  %v378_v57 = vshll.u32 %v8953_v50, 16  ;;  %v10447_v43 = vld [vmem:[#allocation9 + $0x498] ss:$12 sps:$4 sm:$0xff]  }
  0xb1   :  { %v10459_v50 = vld [vmem:[#allocation9 + $0x5e8] ss:$12 sps:$4 sm:$0xff]  }
  0xb2   :  { %1848 = vmatpush2.bf16.msra.mxu0 %v10384_v63  ;;  %v12156_v62 = vrot.slane %v375_v56, 7  ;;  %v431_v63 = vsel %vm12095_vm8, %v373_v55, %v430_v60  ;;  %v10462_v56 = vld [vmem:[#allocation9 + $0x450] ss:$12 sps:$4 sm:$0xff]  }
  0xb3   :  { %1899 = vmatpush2.bf16.msra.mxu1 %v10385_v0  ;;  %1849 = vmatprep.subr.bf16.mxu0 %v10386_v3  ;;  %v10413_v0 = vld [vmem:[#allocation9 + $0x52c] ss:$12 sps:$4 sm:$0xff]   ;;  %432 = vst [vmem:[#allocation2 + $0x50] sm:$0xff] %v431_v63  ;;  %v12161_v1 = vcombine.low %v12027_v52, %v431_v63  ;;  %v12163_v2 = vcombine.high %v8939_v27, %v431_v63  ;;  %v433_v5 = vld [vmem:[#allocation2 + $0x20] sm:$0xff] }
  0xb4   :  { %1900 = vmatprep.subr.bf16.mxu1 %v10388_v11  ;;  %v380_v3 = vor.u32 %v378_v57, %v12156_v62  ;;  %v10419_v11 = vld [vmem:[#allocation9 + $0x514] ss:$12 sps:$4 sm:$0xff]   ;;  %v400_v38 = vrot.slane %v12156_v62, 4 }
  0xb5   :  { %1855 = vmatprep.mubr.bf16.mxu0 %v12163_v2  ;;  %v10432_v27 = vld [vmem:[#allocation9 + $0x348] ss:$12 sps:$4 sm:$0xff]  }
  0xb6   :  { %1850 = vmatpush2.bf16.msra.mxu0 %v10390_v20  ;;  %v434_v6 = vsel %vm12095_vm8, %v380_v3, %v433_v5  ;;  %v10431_v20 = vld [vmem:[#allocation9 + $0x4e4] ss:$12 sps:$4 sm:$0xff]   ;;  %v10467_v57 = vld [vmem:[#allocation9 + $0x5d4] ss:$12 sps:$4 sm:$0xff]  }
  0xb7   :  { %1901 = vmatpush2.bf16.msra.mxu1 %v10391_v21  ;;  %1851 = vmatprep.subr.bf16.mxu0 %v10392_v25  ;;  %435 = vst [vmem:[#allocation2 + $0x20] sm:$0xff] %v434_v6  ;;  %v12170_v8 = vcombine.low %v12086_v17, %v434_v6  ;;  %v12172_v52 = vcombine.high %v8940_v39, %v434_v6  ;;  %v10420_v17 = vld [vmem:[#allocation9 + $0x378] ss:$12 sps:$4 sm:$0xff]   ;;  %v10426_v21 = vld [vmem:[#allocation9 + $0x360] ss:$12 sps:$4 sm:$0xff]   ;;  %v402_v39 = vshll.u32 %v8958_v30, 16 }
  0xb8   :  { %1902 = vmatprep.subr.bf16.mxu1 %v10394_v26  ;;  %v10429_v25 = vld [vmem:[#allocation9 + $0x4e0] ss:$12 sps:$4 sm:$0xff]   ;;  %v10508_v63 = vld [vmem:[%s12547_s0] sm:$0x7c]  }
  0xb9   :  { %1906 = vmatprep.mubr.bf16.mxu1 %v12172_v52  ;;  %v10437_v26 = vld [vmem:[#allocation9 + $0x4cc] ss:$12 sps:$4 sm:$0xff]   ;;  %v404_v42 = vsel %vm12187_vm10, %v400_v38, %v402_v39  ;;  %v10465_v5 = vld [vmem:[#allocation9 + $0x5d0] ss:$12 sps:$4 sm:$0xff]   ;;  %v207_v6 = vshrl.u32 %v10508_v63, 16 }
  0xba   :  { %1852 = vmatpush2.bf16.msra.mxu0 %v10396_v37  ;;  %v395_v37 = vrot.slane %v12136_v48, 4  ;;  %443 = vst [vmem:[#allocation2 + $0x48] sm:$0x11] %v404_v42  ;;  %v10456_v48 = vld [vmem:[#allocation9 + $0x468] ss:$12 sps:$4 sm:$0xff]  }
  0xbb   :  { %1903 = vmatpush2.bf16.msra.mxu1 %v10397_v41  ;;  %1853 = vmatprep.subr.bf16.mxu0 %v10398_v45  ;;  %v10450_v45 = vld [vmem:[#allocation9 + $0x300] ss:$12 sps:$4 sm:$0xff]   ;;  %v10479_v30 = vld [vmem:[#allocation9 + $0x5a4] ss:$12 sps:$4 sm:$0xff]  }
  0xbc   :  { %1904 = vmatprep.subr.bf16.mxu1 %v10400_v47  ;;  %v399_v41 = vsel %vm12187_vm10, %v395_v37, %v397_v34  ;;  %v10458_v47 = vld [vmem:[#allocation9 + $0x46c] ss:$12 sps:$4 sm:$0xff]  }
  0xbd   :  { %442 = vst [vmem:[#allocation2 + $0x28] sm:$0x11] %v399_v41  ;;  %v10474_v34 = vld [vmem:[#allocation9 + $0x420] ss:$12 sps:$4 sm:$0xff]   ;;  %v339_v41 = vshll.u32 %v10511_v29, 16 }
  0xbe   :  { %1854 = vmatpush2.bf16.msra.mxu0 %v10402_v51  ;;  %v10464_v51 = vld [vmem:[#allocation9 + $0x454] ss:$12 sps:$4 sm:$0xff]  }
  0xbf   :  { %1905 = vmatpush2.bf16.msra.mxu1 %v10403_v54  ;;  %1925 = vmatprep.subr.bf16.mxu0 %v10410_v58  ;;  %v10477_v42 = vld [vmem:[#allocation9 + $0x5a0] ss:$12 sps:$4 sm:$0xff]  }
  0xc0   :  { %1976 = vmatprep.subr.bf16.mxu1 %v10413_v0  ;;  %v10470_v0 = vld [vmem:[#allocation9 + $0x43c] ss:$12 sps:$4 sm:$0xff]  }
  0xc1   :  { %1856 = vmatmul.mubr.bf16.vlgmr.msra.gmra.mxu0 %v12161_v1  ;;  %v455_v55 = vld [vmem:[#allocation2 + $0x48] sm:$0x11] }
  0xc2   :  { %1926 = vmatpush1.bf16.msra.mxu0 %v10408_v4  ;;  %1907 = vmatmul.mubr.bf16.vlgmr.msra.gmra.mxu1 %v12170_v8  ;;  %v12199_v62 = vcombine.high %v455_v55, %v455_v55  ;;  %v12204_v3 = vcombine.low %v455_v55, %v455_v55  ;;  %v10509_v4 = vld [vmem:[%s12547_s0 + $0x8] sm:$0x7c]  }
  0xc3   :  { %1927 = vmatprep.subr.bf16.mxu0 %v10416_v7  ;;  %1977 = vmatpush1.bf16.msra.mxu1 %v10411_v9  ;;  %v210_v7 = vshll.u32 %v10508_v63, 16  ;;  %v10473_v9 = vld [vmem:[#allocation9 + $0x5bc] ss:$12 sps:$4 sm:$0xff]  }
  0xc4   :  { %1978 = vmatprep.subr.bf16.mxu1 %v10419_v11  ;;  %v454_v54 = vld [vmem:[#allocation2 + $0x28] sm:$0x11]  ;;  %v322_v11 = vshrl.u32 %v10509_v4, 16  ;;  %1916 = vmatprep.mubr.bf16.mxu1 %v12199_v62 }
  0xc5   :  { %v12195_v58 = vcombine.high %v454_v54, %v454_v54  ;;  %v12197_v60 = vcombine.low %v454_v54, %v454_v54 }
  0xc6   :  { %1928 = vmatpush1.bf16.msra.mxu0 %v10414_v12  ;;  %v325_v12 = vshll.u32 %v10509_v4, 16 }
  0xc7   :  { %1929 = vmatprep.subr.bf16.mxu0 %v10422_v13  ;;  %1979 = vmatpush1.bf16.msra.mxu1 %v10417_v14  ;;  %v10510_v13 = vld [vmem:[%s12547_s0] sm:$0xf8]   ;;  %v10468_v14 = vld [vmem:[#allocation9 + $0x438] ss:$12 sps:$4 sm:$0xff]   ;;  %s11909_s0 = smov [#allocation26]  }
  0xc8   :  { %1980 = vmatprep.subr.bf16.mxu1 %v10425_v15  ;;  %1865 = vmatprep.mubr.bf16.mxu0 %v12195_v58  ;;  %v12215_v15 = vrot.slane %v10508_v63, 2  ;;  %v12227_v38 = vrot.slane %v10510_v13, 3  ;;  %s8921_s21 = sshll.u32 %s11909_s0, 4  ;;  %s8922_s21 = int_to_ptr.vmem [resolvable:$true] %s8921_s21 }
  0xc9   :  { %1866 = vmatmul.mubr.bf16.gmra.mxu0 %v12197_v60  ;;  %s11855_s22 = scalar_lea.vmem %s8922_s21, 32  ;;  %p11860_p9 = scmp.lt.s32.totalorder %s8922_s21, %s8922_s21 }
  0xca   :  { %1930 = vmatpush1.bf16.msra.mxu0 %v10420_v17  ;;  %v209_v17 = vrot.slane %v207_v6, 2  ;;  %1917 = vmatmul.mubr.bf16.gmra.mxu1 %v12204_v3  ;;  %v10491_v6 = vld [vmem:[#allocation9 + $0x3f4] ss:$12 sps:$4 sm:$0xff]   ;;  %p11856_p8 = scmp.ne.s32.totalorder %s8922_s21, %s11855_s22  ;;  %p11861_p10 = scmp.lt.s32.totalorder %s11855_s22, %s11855_s22 }
  0xcb   :  { %1931 = vmatprep.subr.bf16.mxu0 %v10428_v18  ;;  %1981 = vmatpush1.bf16.msra.mxu1 %v10423_v19  ;;  %v212_v18 = vrot.slane %v210_v7, 3  ;;  %v10476_v19 = vld [vmem:[#allocation9 + $0x424] ss:$12 sps:$4 sm:$0xff]  }
  0xcc   :  { %1982 = vmatprep.subr.bf16.mxu1 %v10431_v20  ;;  %v320_v20 = vrot.slane %v10509_v4, 2  ;;  %p11862_p11 = por %p11861_p10, %p11860_p9 }
  0xce   :  { %1932 = vmatpush1.bf16.msra.mxu0 %v10426_v21  ;;  %v324_v21 = vrot.slane %v322_v11, 2  ;;  %p11863_p12 = pnand %p11862_p11, %p11856_p8 }
  0xcf   :  { %1933 = vmatprep.subr.bf16.mxu0 %v10434_v24  ;;  %1983 = vmatpush1.bf16.msra.mxu1 %v10429_v25  ;;  %v327_v24 = vrot.slane %v325_v12, 3  ;;  %v221_v25 = vshrl.u32 %v10510_v13, 16  ;;  %v10489_v12 = vld [vmem:[#allocation9 + $0x3f0] ss:$12 sps:$4 sm:$0xff]  }
  0xd0   :  { %1984 = vmatprep.subr.bf16.mxu1 %v10437_v26  ;;  %v10471_v26 = vld [vmem:[#allocation9 + $0x5b8] ss:$12 sps:$4 sm:$0xff]  }
  0xd2   :  { %1934 = vmatpush1.bf16.msra.mxu0 %v10432_v27  ;;  %v12218_v27 = vor.u32 %v212_v18, %v209_v17 }
  0xd3   :  { %1935 = vmatprep.subr.bf16.mxu0 %v10440_v28  ;;  %1985 = vmatpush1.bf16.msra.mxu1 %v10435_v31  ;;  %v224_v28 = vshll.u32 %v10510_v13, 16  ;;  %v275_v31 = vld [vmem:[#allocation2 + $0x8] sm:$0x11]  ;;  %v10494_v13 = vld [vmem:[#allocation9 + $0x574] ss:$12 sps:$4 sm:$0xff]  }
  0xd4   :  { %1986 = vmatprep.subr.bf16.mxu1 %v10443_v32  ;;  %v328_v32 = vor.u32 %v327_v24, %v324_v21  ;;  %v8946_v37 = vcombine.high %v12215_v15, %v12218_v27 }
  0xd5   :  { %v226_v39 = vrot.slane %v224_v28, 4  ;;  %v10501_v28 = vld [vmem:[#allocation9 + $0x55c] ss:$12 sps:$4 sm:$0xff]  }
  0xd6   :  { %1936 = vmatpush1.bf16.msra.mxu0 %v10438_v33  ;;  %v223_v33 = vrot.slane %v221_v25, 3 }
  0xd7   :  { %1937 = vmatprep.subr.bf16.mxu0 %v10446_v36  ;;  %1987 = vmatpush1.bf16.msra.mxu1 %v10441_v59  ;;  %v8941_v36 = vcombine.low %v12215_v15, %v12218_v27  ;;  %v10482_v59 = vld [vmem:[#allocation9 + $0x40c] ss:$12 sps:$4 sm:$0xff]  }
  0xd8   :  { %1988 = vmatprep.subr.bf16.mxu1 %v10449_v10  ;;  %v8954_v10 = vcombine.low %v320_v20, %v328_v32  ;;  %v10496_v27 = vld [vmem:[#allocation9 + $0x3d8] ss:$12 sps:$4 sm:$0xff]  }
  0xda   :  { %1938 = vmatpush1.bf16.msra.mxu0 %v10444_v22  ;;  %v278_v22 = vld [vmem:[#allocation2 + $0x38] sm:$0x11] }
  0xdb   :  { %1939 = vmatprep.subr.bf16.mxu0 %v10452_v40  ;;  %1989 = vmatpush1.bf16.msra.mxu1 %v10447_v43  ;;  %v336_v40 = vshrl.u32 %v10511_v29, 16  ;;  %v276_v43 = vsel %vm12033_vm5, %v8946_v37, %v275_v31 }
  0xdc   :  { %1990 = vmatprep.subr.bf16.mxu1 %v10455_v44  ;;  %v12231_v44 = vor.u32 %v226_v39, %v223_v33  ;;  %277 = vst [vmem:[#allocation2 + $0x8] sm:$0x11] %v276_v43  ;;  %v10516_v43 = vld [vmem:[#allocation9 + $0x158] ss:$12 sps:$4 sm:$0xff]  }
  0xde   :  { %1940 = vmatpush1.bf16.msra.mxu0 %v10450_v45  ;;  %v334_v45 = vrot.slane %v10511_v29, 3  ;;  %v8942_v54 = vcombine.low %v12227_v38, %v12231_v44  ;;  %v8947_v55 = vcombine.high %v12227_v38, %v12231_v44 }
  0xdf   :  { %1941 = vmatprep.subr.bf16.mxu0 %v10458_v47  ;;  %1991 = vmatpush1.bf16.msra.mxu1 %v10453_v46  ;;  %v8959_v46 = vcombine.high %v320_v20, %v328_v32  ;;  %v382_v47 = vshrl.u32 %v8954_v10, 16  ;;  %v10498_v20 = vld [vmem:[#allocation9 + $0x3dc] ss:$12 sps:$4 sm:$0xff]   ;;  %v10499_v32 = vld [vmem:[#allocation9 + $0x558] ss:$12 sps:$4 sm:$0xff]  }
  0xe0   :  { %1992 = vmatprep.subr.bf16.mxu1 %v10461_v49  ;;  %v338_v49 = vrot.slane %v336_v40, 3  ;;  %v279_v4 = vsel %vm12033_vm5, %v8947_v55, %v278_v22  ;;  %v10505_v22 = vld [vmem:[#allocation9 + $0x540] ss:$12 sps:$4 sm:$0xff]   ;;  %v10512_v40 = vld [vmem:[#allocation9 + $0x170] ss:$12 sps:$4 sm:$0xff]   ;;  %vm5245_vm5 = vcmask 1042432  }
  0xe1   :  { %280 = vst [vmem:[#allocation2 + $0x38] sm:$0x11] %v279_v4  ;;  %v10525_v55 = vld [vmem:[#allocation9 + $0x80] ss:$12 sps:$4 sm:$0xff]   ;;  %v10530_v4 = vld [vmem:[#allocation9 + $0x68] ss:$12 sps:$4 sm:$0xff]  }
  0xe2   :  { %1942 = vmatpush2.bf16.msra.mxu0 %v10456_v48  ;;  %v385_v48 = vshll.u32 %v8954_v10, 16  ;;  %v10507_v10 = vld [vmem:[#allocation9 + $0x544] ss:$12 sps:$4 sm:$0xff]  }
  0xe3   :  { %1943 = vmatprep.subr.bf16.mxu0 %v10464_v51  ;;  %1993 = vmatpush2.bf16.msra.mxu1 %v10459_v50  ;;  %v341_v50 = vrot.slane %v339_v41, 4  ;;  %v10480_v51 = vld [vmem:[#allocation9 + $0x408] ss:$12 sps:$4 sm:$0xff]   ;;  %v436_v21 = vld [vmem:[#allocation2 + $0x8] sm:$0xff] }
  0xe4   :  { %1994 = vmatprep.subr.bf16.mxu1 %v10467_v57  ;;  %v384_v57 = vrot.slane %v382_v47, 7  ;;  %v10515_v47 = vld [vmem:[#allocation9 + $0x230] ss:$12 sps:$4 sm:$0xff]  }
  0xe5   :  { %v342_v63 = vor.u32 %v341_v50, %v338_v49  ;;  %v10517_v49 = vld [vmem:[#allocation9 + $0x2d8] ss:$12 sps:$4 sm:$0xff]   ;;  %v10522_v50 = vld [vmem:[#allocation9 + $0x140] ss:$12 sps:$4 sm:$0xff]  }
  0xe6   :  { %1944 = vmatpush2.bf16.msra.mxu0 %v10462_v56  ;;  %v10485_v56 = vld [vmem:[#allocation9 + $0x58c] ss:$12 sps:$4 sm:$0xff]   ;;  %v387_v7 = vor.u32 %v385_v48, %v384_v57 }
  0xe7   :  { %1945 = vmatprep.subr.bf16.mxu0 %v10470_v0  ;;  %1995 = vmatpush2.bf16.msra.mxu1 %v10465_v5  ;;  %v10483_v0 = vld [vmem:[#allocation9 + $0x588] ss:$12 sps:$4 sm:$0xff]   ;;  %v407_v5 = vshll.u32 %v8959_v46, 16  ;;  %v8960_v11 = vcombine.high %v334_v45, %v342_v63 }
  0xe8   :  { %1996 = vmatprep.subr.bf16.mxu1 %v10473_v9  ;;  %v8955_v9 = vcombine.low %v334_v45, %v342_v63  ;;  %v437_v24 = vsel %vm12095_vm8, %v387_v7, %v436_v21  ;;  %v439_v33 = vld [vmem:[#allocation2 + $0x38] sm:$0xff]  ;;  %v10533_v7 = vld [vmem:[#allocation9 + $0x290] ss:$12 sps:$4 sm:$0xff]  }
  0xe9   :  { %438 = vst [vmem:[#allocation2 + $0x8] sm:$0xff] %v437_v24  ;;  %v12243_v29 = vcombine.high %v8941_v36, %v437_v24  ;;  %v12254_v35 = vcombine.low %v12215_v15, %v437_v24  ;;  %v10518_v15 = vld [vmem:[#allocation9 + $0x98] ss:$12 sps:$4 sm:$0xff]   ;;  %v10526_v63 = vld [vmem:[#allocation9 + $0x200] ss:$12 sps:$4 sm:$0xff]  }
  0xea   :  { %1946 = vmatpush2.bf16.msra.mxu0 %v10468_v14  ;;  %v405_v14 = vrot.slane %v384_v57, 4  ;;  %v389_v17 = vshrl.u32 %v8955_v9, 16  ;;  %v392_v18 = vshll.u32 %v8955_v9, 16  ;;  %v10528_v57 = vld [vmem:[#allocation9 + $0x128] ss:$12 sps:$4 sm:$0xff]  }
  0xeb   :  { %1947 = vmatprep.subr.bf16.mxu0 %v10476_v19  ;;  %1997 = vmatpush2.bf16.msra.mxu1 %v10471_v26  ;;  %v10492_v19 = vld [vmem:[#allocation9 + $0x570] ss:$12 sps:$4 sm:$0xff]   ;;  %v412_v26 = vshll.u32 %v8960_v11, 16  ;;  %v10536_v11 = vld [vmem:[#allocation9 + $0xf8] ss:$12 sps:$4 sm:$0xff]  }
  0xec   :  { %1998 = vmatprep.subr.bf16.mxu1 %v10479_v30  ;;  %v409_v53 = vsel %vm12187_vm10, %v405_v14, %v407_v5  ;;  %v391_v25 = vrot.slane %v389_v17, 7  ;;  %1957 = vmatprep.mubr.bf16.mxu0 %v12243_v29  ;;  %v10532_v5 = vld [vmem:[#allocation9 + $0x110] ss:$12 sps:$4 sm:$0xff]   ;;  %v10540_v14 = vld [vmem:[#allocation9 + $0xe0] ss:$12 sps:$4 sm:$0xff]  }
  0xed   :  { %444 = vst [vmem:[#allocation2 + $0x10] sm:$0x11] %v409_v53  ;;  %v10534_v9 = vld [vmem:[#allocation9 + $0x50] ss:$12 sps:$4 sm:$0xff]   ;;  %v10539_v17 = vld [vmem:[#allocation9 + $0x1b8] ss:$12 sps:$4 sm:$0xff]  }
  0xee   :  { %1948 = vmatpush2.bf16.msra.mxu0 %v10474_v34  ;;  %v394_v30 = vor.u32 %v392_v18, %v391_v25  ;;  %v410_v31 = vrot.slane %v391_v25, 4  ;;  %v10504_v34 = vld [vmem:[#allocation9 + $0x3c4] ss:$12 sps:$4 sm:$0xff]   ;;  %v10541_v18 = vld [vmem:[#allocation9 + $0x260] ss:$12 sps:$4 sm:$0xff]  }
  0xef   :  { %1949 = vmatprep.subr.bf16.mxu0 %v10482_v59  ;;  %1999 = vmatpush2.bf16.msra.mxu1 %v10477_v42  ;;  %v10502_v59 = vld [vmem:[#allocation9 + $0x3c0] ss:$12 sps:$4 sm:$0xff]   ;;  %v10514_v42 = vld [vmem:[#allocation9 + $0xb0] ss:$12 sps:$4 sm:$0xff]   ;;  %v10545_v21 = vld [vmem:[#allocation9 + $0x248] ss:$12 sps:$4 sm:$0xff]  }
  0xf0   :  { %2000 = vmatprep.subr.bf16.mxu1 %v10485_v56  ;;  %v440_v37 = vsel %vm12095_vm8, %v394_v30, %v439_v33  ;;  %v414_v39 = vsel %vm12187_vm10, %v410_v31, %v412_v26  ;;  %v10546_v53 = vld [vmem:[#allocation9 + $0x8] ss:$12 sps:$4 sm:$0xff]   ;;  %v10548_v24 = vld [vmem:[#allocation9 + $0x470] ss:$12 sps:$4 sm:$0xff]   ;;  %v10553_v31 = vld [vmem:[#allocation9 + $0x5d8] ss:$12 sps:$4 sm:$0xff]  }
  0xf1   :  { %441 = vst [vmem:[#allocation2 + $0x38] sm:$0xff] %v440_v37  ;;  %v12250_v36 = vcombine.high %v8942_v54, %v440_v37  ;;  %445 = vst [vmem:[#allocation2 + $0x40] sm:$0x11] %v414_v39  ;;  %v12259_v45 = vcombine.low %v12227_v38, %v440_v37  ;;  %v10519_v38 = vld [vmem:[#allocation9 + $0x218] ss:$12 sps:$4 sm:$0xff]   ;;  %vm5246_vm8 = vcmask 1046532  }
  0xf2   :  { %1950 = vmatpush2.bf16.msra.mxu0 %v10480_v51  ;;  %v10523_v54 = vld [vmem:[#allocation9 + $0x2c0] ss:$12 sps:$4 sm:$0xff]   ;;  %v10547_v25 = vld [vmem:[#allocation9 + $0x188] ss:$12 sps:$4 sm:$0xff]   ;;  %v10549_v26 = vld [vmem:[#allocation9 + $0x5f0] ss:$12 sps:$4 sm:$0xff]  }
  0xf3   :  { %1951 = vmatprep.subr.bf16.mxu0 %v10491_v6  ;;  %2001 = vmatpush2.bf16.msra.mxu1 %v10483_v0  ;;  %v10529_v0 = vld [vmem:[#allocation9 + $0x2a8] ss:$12 sps:$4 sm:$0xff]   ;;  %v10551_v30 = vld [vmem:[#allocation9 + $0x530] ss:$12 sps:$4 sm:$0xff]   ;;  %v10556_v33 = vld [vmem:[#allocation9 + $0x440] ss:$12 sps:$4 sm:$0xff]  }
  0xf4   :  { %2002 = vmatprep.subr.bf16.mxu1 %v10494_v13  ;;  %2008 = vmatprep.mubr.bf16.mxu1 %v12250_v36  ;;  %v456_v41 = vld [vmem:[#allocation2 + $0x10] sm:$0x11]  ;;  %v10531_v6 = vld [vmem:[#allocation9 + $0x1e8] ss:$12 sps:$4 sm:$0xff]   ;;  %vm12404_vm2 = vmor %vm5245_vm5, %vm5246_vm8  ;;  %vm6609_vm8 = vsmask.f32 7962 }
  0xf5   :  { %v12256_v44 = vcombine.high %v456_v41, %v456_v41  ;;  %v12267_v51 = vcombine.low %v456_v41, %v456_v41  ;;  %v10537_v13 = vld [vmem:[#allocation9 + $0x278] ss:$12 sps:$4 sm:$0xff]   ;;  %v10557_v37 = vld [vmem:[#allocation9 + $0x5c0] ss:$12 sps:$4 sm:$0xff]   ;;  %v10567_v41 = vld [vmem:[#allocation9 + $0x4d0] ss:$12 sps:$4 sm:$0xff]  }
  0xf6   :  { %1952 = vmatpush2.bf16.msra.mxu0 %v10489_v12  ;;  %v10535_v12 = vld [vmem:[#allocation9 + $0x1d0] ss:$12 sps:$4 sm:$0xff]   ;;  %v10558_v39 = vld [vmem:[#allocation9 + $0x380] ss:$12 sps:$4 sm:$0xff]  }
  0xf7   :  { %1953 = vmatprep.subr.bf16.mxu0 %v10498_v20  ;;  %2003 = vmatpush2.bf16.msra.mxu1 %v10492_v19  ;;  %v10544_v19 = vld [vmem:[#allocation9 + $0xc8] ss:$12 sps:$4 sm:$0xff]   ;;  %v10543_v20 = vld [vmem:[#allocation9 + $0x1a0] ss:$12 sps:$4 sm:$0xff]  }
  0xf8   :  { %2004 = vmatprep.subr.bf16.mxu1 %v10501_v28  ;;  %v457_v46 = vld [vmem:[#allocation2 + $0x40] sm:$0x11]  ;;  %v10552_v28 = vld [vmem:[#allocation9 + $0x458] ss:$12 sps:$4 sm:$0xff]  }
  0xf9   :  { %v12261_v48 = vcombine.high %v457_v46, %v457_v46  ;;  %v12269_v56 = vcombine.low %v457_v46, %v457_v46  ;;  %v10574_v46 = vld [vmem:[#allocation9 + $0x320] ss:$12 sps:$4 sm:$0xff]  }
  0xfa   :  { %1954 = vmatpush2.bf16.msra.mxu0 %v10496_v27  ;;  %v10550_v27 = vld [vmem:[#allocation9 + $0x3b0] ss:$12 sps:$4 sm:$0xff]  }
  0xfb   :  { %1955 = vmatprep.subr.bf16.mxu0 %v10504_v34  ;;  %2005 = vmatpush2.bf16.msra.mxu1 %v10499_v32  ;;  %v10554_v32 = vld [vmem:[#allocation9 + $0x398] ss:$12 sps:$4 sm:$0xff]  }
  0xfc   :  { %2006 = vmatprep.subr.bf16.mxu1 %v10507_v10  ;;  %v10555_v34 = vld [vmem:[#allocation9 + $0x518] ss:$12 sps:$4 sm:$0xff]   ;;  %v10561_v10 = vld [vmem:[#allocation9 + $0x5a8] ss:$12 sps:$4 sm:$0xff]  }
  0xfe   :  { %1956 = vmatpush2.bf16.msra.mxu0 %v10502_v59  ;;  %v10559_v59 = vld [vmem:[#allocation9 + $0x500] ss:$12 sps:$4 sm:$0xff]  }
  0xff   :  { %9999 = vmatprep.subr.bf16.mxu0 %v10512_v40  ;;  %2007 = vmatpush2.bf16.msra.mxu1 %v10505_v22  ;;  %v10565_v22 = vld [vmem:[#allocation9 + $0x590] ss:$12 sps:$4 sm:$0xff]  }
 0x100   :  { %10027 = vmatprep.subr.bf16.mxu1 %v10513_v23  ;;  %v10566_v40 = vld [vmem:[#allocation9 + $0x350] ss:$12 sps:$4 sm:$0xff]   ;;  %v10568_v23 = vld [vmem:[#allocation9 + $0x3f8] ss:$12 sps:$4 sm:$0xff]  }
 0x101   :  { %1958 = vmatmul.mubr.bf16.vlgmr.msra.gmra.mxu0 %v12254_v35 }
 0x102   :  { %10000 = vmatpush3.bf16.msra.mxu0 %v10514_v42  ;;  %1967 = vmatprep.mubr.bf16.mxu0 %v12256_v44  ;;  %v10570_v42 = vld [vmem:[#allocation9 + $0x338] ss:$12 sps:$4 sm:$0xff]  }
 0x103   :  { %2009 = vmatmul.mubr.bf16.vlgmr.msra.gmra.mxu1 %v12259_v45  ;;  %10001 = vmatprep.subr.bf16.mxu0 %v10516_v43  ;;  %v10571_v43 = vld [vmem:[#allocation9 + $0x4b8] ss:$12 sps:$4 sm:$0xff]  }
 0x104   :  { %10028 = vmatpush3.bf16.msra.mxu1 %v10515_v47  ;;  %2018 = vmatprep.mubr.bf16.mxu1 %v12261_v48  ;;  %v10575_v47 = vld [vmem:[#allocation9 + $0x4a0] ss:$12 sps:$4 sm:$0xff]  }
 0x105   :  { %10029 = vmatprep.subr.bf16.mxu1 %v10517_v49  ;;  %v10577_v49 = vld [vmem:[#allocation9 + $0x548] ss:$12 sps:$4 sm:$0xff]  }
 0x106   :  { %10002 = vmatpush3.bf16.msra.mxu0 %v10518_v15  ;;  %v10578_v15 = vld [vmem:[#allocation9 + $0x308] ss:$12 sps:$4 sm:$0xff]  }
 0x107   :  { %10003 = vmatprep.subr.bf16.mxu0 %v10522_v50  ;;  %v10579_v50 = vld [vmem:[#allocation9 + $0x488] ss:$12 sps:$4 sm:$0xff]  }
 0x108   :  { %10030 = vmatpush3.bf16.msra.mxu1 %v10519_v38  ;;  %v10582_v38 = vld [vmem:[#allocation14 + $0xac] ss:$12 sps:$4 sm:$0xff]  }
 0x109   :  { %1968 = vmatmul.mubr.bf16.gmra.mxu0 %v12267_v51  ;;  %10031 = vmatprep.subr.bf16.mxu1 %v10523_v54  ;;  %v10580_v54 = vld [vmem:[#allocation14 + $0xa8] ss:$12 sps:$4 sm:$0xff]  }
 0x10a   :  { %10004 = vmatpush3.bf16.msra.mxu0 %v10525_v55  ;;  %2059 = vmatprep.mubr.bf16.mxu0 %v12163_v2  ;;  %v10538_v2 = vld [vmem:[#allocation9 + $0x38] ss:$12 sps:$4 sm:$0xff]  }
 0x10b   :  { %2019 = vmatmul.mubr.bf16.gmra.mxu1 %v12269_v56  ;;  %10005 = vmatprep.subr.bf16.mxu0 %v10528_v57  ;;  %v10585_v55 = vld [vmem:[#allocation14 + $0x94] ss:$12 sps:$4 sm:$0xff]   ;;  %v10583_v57 = vld [vmem:[#allocation14 + $0x90] ss:$12 sps:$4 sm:$0xff]  }
 0x10c   :  { %10032 = vmatpush3.bf16.msra.mxu1 %v10526_v63  ;;  %2107 = vmatprep.mubr.bf16.mxu1 %v12172_v52  ;;  %v10542_v52 = vld [vmem:[#allocation9 + $0x20] ss:$12 sps:$4 sm:$0xff]  }
 0x10d   :  { %10033 = vmatprep.subr.bf16.mxu1 %v10529_v0  ;;  %v10588_v63 = vld [vmem:[#allocation14 + $0x7c] ss:$12 sps:$4 sm:$0xff]   ;;  %v10586_v0 = vld [vmem:[#allocation14 + $0x78] ss:$12 sps:$4 sm:$0xff]  }
 0x10e   :  { %10006 = vmatpush3.bf16.msra.mxu0 %v10530_v4  ;;  %v10591_v4 = vld [vmem:[#allocation14 + $0x64] ss:$12 sps:$4 sm:$0xff]  }
 0x10f   :  { %10007 = vmatprep.subr.bf16.mxu0 %v10532_v5  ;;  %v10589_v5 = vld [vmem:[#allocation14 + $0x60] ss:$12 sps:$4 sm:$0xff]  }
 0x110   :  { %10034 = vmatpush3.bf16.msra.mxu1 %v10531_v6  ;;  %v10595_v6 = vld [vmem:[#allocation14 + $0x30] ss:$12 sps:$4 sm:$0xff]  }
 0x111   :  { %10035 = vmatprep.subr.bf16.mxu1 %v10533_v7  ;;  %v10600_v7 = vld [vmem:[#allocation14 + $0x18] ss:$12 sps:$4 sm:$0xff]  }
 0x112   :  { %10008 = vmatpush3.bf16.msra.mxu0 %v10534_v9  ;;  %v10607_v9 = vld [vmem:[#allocation14 + $0x4] ss:$12 sps:$4 sm:$0xff]  }
 0x113   :  { %10009 = vmatprep.subr.bf16.mxu0 %v10536_v11  ;;  %v10605_v11 = vld [vmem:[#allocation14] ss:$12 sps:$4 sm:$0xff]  }
 0x114   :  { %10036 = vmatpush3.bf16.msra.mxu1 %v10535_v12  ;;  %v10608_v12 = vld [vmem:[#allocation14 + $0x168] ss:$12 sps:$4 sm:$0xff]  }
 0x115   :  { %10037 = vmatprep.subr.bf16.mxu1 %v10537_v13  ;;  %v10611_v13 = vld [vmem:[#allocation14 + $0x150] ss:$12 sps:$4 sm:$0xff]  }
 0x116   :  { %10010 = vmatpush3.bf16.msra.mxu0 %v10538_v2  ;;  %v10616_v2 = vld [vmem:[#allocation14 + $0x13c] ss:$12 sps:$4 sm:$0xff]  }
 0x117   :  { %10011 = vmatprep.subr.bf16.mxu0 %v10540_v14  ;;  %v10614_v14 = vld [vmem:[#allocation14 + $0x138] ss:$12 sps:$4 sm:$0xff]  }
 0x118   :  { %10038 = vmatpush3.bf16.msra.mxu1 %v10539_v17  ;;  %v10619_v17 = vld [vmem:[#allocation14 + $0x124] ss:$12 sps:$4 sm:$0xff]  }
 0x119   :  { %10039 = vmatprep.subr.bf16.mxu1 %v10541_v18  ;;  %v10617_v18 = vld [vmem:[#allocation14 + $0x120] ss:$12 sps:$4 sm:$0xff]  }
 0x11a   :  { %10012 = vmatpush3.bf16.msra.mxu0 %v10542_v52  ;;  %v10622_v52 = vld [vmem:[#allocation14 + $0x10c] ss:$12 sps:$4 sm:$0xff]  }
 0x11b   :  { %10013 = vmatprep.subr.bf16.mxu0 %v10544_v19  ;;  %v10635_v19 = vld [vmem:[#allocation14 + $0x228] ss:$12 sps:$4 sm:$0xff]  }
 0x11c   :  { %10040 = vmatpush3.bf16.msra.mxu1 %v10543_v20  ;;  %v10637_v20 = vld [vmem:[#allocation14 + $0x22c] ss:$12 sps:$4 sm:$0xff]  }
 0x11d   :  { %10041 = vmatprep.subr.bf16.mxu1 %v10545_v21  ;;  %v10640_v21 = vld [vmem:[#allocation14 + $0x214] ss:$12 sps:$4 sm:$0xff]  }
 0x11e   :  { %10014 = vmatpush3.bf16.msra.mxu0 %v10546_v53  ;;  %v10620_v53 = vld [vmem:[#allocation14 + $0x108] ss:$12 sps:$4 sm:$0xff]  }
 0x11f   :  { %10055 = vmatprep.subr.bf16.mxu0 %v10548_v24  ;;  %v10625_v24 = vld [vmem:[#allocation14 + $0xf4] ss:$12 sps:$4 sm:$0xff]  }
 0x120   :  { %10042 = vmatpush3.bf16.msra.mxu1 %v10547_v25  ;;  %v10638_v25 = vld [vmem:[#allocation14 + $0x210] ss:$12 sps:$4 sm:$0xff]  }
 0x121   :  { %2060 = vmatmul.mubr.bf16.vlgmr.msra.gmra.mxu0 %v12161_v1  ;;  %10083 = vmatprep.subr.bf16.mxu1 %v10549_v26  ;;  %v10560_v1 = vld [vmem:[#allocation9 + $0x428] ss:$12 sps:$4 sm:$0xff]   ;;  %v10643_v26 = vld [vmem:[#allocation14 + $0x1fc] ss:$12 sps:$4 sm:$0xff]  }
 0x122   :  { %10056 = vmatpush3.bf16.msra.mxu0 %v10550_v27  ;;  %2067 = vmatprep.mubr.bf16.mxu0 %v12195_v58  ;;  %v10564_v58 = vld [vmem:[#allocation9 + $0x410] ss:$12 sps:$4 sm:$0xff]   ;;  %v10623_v27 = vld [vmem:[#allocation14 + $0xf0] ss:$12 sps:$4 sm:$0xff]  }
 0x123   :  { %2108 = vmatmul.mubr.bf16.vlgmr.msra.gmra.mxu1 %v12170_v8  ;;  %10057 = vmatprep.subr.bf16.mxu0 %v10552_v28  ;;  %v10562_v8 = vld [vmem:[#allocation9 + $0x368] ss:$12 sps:$4 sm:$0xff]   ;;  %v10628_v28 = vld [vmem:[#allocation14 + $0xdc] ss:$12 sps:$4 sm:$0xff]  }
 0x124   :  { %10084 = vmatpush3.bf16.msra.mxu1 %v10551_v30  ;;  %2115 = vmatprep.mubr.bf16.mxu1 %v12199_v62  ;;  %v10563_v62 = vld [vmem:[#allocation9 + $0x4e8] ss:$12 sps:$4 sm:$0xff]  }
 0x125   :  { %10085 = vmatprep.subr.bf16.mxu1 %v10553_v31  ;;  %v10641_v30 = vld [vmem:[#allocation14 + $0x1f8] ss:$12 sps:$4 sm:$0xff]  }
 0x126   :  { %10058 = vmatpush3.bf16.msra.mxu0 %v10554_v32  ;;  %v10649_v31 = vld [vmem:[#allocation14 + $0x1e4] ss:$12 sps:$4 sm:$0xff]  }
 0x127   :  { %10059 = vmatprep.subr.bf16.mxu0 %v10556_v33  ;;  %v10626_v32 = vld [vmem:[#allocation14 + $0xd8] ss:$12 sps:$4 sm:$0xff]  }
 0x128   :  { %10086 = vmatpush3.bf16.msra.mxu1 %v10555_v34  ;;  %v10631_v33 = vld [vmem:[#allocation14 + $0xc4] ss:$12 sps:$4 sm:$0xff]   ;;  %v10647_v34 = vld [vmem:[#allocation14 + $0x1e0] ss:$12 sps:$4 sm:$0xff]  }
 0x129   :  { %10087 = vmatprep.subr.bf16.mxu1 %v10557_v37  ;;  %2068 = vmatmul.mubr.bf16.gmra.mxu0 %v12197_v60  ;;  %v10569_v60 = vld [vmem:[#allocation9 + $0x578] ss:$12 sps:$4 sm:$0xff]   ;;  %v10655_v37 = vld [vmem:[#allocation14 + $0x1cc] ss:$12 sps:$4 sm:$0xff]  }
 0x12a   :  { %10060 = vmatpush3.bf16.msra.mxu0 %v10558_v39  ;;  %2155 = vmatprep.mubr.bf16.mxu0 %v12243_v29  ;;  %v10572_v29 = vld [vmem:[#allocation9 + $0x3e0] ss:$12 sps:$4 sm:$0xff]   ;;  %v10629_v39 = vld [vmem:[#allocation14 + $0xc0] ss:$12 sps:$4 sm:$0xff]  }
 0x12b   :  { %10061 = vmatprep.subr.bf16.mxu0 %v10560_v1  ;;  %2116 = vmatmul.mubr.bf16.gmra.mxu1 %v12204_v3  ;;  %v10573_v3 = vld [vmem:[#allocation9 + $0x560] ss:$12 sps:$4 sm:$0xff]   ;;  %v10646_v1 = vld [vmem:[#allocation14 + $0x3ac] ss:$12 sps:$4 sm:$0xff]  }
 0x12c   :  { %10088 = vmatpush3.bf16.msra.mxu1 %v10559_v59  ;;  %2203 = vmatprep.mubr.bf16.mxu1 %v12250_v36  ;;  %v10576_v36 = vld [vmem:[#allocation9 + $0x3c8] ss:$12 sps:$4 sm:$0xff]   ;;  %v10653_v59 = vld [vmem:[#allocation14 + $0x1c8] ss:$12 sps:$4 sm:$0xff]  }
 0x12d   :  { %10089 = vmatprep.subr.bf16.mxu1 %v10561_v10  ;;  %v10659_v10 = vld [vmem:[#allocation14 + $0x1b0] ss:$12 sps:$4 sm:$0xff]  }
 0x12e   :  { %10062 = vmatpush3.bf16.msra.mxu0 %v10562_v8  ;;  %v10661_v8 = vld [vmem:[#allocation14 + $0x1b4] ss:$12 sps:$4 sm:$0xff]  }
 0x12f   :  { %10063 = vmatprep.subr.bf16.mxu0 %v10564_v58  ;;  %v10669_v58 = vld [vmem:[#allocation14 + $0x19c] ss:$12 sps:$4 sm:$0xff]  }
 0x130   :  { %10090 = vmatpush3.bf16.msra.mxu1 %v10563_v62  ;;  %v10667_v62 = vld [vmem:[#allocation14 + $0x198] ss:$12 sps:$4 sm:$0xff]  }
 0x131   :  { %10091 = vmatprep.subr.bf16.mxu1 %v10565_v22  ;;  %v10676_v22 = vld [vmem:[#allocation14 + $0x184] ss:$12 sps:$4 sm:$0xff]  }
 0x132   :  { %10064 = vmatpush3.bf16.msra.mxu0 %v10566_v40  ;;  %v10674_v40 = vld [vmem:[#allocation14 + $0x180] ss:$12 sps:$4 sm:$0xff]  }
 0x133   :  { %10065 = vmatprep.subr.bf16.mxu0 %v10568_v23  ;;  %v10680_v23 = vld [vmem:[#allocation14 + $0x2e8] ss:$12 sps:$4 sm:$0xff]  }
 0x134   :  { %10092 = vmatpush3.bf16.msra.mxu1 %v10567_v41  ;;  %v10682_v41 = vld [vmem:[#allocation14 + $0x2ec] ss:$12 sps:$4 sm:$0xff]  }
 0x135   :  { %10093 = vmatprep.subr.bf16.mxu1 %v10569_v60  ;;  %v10688_v60 = vld [vmem:[#allocation14 + $0x2d4] ss:$12 sps:$4 sm:$0xff]  }
 0x136   :  { %10066 = vmatpush3.bf16.msra.mxu0 %v10570_v42  ;;  %v10686_v42 = vld [vmem:[#allocation14 + $0x2d0] ss:$12 sps:$4 sm:$0xff]  }
 0x137   :  { %10067 = vmatprep.subr.bf16.mxu0 %v10572_v29 }
 0x138   :  { %10094 = vmatpush3.bf16.msra.mxu1 %v10571_v43 }
 0x139   :  { %10095 = vmatprep.subr.bf16.mxu1 %v10573_v3  ;;  %v10694_v3 = vld [vmem:[#allocation14 + $0x2bc] ss:$12 sps:$4 sm:$0xff]  }
 0x13a   :  { %10068 = vmatpush3.bf16.msra.mxu0 %v10574_v46  ;;  %v10692_v46 = vld [vmem:[#allocation14 + $0x2b8] ss:$12 sps:$4 sm:$0xff]  }
 0x13b   :  { %10069 = vmatprep.subr.bf16.mxu0 %v10576_v36 }
 0x13c   :  { %10096 = vmatpush3.bf16.msra.mxu1 %v10575_v47 }
 0x13d   :  { %10097 = vmatprep.subr.bf16.mxu1 %v10577_v49  ;;  %v10700_v49 = vld [vmem:[#allocation14 + $0x2a4] ss:$12 sps:$4 sm:$0xff]  }
 0x13e   :  { %10070 = vmatpush3.bf16.msra.mxu0 %v10578_v15  ;;  %v10698_v15 = vld [vmem:[#allocation14 + $0x2a0] ss:$12 sps:$4 sm:$0xff]  }
 0x13f   :  { %4566 = vmatprep.subr.bf16.mxu0 %v10582_v38 }
 0x140   :  { %10098 = vmatpush3.bf16.msra.mxu1 %v10579_v50 }
 0x141   :  { %2156 = vmatmul.mubr.bf16.vlgmr.msra.gmra.mxu0 %v12254_v35  ;;  %v10594_v35 = vld [vmem:[#allocation14 + $0x4c] ss:$12 sps:$4 sm:$0xff]   ;;  %4609 = vmatprep.subr.bf16.mxu1 %v10637_v20 }
 0x142   :  { %2163 = vmatprep.mubr.bf16.mxu0 %v12256_v44  ;;  %4567 = vmatpush1.bf16.msra.mxu0 %v10580_v54  ;;  %v10592_v44 = vld [vmem:[#allocation14 + $0x48] ss:$12 sps:$4 sm:$0xff]   ;;  %v10706_v54 = vld [vmem:[#allocation14 + $0x28c] ss:$12 sps:$4 sm:$0xff]  }
 0x143   :  { %2204 = vmatmul.mubr.bf16.vlgmr.msra.gmra.mxu1 %v12259_v45  ;;  %4568 = vmatprep.subr.bf16.mxu0 %v10585_v55  ;;  %v10597_v45 = vld [vmem:[#allocation14 + $0x34] ss:$12 sps:$4 sm:$0xff]  }
 0x144   :  { %2211 = vmatprep.mubr.bf16.mxu1 %v12261_v48  ;;  %v10602_v48 = vld [vmem:[#allocation14 + $0x1c] ss:$12 sps:$4 sm:$0xff]   ;;  %4610 = vmatpush1.bf16.msra.mxu1 %v10635_v19 }
 0x145   :  { %4611 = vmatprep.subr.bf16.mxu1 %v10640_v21  ;;  %v10704_v55 = vld [vmem:[#allocation14 + $0x288] ss:$12 sps:$4 sm:$0xff]  }
 0x146   :  { %4569 = vmatpush1.bf16.msra.mxu0 %v10583_v57 }
 0x147   :  { %4570 = vmatprep.subr.bf16.mxu0 %v10588_v63 }
 0x148   :  { %4612 = vmatpush1.bf16.msra.mxu1 %v10638_v25 }
 0x149   :  { %2164 = vmatmul.mubr.bf16.gmra.mxu0 %v12267_v51  ;;  %v10610_v51 = vld [vmem:[#allocation14 + $0x16c] ss:$12 sps:$4 sm:$0xff]   ;;  %4613 = vmatprep.subr.bf16.mxu1 %v10643_v26 }
 0x14a   :  { %4571 = vmatpush1.bf16.msra.mxu0 %v10586_v0 }
 0x14b   :  { %2212 = vmatmul.mubr.bf16.gmra.mxu1 %v12269_v56  ;;  %4572 = vmatprep.subr.bf16.mxu0 %v10591_v4  ;;  %v10613_v56 = vld [vmem:[#allocation14 + $0x154] ss:$12 sps:$4 sm:$0xff]  }
 0x14c   :  { %4614 = vmatpush1.bf16.msra.mxu1 %v10641_v30  ;;  %v10712_v4 = vld [vmem:[#allocation14 + $0x274] ss:$12 sps:$4 sm:$0xff]  }
 0x14d   :  { %4615 = vmatprep.subr.bf16.mxu1 %v10649_v31 }
 0x14e   :  { %4573 = vmatpush1.bf16.msra.mxu0 %v10589_v5  ;;  %v10710_v5 = vld [vmem:[#allocation14 + $0x270] ss:$12 sps:$4 sm:$0xff]  }
 0x14f   :  { %4574 = vmatprep.subr.bf16.mxu0 %v10594_v35 }
 0x150   :  { %4616 = vmatpush1.bf16.msra.mxu1 %v10647_v34 }
 0x151   :  { %4617 = vmatprep.subr.bf16.mxu1 %v10655_v37 }
 0x152   :  { %4575 = vmatpush1.bf16.msra.mxu0 %v10592_v44 }
 0x153   :  { %4576 = vmatprep.subr.bf16.mxu0 %v10597_v45  ;;  %v10718_v45 = vld [vmem:[#allocation14 + $0x25c] ss:$12 sps:$4 sm:$0xff]  }
 0x154   :  { %4618 = vmatpush1.bf16.msra.mxu1 %v10653_v59 }
 0x155   :  { %4619 = vmatprep.subr.bf16.mxu1 %v10661_v8 }
 0x156   :  { %4577 = vmatpush1.bf16.msra.mxu0 %v10595_v6  ;;  %v10716_v6 = vld [vmem:[#allocation14 + $0x258] ss:$12 sps:$4 sm:$0xff]  }
 0x157   :  { %4578 = vmatprep.subr.bf16.mxu0 %v10602_v48 }
 0x158   :  { %4620 = vmatpush1.bf16.msra.mxu1 %v10659_v10 }
 0x159   :  { %4621 = vmatprep.subr.bf16.mxu1 %v10669_v58 }
 0x15a   :  { %4579 = vmatpush1.bf16.msra.mxu0 %v10600_v7 }
 0x15b   :  { %4580 = vmatprep.subr.bf16.mxu0 %v10607_v9  ;;  %v10724_v9 = vld [vmem:[#allocation14 + $0x244] ss:$12 sps:$4 sm:$0xff]  }
 0x15c   :  { %4622 = vmatpush1.bf16.msra.mxu1 %v10667_v62 }
 0x15d   :  { %4623 = vmatprep.subr.bf16.mxu1 %v10676_v22 }
 0x15e   :  { %4581 = vmatpush1.bf16.msra.mxu0 %v10605_v11  ;;  %v10722_v11 = vld [vmem:[#allocation14 + $0x240] ss:$12 sps:$4 sm:$0xff]  }
 0x15f   :  { %4582 = vmatprep.subr.bf16.mxu0 %v10610_v51 }
 0x160   :  { %4624 = vmatpush1.bf16.msra.mxu1 %v10674_v40 }
 0x161   :  { %4625 = vmatprep.subr.bf16.mxu1 %v10682_v41 }
 0x162   :  { %4583 = vmatpush2.bf16.msra.mxu0 %v10608_v12 }
 0x163   :  { %4584 = vmatprep.subr.bf16.mxu0 %v10613_v56  ;;  %v716_v56 = vlaneseq }
 0x164   :  { %4626 = vmatpush2.bf16.msra.mxu1 %v10680_v23 }
 0x165   :  { %4627 = vmatprep.subr.bf16.mxu1 %v10688_v60 }
 0x166   :  { %4585 = vmatpush2.bf16.msra.mxu0 %v10611_v13 }
 0x167   :  { %4586 = vmatprep.subr.bf16.mxu0 %v10616_v2  ;;  %v12289_v2 = vshrl.u32 %v716_v56, 7 }
 0x168   :  { %4628 = vmatpush2.bf16.msra.mxu1 %v10686_v42 }
 0x169   :  { %4629 = vmatprep.subr.bf16.mxu1 %v10694_v3 }
 0x16a   :  { %4587 = vmatpush2.bf16.msra.mxu0 %v10614_v14  ;;  %v10733_v14 = vld [vmem:[#allocation14 + $0x52c] ss:$12 sps:$4 sm:$0xff]  }
 0x16b   :  { %4588 = vmatprep.subr.bf16.mxu0 %v10619_v17  ;;  %v12292_v17 = vsub.s32 0, %v12289_v2 }
 0x16c   :  { %4630 = vmatpush2.bf16.msra.mxu1 %v10692_v46 }
 0x16d   :  { %4631 = vmatprep.subr.bf16.mxu1 %v10700_v49 }
 0x16e   :  { %4589 = vmatpush2.bf16.msra.mxu0 %v10617_v18  ;;  %v12294_v18 = vld [vmem:[#allocation12] sm:$0x7] }
 0x16f   :  { %4590 = vmatprep.subr.bf16.mxu0 %v10622_v52  ;;  %v12297_v52 = vsub.s32 1, %v12289_v2  ;;  %v719_v19 = vrot.slane %v12294_v18, %v12292_v17 }
 0x170   :  { %4632 = vmatpush2.bf16.msra.mxu1 %v10698_v15 }
 0x171   :  { %4633 = vmatprep.subr.bf16.mxu1 %v10706_v54  ;;  %v723_v20 = vrot.slane %v12294_v18, %v12297_v52 }
 0x172   :  { %4591 = vmatpush2.bf16.msra.mxu0 %v10620_v53 }
 0x173   :  { %4592 = vmatprep.subr.bf16.mxu0 %v10625_v24 }
 0x174   :  { %4634 = vmatpush2.bf16.msra.mxu1 %v10704_v55 }
 0x175   :  { %4635 = vmatprep.subr.bf16.mxu1 %v10712_v4 }
 0x176   :  { %4593 = vmatpush2.bf16.msra.mxu0 %v10623_v27 }
 0x177   :  { %4594 = vmatprep.subr.bf16.mxu0 %v10628_v28 }
 0x178   :  { %4636 = vmatpush2.bf16.msra.mxu1 %v10710_v5 }
 0x179   :  { %4637 = vmatprep.subr.bf16.mxu1 %v10718_v45 }
 0x17a   :  { %4595 = vmatpush2.bf16.msra.mxu0 %v10626_v32 }
 0x17b   :  { %4596 = vmatprep.subr.bf16.mxu0 %v10631_v33 }
 0x17c   :  { %4638 = vmatpush2.bf16.msra.mxu1 %v10716_v6 }
 0x17d   :  { %4639 = vmatprep.subr.bf16.mxu1 %v10724_v9 }
 0x17e   :  { %4597 = vmatpush2.bf16.msra.mxu0 %v10629_v39 }
 0x17f   :  { %4652 = vmatprep.subr.bf16.mxu0 %v10646_v1 }
 0x180   :  { %4640 = vmatpush2.bf16.msra.mxu1 %v10722_v11 }
 0x181   :  { %v1857_v29 = vpop.f32.mrf.mxu0  ;;  %4695 = vmatprep.subr.bf16.mxu1 %v10733_v14 }
 0x182   :  { %v1908_v43 = vpop.f32.mrf.mxu1  ;;  %v1858_v21 = vadd.f32 %v1857_v29, %v719_v19 }
 0x183   :  { %v1859_v36 = vpop.f32.mrf.mxu0 }
 0x184   :  { %v1910_v47 = vpop.f32.mrf.mxu1  ;;  %v1860_v53 = vadd.f32 %v1859_v36, %v723_v20  ;;  %v1909_v24 = vadd.f32 %v1908_v43, %v1858_v21 }
 0x185   :  { %v1861_v50 = vpop.f32.mrf.mxu0 }
 0x186   :  { %v1912_v38 = vpop.f32.mrf.mxu1  ;;  %v1862_v25 = vadd.f32 %v1861_v50, %v719_v19  ;;  %v1911_v28 = vadd.f32 %v1910_v47, %v1860_v53 }
 0x187   :  { %v1863_v57 = vpop.f32.mrf.mxu0 }
 0x188   :  { %v1914_v63 = vpop.f32.mrf.mxu1  ;;  %v1864_v26 = vadd.f32 %v1863_v57, %v723_v20  ;;  %v1913_v33 = vadd.f32 %v1912_v38, %v1862_v25 }
 0x189   :  { %v1867_v0 = vpop.f32.mrf.mxu0 }
 0x18a   :  { %v1918_v44 = vpop.f32.mrf.mxu1  ;;  %v1868_v34 = vadd.f32 %v1867_v0, %v719_v19  ;;  %v1915_v1 = vadd.f32 %v1914_v63, %v1864_v26 }
 0x18b   :  { %v1869_v35 = vpop.f32.mrf.mxu0 }
 0x18c   :  { %v1920_v7 = vpop.f32.mrf.mxu1  ;;  %v1870_v8 = vadd.f32 %v1869_v35, %v723_v20  ;;  %v1919_v23 = vadd.f32 %v1918_v44, %v1868_v34 }
 0x18d   :  { %v1871_v48 = vpop.f32.mrf.mxu0 }
 0x18e   :  { %v1922_v12 = vpop.f32.mrf.mxu1  ;;  %v1921_v46 = vadd.f32 %v1920_v7, %v1870_v8  ;;  %v10652_v8 = vld [vmem:[#allocation14 + $0x394] ss:$12 sps:$4 sm:$0xff]  }
 0x18f   :  { %v1872_v51 = vpop.f32.mrf.mxu0 }
 0x190   :  { %v1923_v13 = vpop.f32.mrf.mxu1 }
 0x1c1   :  { %v1959_v27 = vpop.f32.mrf.mxu0 }
 0x1c2   :  { %v1960_v30 = vadd.f32 %v1959_v27, %v1909_v24 }
 0x1c3   :  { %v2010_v31 = vpop.f32.mrf.mxu1  ;;  %v1961_v32 = vpop.f32.mrf.mxu0 }
 0x1c4   :  { %v2011_v37 = vadd.f32 %v2010_v31, %v1960_v30  ;;  %v1962_v39 = vadd.f32 %v1961_v32, %v1911_v28 }
 0x1c5   :  { %v2012_v59 = vpop.f32.mrf.mxu1  ;;  %v1963_v10 = vpop.f32.mrf.mxu0 }
 0x1c6   :  { %v12303_v58 = vmax.f32 %v2011_v37, 0.0  ;;  %v2013_v62 = vadd.f32 %v2012_v59, %v1962_v39  ;;  %v1964_v22 = vadd.f32 %v1963_v10, %v1913_v33  ;;  %v10644_v39 = vld [vmem:[#allocation14 + $0x3a8] ss:$12 sps:$4 sm:$0xff]  }
 0x1c7   :  { %v2014_v40 = vpop.f32.mrf.mxu1  ;;  %v1965_v41 = vpop.f32.mrf.mxu0 }
 0x1c8   :  { %v12305_v60 = vmax.f32 %v2013_v62, 0.0  ;;  %v1966_v42 = vadd.f32 %v1965_v41, %v1915_v1  ;;  %v2015_v29 = vadd.f32 %v2014_v40, %v1964_v22 }
 0x1c9   :  { %v2016_v43 = vpop.f32.mrf.mxu1  ;;  %v1969_v3 = vpop.f32.mrf.mxu0 }
 0x1ca   :  { %v9988_v36 = vpack.c.bf16 %v12305_v60, %v12303_v58  ;;  %v2017_v47 = vadd.f32 %v2016_v43, %v1966_v42  ;;  %v1970_v49 = vadd.f32 %v1969_v3, %v1919_v23  ;;  %v2222_v55 = vmax.f32 %v2015_v29, 0.0  ;;  %v10650_v23 = vld [vmem:[#allocation14 + $0x390] ss:$12 sps:$4 sm:$0xff]  }
 0x1cb   :  { %v1971_v15 = vpop.f32.mrf.mxu0  ;;  %v2020_v50 = vpop.f32.mrf.mxu1  ;;  %v10658_v42 = vld [vmem:[#allocation14 + $0x37c] ss:$12 sps:$4 sm:$0xff]  }
 0x1cc   :  { %2261 = vst [vmem:[#allocation3] sm:$0xff] %v9988_v36  ;;  %v2223_v38 = vmax.f32 %v2017_v47, 0.0  ;;  %v1972_v54 = vadd.f32 %v1971_v15, %v1921_v46  ;;  %v2021_v57 = vadd.f32 %v2020_v50, %v1970_v49  ;;  %v10656_v15 = vld [vmem:[#allocation14 + $0x378] ss:$12 sps:$4 sm:$0xff]  }
 0x1cd   :  { %v2022_v63 = vpop.f32.mrf.mxu1  ;;  %v1973_v0 = vpop.f32.mrf.mxu0  ;;  %v10664_v50 = vld [vmem:[#allocation14 + $0x364] ss:$12 sps:$4 sm:$0xff]  }
 0x1ce   :  { %v9990_v4 = vpack.c.bf16 %v2223_v38, %v2222_v55  ;;  %v2023_v5 = vadd.f32 %v2022_v63, %v1972_v54  ;;  %v2225_v48 = vmax.f32 %v2021_v57, 0.0  ;;  %v10662_v0 = vld [vmem:[#allocation14 + $0x360] ss:$12 sps:$4 sm:$0xff]  }
 0x1cf   :  { %v1974_v35 = vpop.f32.mrf.mxu0  ;;  %v2024_v44 = vpop.f32.mrf.mxu1 }
 0x1d0   :  { %2263 = vst [vmem:[#allocation3 + $0xc] sm:$0xff] %v9990_v4  ;;  %v2480_v45 = vshrl.u32 %v9990_v4, 16  ;;  %v2483_v6 = vshll.u32 %v9990_v4, 16  ;;  %v2226_v7 = vmax.f32 %v2023_v5, 0.0  ;;  %v10672_v35 = vld [vmem:[#allocation14 + $0x34c] ss:$12 sps:$4 sm:$0xff]  }
 0x1d1   :  { %v2025_v9 = vpop.f32.mrf.mxu1 }
 0x1d2   :  { %v2482_v12 = vrot.slane %v2480_v45, 5  ;;  %v2485_v56 = vrot.slane %v2483_v6, 6  ;;  %v9992_v13 = vpack.c.bf16 %v2226_v7, %v2225_v48  ;;  %v10670_v45 = vld [vmem:[#allocation14 + $0x348] ss:$12 sps:$4 sm:$0xff]   ;;  %v10677_v48 = vld [vmem:[#allocation14 + $0x330] ss:$12 sps:$4 sm:$0xff]  }
 0x1d3   :  { %v2267_v11 = vld [vmem:[#allocation3] sm:$0x77]  ;;  %v10679_v6 = vld [vmem:[#allocation14 + $0x334] ss:$12 sps:$4 sm:$0xff]   ;;  %v10685_v7 = vld [vmem:[#allocation14 + $0x31c] ss:$12 sps:$4 sm:$0xff]  }
 0x1d4   :  { %v12309_v51 = vld [vmem:[#allocation3] sm:$0xee]  ;;  %2373 = vst [vmem:[#allocation4 + $0x48] sm:$0x77] %v2267_v11  ;;  %2265 = vst [vmem:[#allocation3 + $0x18] sm:$0x11] %v9992_v13  ;;  %v2486_v20 = vor.u32 %v2485_v56, %v2482_v12 }
 0x1d5   :  { %v9178_v14 = vcombine.low %v12309_v51, %v12309_v51  ;;  %v9179_v19 = vcombine.high %v12309_v51, %v12309_v51  ;;  %v12324_v9 = vsub.s32 2, %v12289_v2  ;;  %v10683_v11 = vld [vmem:[#allocation14 + $0x318] ss:$12 sps:$4 sm:$0xff]  }
 0x1d6   :  { %v2527_v24 = vrot.slane %v2486_v20, 4  ;;  %2545 = vst [vmem:[#allocation4 + $0x48] sm:$0x88] %v2486_v20  ;;  %v10691_v12 = vld [vmem:[#allocation14 + $0x304] ss:$12 sps:$4 sm:$0xff]  }
 0x1d7   :  { %v2317_v21 = vrot.slane %v9178_v14, 1  ;;  %v2318_v53 = vrot.slane %v9179_v19, 1  ;;  %v12317_v27 = vld [vmem:[#allocation3 + $0xc] sm:$0xee]  ;;  %v727_v56 = vrot.slane %v12294_v18, %v12324_v9  ;;  %v10689_v14 = vld [vmem:[#allocation14 + $0x300] ss:$12 sps:$4 sm:$0xff]   ;;  %v12330_v18 = vpack.c.bf16 %v12303_v58, %v12303_v58 }
 0x1d8   :  { %2551 = vst [vmem:[#allocation4 + $0x18] sm:$0x33] %v2527_v24  ;;  %v10697_v20 = vld [vmem:[#allocation14 + $0x46c] ss:$12 sps:$4 sm:$0xff]   ;;  %v12334_v58 = vpack.c.bf16 %v12305_v60, %v12305_v60  ;;  %v12345_v60 = vcombine.high %v12317_v27, %v12317_v27 }
 0x1d9   :  { %v9186_v25 = vcombine.low %v2317_v21, %v2318_v53 }
 0x1db   :  { %2376 = vst [vmem:[#allocation4 + $0x30] sm:$0x77] %v9186_v25  ;;  %v12315_v26 = vld [vmem:[#allocation3 + $0x18] sm:$0x11] }
 0x1dc   :  { %v9192_v28 = vcombine.low %v12317_v27, %v12315_v26  ;;  %v9193_v30 = vcombine.high %v12317_v27, %v12315_v26  ;;  %v10695_v25 = vld [vmem:[#allocation14 + $0x468] ss:$12 sps:$4 sm:$0xff]  }
 0x1de   :  { %v2429_v31 = vrot.slane %v9192_v28, 1  ;;  %v2430_v32 = vrot.slane %v9193_v30, 1 }
 0x1df   :  { %v10632_v34 = vld [vmem:[#allocation4 + $0x48] ss:$-48 sps:$4 sm:$0x3f]   ;;  %v10634_v37 = vld [vmem:[#allocation4 + $0x4c] ss:$-48 sps:$4 sm:$0x3f]  }
 0x1e0   :  { %v9200_v1 = vcombine.low %v2429_v31, %v2430_v32  ;;  %4598 = vmatprep.mubr.bf16.mxu0 %v10634_v37  ;;  %v10703_v32 = vld [vmem:[#allocation14 + $0x454] ss:$12 sps:$4 sm:$0xff]  }
 0x1e1   :  { %v10015_v33 = vpop.f32.mrf.mxu0  ;;  %4599 = vmatmul.mubr.bf16.vlgmr.msra.gmra.mxu0 %v10632_v34 }
 0x1e2   :  { %v2504_v62 = vshrl.u32 %v9200_v1, 16  ;;  %v2507_v22 = vshll.u32 %v9200_v1, 16  ;;  %4653 = vmatpush1.bf16.msra.mxu0 %v10644_v39 }
 0x1e3   :  { %v10043_v59 = vpop.f32.mrf.mxu1  ;;  %v10016_v10 = vpop.f32.mrf.mxu0  ;;  %4654 = vmatprep.subr.bf16.mxu0 %v10652_v8  ;;  %v10701_v8 = vld [vmem:[#allocation14 + $0x450] ss:$12 sps:$4 sm:$0xff]  }
 0x1e4   :  { %v2506_v29 = vrot.slane %v2504_v62, 5  ;;  %v2509_v43 = vrot.slane %v2507_v22, 6  ;;  %v10017_v13 = vadd.f32 %v10016_v10, %v10015_v33  ;;  %v10709_v22 = vld [vmem:[#allocation14 + $0x43c] ss:$12 sps:$4 sm:$0xff]  }
 0x1e5   :  { %v10044_v40 = vpop.f32.mrf.mxu1  ;;  %v10018_v41 = vpop.f32.mrf.mxu0 }
 0x1e6   :  { %v2510_v36 = vor.u32 %v2509_v43, %v2506_v29  ;;  %4655 = vmatpush1.bf16.msra.mxu0 %v10650_v23  ;;  %v2062_v21 = vadd.f32 %v10017_v13, %v727_v56  ;;  %v10045_v53 = vadd.f32 %v10044_v40, %v10043_v59  ;;  %v2273_v40 = vld [vmem:[#allocation3 + $0xc] sm:$0x11] }
 0x1e7   :  { %v10046_v3 = vpop.f32.mrf.mxu1  ;;  %v10019_v46 = vpop.f32.mrf.mxu0  ;;  %4656 = vmatprep.subr.bf16.mxu0 %v10658_v42 }
 0x1e8   :  { %v2530_v38 = vrot.slane %v2510_v36, 4  ;;  %2548 = vst [vmem:[#allocation4 + $0x30] sm:$0x88] %v2510_v36  ;;  %v10020_v19 = vadd.f32 %v10019_v46, %v10018_v41  ;;  %v2110_v34 = vadd.f32 %v10045_v53, %v2062_v21 }
 0x1e9   :  { %v10047_v47 = vpop.f32.mrf.mxu1  ;;  %v10021_v49 = vpop.f32.mrf.mxu0 }
 0x1ea   :  { %2554 = vst [vmem:[#allocation4 + $0x28] sm:$0x33] %v2530_v38  ;;  %4657 = vmatpush1.bf16.msra.mxu0 %v10656_v15  ;;  %v2065_v28 = vadd.f32 %v10020_v19, %v727_v56  ;;  %v10048_v33 = vadd.f32 %v10047_v47, %v10046_v3  ;;  %v2291_v3 = vshll.u32 %v12330_v18, 16  ;;  %v9181_v15 = vcombine.low %v12309_v51, %v2273_v40  ;;  %v10721_v19 = vld [vmem:[#allocation14 + $0x40c] ss:$12 sps:$4 sm:$0xff]  }
 0x1eb   :  { %v10022_v54 = vpop.f32.mrf.mxu0  ;;  %v10049_v55 = vpop.f32.mrf.mxu1  ;;  %4658 = vmatprep.subr.bf16.mxu0 %v10664_v50 }
 0x1ec   :  { %v10023_v37 = vadd.f32 %v10022_v54, %v10021_v49  ;;  %v2113_v41 = vadd.f32 %v10048_v33, %v2065_v28  ;;  %v2332_v21 = vshll.u32 %v9181_v15, 16 }
 0x1ed   :  { %v10024_v57 = vpop.f32.mrf.mxu0  ;;  %v10050_v63 = vpop.f32.mrf.mxu1 }
 0x1ee   :  { %4659 = vmatpush1.bf16.msra.mxu0 %v10662_v0  ;;  %v2070_v29 = vadd.f32 %v10023_v37, %v727_v56  ;;  %v10051_v43 = vadd.f32 %v10050_v63, %v10049_v55  ;;  %v10707_v57 = vld [vmem:[#allocation14 + $0x438] ss:$12 sps:$4 sm:$0xff]   ;;  %v9182_v0 = vcombine.high %v12309_v51, %v2273_v40  ;;  %v12341_v55 = vcombine.low %v12317_v27, %v12317_v27 }
 0x1ef   :  { %v10025_v4 = vpop.f32.mrf.mxu0  ;;  %v10052_v5 = vpop.f32.mrf.mxu1  ;;  %4660 = vmatprep.subr.bf16.mxu0 %v10672_v35  ;;  %v2329_v56 = vshrl.u32 %v9181_v15, 16 }
 0x1f0   :  { %v10715_v5 = vld [vmem:[#allocation14 + $0x424] ss:$12 sps:$4 sm:$0xff]   ;;  %v2118_v35 = vadd.f32 %v10051_v43, %v2070_v29  ;;  %v2337_v53 = vshrl.u32 %v9182_v0, 16 }
 0x1f1   :  { %v10053_v44 = vpop.f32.mrf.mxu1 }
 0x1f2   :  { %4661 = vmatpush1.bf16.msra.mxu0 %v10670_v45 }
 0x1f3   :  { %4662 = vmatprep.subr.bf16.mxu0 %v10679_v6 }
 0x1f6   :  { %4663 = vmatpush1.bf16.msra.mxu0 %v10677_v48  ;;  %v2293_v48 = vrot.slane %v2291_v3, 1 }
 0x1f7   :  { %4664 = vmatprep.subr.bf16.mxu0 %v10685_v7  ;;  %v2298_v7 = vshll.u32 %v12334_v58, 16 }
 0x1f9   :  { %v2300_v37 = vrot.slane %v2298_v7, 1 }
 0x1fa   :  { %4665 = vmatpush1.bf16.msra.mxu0 %v10683_v11  ;;  %v10713_v11 = vld [vmem:[#allocation14 + $0x420] ss:$12 sps:$4 sm:$0xff]  }
 0x1fb   :  { %4666 = vmatprep.subr.bf16.mxu0 %v10691_v12 }
 0x1fe   :  { %4667 = vmatpush1.bf16.msra.mxu0 %v10689_v14 }
 0x1ff   :  { %4668 = vmatprep.subr.bf16.mxu0 %v10697_v20  ;;  %v2289_v20 = vshrl.u32 %v12330_v18, 16 }
 0x201   :  { %v10071_v24 = vpop.f32.mrf.mxu0 }
 0x202   :  { %4669 = vmatpush2.bf16.msra.mxu0 %v10695_v25 }
 0x203   :  { %v10099_v30 = vpop.f32.mrf.mxu1  ;;  %v10072_v31 = vpop.f32.mrf.mxu0  ;;  %4670 = vmatprep.subr.bf16.mxu0 %v10703_v32  ;;  %v2403_v32 = vshll.u32 %v12341_v55, 16 }
 0x204   :  { %v10073_v39 = vadd.f32 %v10072_v31, %v10071_v24  ;;  %v2340_v24 = vshll.u32 %v9182_v0, 16 }
 0x205   :  { %v10100_v1 = vpop.f32.mrf.mxu1  ;;  %v10074_v10 = vpop.f32.mrf.mxu0  ;;  %v2405_v29 = vrot.slane %v2403_v32, 1 }
 0x206   :  { %v2158_v59 = vadd.f32 %v10073_v39, %v2110_v34  ;;  %v10101_v62 = vadd.f32 %v10100_v1, %v10099_v30  ;;  %4671 = vmatpush2.bf16.msra.mxu0 %v10701_v8  ;;  %v2410_v30 = vshll.u32 %v12345_v60, 16  ;;  %v10719_v39 = vld [vmem:[#allocation14 + $0x408] ss:$12 sps:$4 sm:$0xff]   ;;  %v2331_v1 = vrot.slane %v2329_v56, 1 }
 0x207   :  { %v10102_v23 = vpop.f32.mrf.mxu1  ;;  %v10075_v42 = vpop.f32.mrf.mxu0  ;;  %4672 = vmatprep.subr.bf16.mxu0 %v10709_v22  ;;  %v2294_v8 = vor.u32 %v2293_v48, %v2289_v20  ;;  %v10739_v20 = vld [vmem:[#allocation14 + $0x3c4] ss:$12 sps:$4 sm:$0xff]  }
 0x208   :  { %v2206_v46 = vadd.f32 %v10101_v62, %v2158_v59  ;;  %v10076_v36 = vadd.f32 %v10075_v42, %v10074_v10  ;;  %v2385_v10 = vld [vmem:[#allocation3 + $0xc] sm:$0xcc]  ;;  %v2334_v59 = vrot.slane %v2332_v21, 2  ;;  %v12351_v62 = vrot.slane %v2337_v53, 1 }
 0x209   :  { %v10103_v47 = vpop.f32.mrf.mxu1  ;;  %v10077_v49 = vpop.f32.mrf.mxu0  ;;  %v9195_v22 = vcombine.low %v2385_v10, %v12315_v26  ;;  %v12355_v40 = vcombine.high %v2385_v10, %v12315_v26  ;;  %v2412_v42 = vrot.slane %v2410_v30, 1  ;;  %v10730_v26 = vld [vmem:[#allocation14 + $0x3dc] ss:$12 sps:$4 sm:$0xff]   ;;  %v10737_v30 = vld [vmem:[#allocation14 + $0x3c0] ss:$12 sps:$4 sm:$0xff]  }
 0x20a   :  { %v2221_v50 = vmax.f32 %v2206_v46, 0.0  ;;  %v2161_v38 = vadd.f32 %v10076_v36, %v2113_v41  ;;  %v10104_v54 = vadd.f32 %v10103_v47, %v10102_v23  ;;  %4673 = vmatpush2.bf16.msra.mxu0 %v10707_v57  ;;  %v10727_v41 = vld [vmem:[#allocation14 + $0x3f4] ss:$12 sps:$4 sm:$0xff]   ;;  %v12357_v23 = vrot.slane %v2340_v24, 2  ;;  %v10725_v46 = vld [vmem:[#allocation14 + $0x3f0] ss:$12 sps:$4 sm:$0xff]  }
 0x20b   :  { %v10078_v63 = vpop.f32.mrf.mxu0  ;;  %v10105_v4 = vpop.f32.mrf.mxu1  ;;  %4674 = vmatprep.subr.bf16.mxu0 %v10715_v5  ;;  %v2296_v47 = vshrl.u32 %v12334_v58, 16  ;;  %v2441_v57 = vshrl.u32 %v9195_v22, 16  ;;  %v2444_v0 = vshll.u32 %v9195_v22, 16  ;;  %v2335_v7 = vor.u32 %v2334_v59, %v2331_v1 }
 0x20c   :  { %v9989_v44 = vpack.c.bf16 %v2221_v50, %v2221_v50  ;;  %v2209_v45 = vadd.f32 %v10104_v54, %v2161_v38  ;;  %v10079_v6 = vadd.f32 %v10078_v63, %v10077_v49  ;;  %v2401_v38 = vshrl.u32 %v12341_v55, 16 }
 0x20d   :  { %v10106_v51 = vpop.f32.mrf.mxu1  ;;  %v10080_v12 = vpop.f32.mrf.mxu0  ;;  %v2408_v54 = vshrl.u32 %v12345_v60, 16  ;;  %v2449_v63 = vshrl.u32 %v12355_v40, 16  ;;  %v2301_v48 = vor.u32 %v2300_v37, %v2296_v47  ;;  %v2343_v60 = vor.u32 %v12357_v23, %v12351_v62 }
 0x20e   :  { %2262 = vst [vmem:[#allocation3 + $0x8] sm:$0xf] %v9989_v44  ;;  %v2224_v13 = vmax.f32 %v2209_v45, 0.0  ;;  %v2166_v14 = vadd.f32 %v10079_v6, %v2118_v35  ;;  %v10107_v27 = vadd.f32 %v10106_v51, %v10105_v4  ;;  %4675 = vmatpush2.bf16.msra.mxu0 %v10713_v11  ;;  %v2452_v4 = vshll.u32 %v12355_v40, 16 }
 0x20f   :  { %v10081_v25 = vpop.f32.mrf.mxu0  ;;  %v10108_v28 = vpop.f32.mrf.mxu1  ;;  %4676 = vmatprep.subr.bf16.mxu0 %v10721_v19  ;;  %v2406_v58 = vor.u32 %v2405_v29, %v2401_v38  ;;  %v2413_v44 = vor.u32 %v2412_v42, %v2408_v54  ;;  %v2451_v53 = vrot.slane %v2449_v63, 1 }
 0x210   :  { %v9991_v31 = vpack.c.bf16 %v2224_v13, %v2224_v13  ;;  %v2214_v34 = vadd.f32 %v10107_v27, %v2166_v14  ;;  %v10728_v13 = vld [vmem:[#allocation14 + $0x3d8] ss:$12 sps:$4 sm:$0xff]   ;;  %v2443_v14 = vrot.slane %v2441_v57, 1  ;;  %v2446_v27 = vrot.slane %v2444_v0, 2 }
 0x211   :  { %v10109_v33 = vpop.f32.mrf.mxu1 }
 0x212   :  { %2264 = vst [vmem:[#allocation3 + $0x14] sm:$0xf] %v9991_v31  ;;  %v2227_v18 = vmax.f32 %v2214_v34, 0.0  ;;  %4677 = vmatpush2.bf16.msra.mxu0 %v10719_v39  ;;  %v2447_v29 = vor.u32 %v2446_v27, %v2443_v14 }
 0x213   :  { %4678 = vmatprep.subr.bf16.mxu0 %v10727_v41  ;;  %v10751_v41 = vld [vmem:[#allocation14 + $0x6ac] ss:$12 sps:$4 sm:$0xff]  }
 0x214   :  { %v9993_v43 = vpack.c.bf16 %v2227_v18, %v2227_v18 }
 0x215   :  { %v2268_v36 = vld [vmem:[#allocation3 + $0x8] sm:$0x7] }
 0x216   :  { %v2272_v3 = vld [vmem:[#allocation3 + $0x8] sm:$0xe]  ;;  %v10665_v49 = vld [vmem:[#allocation3 + $0x8] ss:$0 sps:$4 sm:$0xff]   ;;  %v9184_v50 = vcombine.low %v2268_v36, %v2294_v8  ;;  %2266 = vst [vmem:[#allocation3 + $0x20] sm:$0x1] %v9993_v43  ;;  %4679 = vmatpush2.bf16.msra.mxu0 %v10725_v46 }
 0x217   :  { %v9180_v15 = vcombine.low %v2272_v3, %v2272_v3  ;;  %v2305_v5 = vshll.u32 %v10665_v49, 16  ;;  %v2303_v19 = vshrl.u32 %v10665_v49, 16  ;;  %4680 = vmatprep.subr.bf16.mxu0 %v10730_v26  ;;  %v2454_v46 = vrot.slane %v2452_v4, 2 }
 0x218   :  { %2374 = vst [vmem:[#allocation4] sm:$0x77] %v9184_v50 }
 0x219   :  { %v2319_v35 = vrot.slane %v9180_v15, 1  ;;  %v2274_v45 = vld [vmem:[#allocation3 + $0x14] sm:$0x1]  ;;  %v2382_v55 = vld [vmem:[#allocation3 + $0x14] sm:$0xe]  ;;  %v2307_v51 = vrot.slane %v2305_v5, 1  ;;  %v2455_v4 = vor.u32 %v2454_v46, %v2451_v53 }
 0x21a   :  { %v2380_v6 = vld [vmem:[#allocation3 + $0x14] sm:$0xf]  ;;  %v9183_v11 = vcombine.low %v2272_v3, %v2274_v45  ;;  %v9191_v12 = vcombine.low %v2382_v55, %v2382_v55  ;;  %4681 = vmatpush2.bf16.msra.mxu0 %v10728_v13  ;;  %v10731_v13 = vld [vmem:[#allocation14 + $0x528] ss:$12 sps:$4 sm:$0xff]  }
 0x21b   :  { %v9198_v56 = vcombine.low %v2380_v6, %v2406_v58  ;;  %v9187_v21 = vcombine.low %v2319_v35, %v2335_v7  ;;  %v2308_v39 = vor.u32 %v2307_v51, %v2303_v19  ;;  %v2386_v10 = vld [vmem:[#allocation3 + $0x14] sm:$0xc]  ;;  %4682 = vmatprep.subr.bf16.mxu0 %v10739_v20  ;;  %v10775_v46 = vld [vmem:[#allocation14 + $0x49c] ss:$12 sps:$4 sm:$0xff]  }
 0x21c   :  { %v2345_v24 = vshrl.u32 %v9183_v11, 16  ;;  %v2348_v25 = vshll.u32 %v9183_v11, 16  ;;  %v2417_v28 = vshll.u32 %v9191_v12, 16  ;;  %v2415_v31 = vshrl.u32 %v9191_v12, 16 }
 0x21d   :  { %v2488_v32 = vshrl.u32 %v9198_v56, 16  ;;  %v2491_v34 = vshll.u32 %v9198_v56, 16  ;;  %v2384_v37 = vld [vmem:[#allocation3 + $0x20] sm:$0x1]  ;;  %2377 = vst [vmem:[#allocation4 + $0x8] sm:$0x77] %v9187_v21  ;;  %v9185_v40 = vcombine.low %v2301_v48, %v2308_v39 }
 0x21e   :  { %v2347_v33 = vrot.slane %v2345_v24, 1  ;;  %v2350_v1 = vrot.slane %v2348_v25, 2  ;;  %v2419_v8 = vrot.slane %v2417_v28, 1  ;;  %v9194_v18 = vcombine.low %v2382_v55, %v2384_v37  ;;  %4683 = vmatpush2.bf16.msra.mxu0 %v10737_v30  ;;  %v10742_v24 = vld [vmem:[#allocation14 + $0x514] ss:$12 sps:$4 sm:$0xff]  }
 0x21f   :  { %v9197_v59 = vcombine.low %v2386_v10, %v2384_v37  ;;  %v2490_v62 = vrot.slane %v2488_v32, 5  ;;  %v2493_v22 = vrot.slane %v2491_v34, 6  ;;  %2375 = vst [vmem:[#allocation4 + $0x50] sm:$0x77] %v9185_v40  ;;  %4738 = vmatprep.subr.bf16.mxu0 %v10751_v41  ;;  %v10740_v30 = vld [vmem:[#allocation14 + $0x510] ss:$12 sps:$4 sm:$0xff]  }
 0x220   :  { %v2420_v23 = vor.u32 %v2419_v8, %v2415_v31  ;;  %v2431_v42 = vrot.slane %v9194_v18, 1  ;;  %v2351_v43 = vor.u32 %v2350_v1, %v2347_v33  ;;  %v10736_v25 = vld [vmem:[#allocation4 + $0x34] ss:$-8 sps:$4 sm:$0x3f]   ;;  %v10749_v32 = vld [vmem:[#allocation14 + $0x6a8] ss:$12 sps:$4 sm:$0xff]  }
 0x221   :  { %v2457_v36 = vshrl.u32 %v9197_v59, 16  ;;  %v2460_v3 = vshll.u32 %v9197_v59, 16  ;;  %v2494_v47 = vor.u32 %v2493_v22, %v2490_v62  ;;  %v10748_v31 = vld [vmem:[#allocation14 + $0x4fc] ss:$12 sps:$4 sm:$0xff]   ;;  %v10746_v39 = vld [vmem:[#allocation14 + $0x4f8] ss:$12 sps:$4 sm:$0xff]  }
 0x222   :  { %v9201_v49 = vcombine.low %v2431_v42, %v2447_v29  ;;  %v9199_v15 = vcombine.low %v2413_v44, %v2420_v23  ;;  %v9188_v50 = vcombine.low %v2343_v60, %v2351_v43  ;;  %v10760_v33 = vld [vmem:[#allocation14 + $0x694] ss:$12 sps:$4 sm:$0xff]   ;;  %v10757_v10 = vld [vmem:[#allocation14 + $0x4e4] ss:$12 sps:$4 sm:$0xff]   ;;  %v10766_v59 = vld [vmem:[#allocation14 + $0x67c] ss:$12 sps:$4 sm:$0xff]  }
 0x223   :  { %v2459_v38 = vrot.slane %v2457_v36, 1  ;;  %v2462_v26 = vrot.slane %v2460_v3, 2  ;;  %v2528_v54 = vrot.slane %v2494_v47, 4  ;;  %2546 = vst [vmem:[#allocation4] sm:$0x88] %v2494_v47 }
 0x224   :  { %v2496_v57 = vshrl.u32 %v9199_v15, 16  ;;  %v2499_v0 = vshll.u32 %v9199_v15, 16  ;;  %v2512_v63 = vshrl.u32 %v9201_v49, 16  ;;  %v2515_v5 = vshll.u32 %v9201_v49, 16  ;;  %2378 = vst [vmem:[#allocation4 + $0x20] sm:$0x77] %v9188_v50 }
 0x225   :  { %v2463_v35 = vor.u32 %v2462_v26, %v2459_v38  ;;  %2552 = vst [vmem:[#allocation4 + $0x40] sm:$0x33] %v2528_v54  ;;  %v10758_v8 = vld [vmem:[#allocation14 + $0x690] ss:$12 sps:$4 sm:$0xff]   ;;  %v10755_v18 = vld [vmem:[#allocation14 + $0x4e0] ss:$12 sps:$4 sm:$0xff]  }
 0x226   :  { %v2498_v58 = vrot.slane %v2496_v57, 5  ;;  %v2501_v45 = vrot.slane %v2499_v0, 6  ;;  %v2514_v6 = vrot.slane %v2512_v63, 5  ;;  %v2517_v55 = vrot.slane %v2515_v5, 6  ;;  %v10763_v62 = vld [vmem:[#allocation14 + $0x4cc] ss:$12 sps:$4 sm:$0xff]  }
 0x227   :  { %v9202_v48 = vcombine.low %v2455_v4, %v2463_v35  ;;  %v10761_v22 = vld [vmem:[#allocation14 + $0x4c8] ss:$12 sps:$4 sm:$0xff]   ;;  %v10764_v40 = vld [vmem:[#allocation14 + $0x678] ss:$12 sps:$4 sm:$0xff]   ;;  %v10767_v42 = vld [vmem:[#allocation14 + $0x4b0] ss:$12 sps:$4 sm:$0xff]  }
 0x228   :  { %v2502_v44 = vor.u32 %v2501_v45, %v2498_v58  ;;  %v2518_v7 = vor.u32 %v2517_v55, %v2514_v6  ;;  %v10772_v41 = vld [vmem:[#allocation14 + $0x664] ss:$12 sps:$4 sm:$0xff]   ;;  %v10769_v23 = vld [vmem:[#allocation14 + $0x4b4] ss:$12 sps:$4 sm:$0xff]   ;;  %v10778_v43 = vld [vmem:[#allocation14 + $0x64c] ss:$12 sps:$4 sm:$0xff]  }
 0x229   :  { %v2520_v60 = vshrl.u32 %v9202_v48, 16  ;;  %v2523_v51 = vshll.u32 %v9202_v48, 16  ;;  %v10770_v29 = vld [vmem:[#allocation14 + $0x660] ss:$12 sps:$4 sm:$0xff]   ;;  %v10773_v36 = vld [vmem:[#allocation14 + $0x498] ss:$12 sps:$4 sm:$0xff]  }
 0x22a   :  { %v2529_v11 = vrot.slane %v2502_v44, 4  ;;  %2547 = vst [vmem:[#allocation4 + $0x50] sm:$0x88] %v2502_v44  ;;  %v2531_v12 = vrot.slane %v2518_v7, 4  ;;  %2549 = vst [vmem:[#allocation4 + $0x8] sm:$0x88] %v2518_v7 }
 0x22b   :  { %v2558_v56 = vld [vmem:[#allocation4] sm:$0xff]  ;;  %v2522_v14 = vrot.slane %v2520_v60, 5  ;;  %v2525_v27 = vrot.slane %v2523_v51, 6  ;;  %v10779_v15 = vld [vmem:[#allocation14 + $0x480] ss:$12 sps:$4 sm:$0xff]  }
 0x22c   :  { %v2564_v19 = vld [vmem:[#allocation4 + $0x40] sm:$0x33]  ;;  %2553 = vst [vmem:[#allocation4 + $0x38] sm:$0x33] %v2529_v11  ;;  %2555 = vst [vmem:[#allocation4 + $0x58] sm:$0x33] %v2531_v12 }
 0x22d   :  { %v12366_v20 = vcombine.low %v2558_v56, %v2564_v19  ;;  %v12368_v21 = vcombine.high %v2558_v56, %v2564_v19  ;;  %v2526_v53 = vor.u32 %v2525_v27, %v2522_v14  ;;  %v10776_v3 = vld [vmem:[#allocation14 + $0x648] ss:$12 sps:$4 sm:$0xff]   ;;  %v10781_v49 = vld [vmem:[#allocation14 + $0x484] ss:$12 sps:$4 sm:$0xff]   ;;  %v10787_v26 = vld [vmem:[#allocation14 + $0x5ec] ss:$12 sps:$4 sm:$0xff]  }
 0x22e   :  { %v10784_v47 = vld [vmem:[#allocation14 + $0x634] ss:$12 sps:$4 sm:$0xff]   ;;  %v10782_v50 = vld [vmem:[#allocation14 + $0x630] ss:$12 sps:$4 sm:$0xff]   ;;  %v10788_v54 = vld [vmem:[#allocation14 + $0x618] ss:$12 sps:$4 sm:$0xff]  }
 0x22f   :  { %4641 = vmatprep.mubr.bf16.mxu1 %v12368_v21  ;;  %v2532_v28 = vrot.slane %v2526_v53, 4  ;;  %2550 = vst [vmem:[#allocation4 + $0x20] sm:$0x88] %v2526_v53  ;;  %v10790_v38 = vld [vmem:[#allocation14 + $0x61c] ss:$12 sps:$4 sm:$0xff]  }
 0x230   :  { %4642 = vmatmul.mubr.bf16.vlgmr.msra.gmra.mxu1 %v12366_v20  ;;  %v10785_v57 = vld [vmem:[#allocation14 + $0x5e8] ss:$12 sps:$4 sm:$0xff]   ;;  %v10796_v0 = vld [vmem:[#allocation14 + $0x604] ss:$12 sps:$4 sm:$0xff]   ;;  %v10794_v35 = vld [vmem:[#allocation14 + $0x600] ss:$12 sps:$4 sm:$0xff]  }
 0x231   :  { %4696 = vmatpush1.bf16.msra.mxu1 %v10731_v13  ;;  %4727 = vmatprep.mubr.bf16.mxu1 %v10736_v25  ;;  %2556 = vst [vmem:[#allocation4 + $0x10] sm:$0x33] %v2532_v28  ;;  %v10793_v63 = vld [vmem:[#allocation14 + $0x5d4] ss:$12 sps:$4 sm:$0xff]   ;;  %v10791_v5 = vld [vmem:[#allocation14 + $0x5d0] ss:$12 sps:$4 sm:$0xff]  }
 0x232   :  { %4697 = vmatprep.subr.bf16.mxu1 %v10742_v24  ;;  %v10802_v4 = vld [vmem:[#allocation14 + $0x76c] ss:$12 sps:$4 sm:$0xff]   ;;  %v10799_v58 = vld [vmem:[#allocation14 + $0x5bc] ss:$12 sps:$4 sm:$0xff]   ;;  %v10805_v55 = vld [vmem:[#allocation14 + $0x5a4] ss:$12 sps:$4 sm:$0xff]  }
 0x233   :  { %v10743_v34 = vld [vmem:[#allocation4 + $0x50] ss:$-24 sps:$4 sm:$0x3f]   ;;  %v12372_v37 = vld [vmem:[#allocation4 + $0x54] ss:$-24 sps:$4 sm:$0x3f]  }
 0x234   :  { %4684 = vmatprep.mubr.bf16.mxu0 %v12372_v37  ;;  %v10754_v1 = vld [vmem:[#allocation4 + $0xc] ss:$80 sps:$4 sm:$0x3f]   ;;  %v10797_v45 = vld [vmem:[#allocation14 + $0x5b8] ss:$12 sps:$4 sm:$0xff]  }
 0x235   :  { %4698 = vmatpush1.bf16.msra.mxu1 %v10740_v30  ;;  %4685 = vmatmul.mubr.bf16.vlgmr.msra.gmra.mxu0 %v10743_v34  ;;  %v10800_v6 = vld [vmem:[#allocation14 + $0x768] ss:$12 sps:$4 sm:$0xff]   ;;  %v10803_v44 = vld [vmem:[#allocation14 + $0x5a0] ss:$12 sps:$4 sm:$0xff]   ;;  %v10806_v7 = vld [vmem:[#allocation14 + $0x750] ss:$12 sps:$4 sm:$0xff]  }
 0x236   :  { %4699 = vmatprep.subr.bf16.mxu1 %v10748_v31  ;;  %4739 = vmatpush1.bf16.msra.mxu0 %v10749_v32  ;;  %v10808_v48 = vld [vmem:[#allocation14 + $0x754] ss:$12 sps:$4 sm:$0xff]   ;;  %v10811_v60 = vld [vmem:[#allocation14 + $0x58c] ss:$12 sps:$4 sm:$0xff]   ;;  %v10814_v51 = vld [vmem:[#allocation14 + $0x73c] ss:$12 sps:$4 sm:$0xff]  }
 0x237   :  { %4770 = vmatprep.mubr.bf16.mxu0 %v10754_v1  ;;  %4740 = vmatprep.subr.bf16.mxu0 %v10760_v33  ;;  %v10812_v11 = vld [vmem:[#allocation14 + $0x738] ss:$12 sps:$4 sm:$0xff]   ;;  %v10809_v12 = vld [vmem:[#allocation14 + $0x588] ss:$12 sps:$4 sm:$0xff]   ;;  %v10818_v14 = vld [vmem:[#allocation14 + $0x720] ss:$12 sps:$4 sm:$0xff]  }
 0x238   :  { %v10817_v56 = vld [vmem:[#allocation14 + $0x574] ss:$12 sps:$4 sm:$0xff]   ;;  %v10820_v13 = vld [vmem:[#allocation14 + $0x724] ss:$12 sps:$4 sm:$0xff]   ;;  %v10823_v19 = vld [vmem:[#allocation14 + $0x55c] ss:$12 sps:$4 sm:$0xff]  }
 0x239   :  { %4700 = vmatpush1.bf16.msra.mxu1 %v10746_v39  ;;  %v10815_v27 = vld [vmem:[#allocation14 + $0x570] ss:$12 sps:$4 sm:$0xff]   ;;  %v10826_v53 = vld [vmem:[#allocation14 + $0x70c] ss:$12 sps:$4 sm:$0xff]   ;;  %v10824_v24 = vld [vmem:[#allocation14 + $0x708] ss:$12 sps:$4 sm:$0xff]  }
 0x23a   :  { %4701 = vmatprep.subr.bf16.mxu1 %v10757_v10  ;;  %4741 = vmatpush1.bf16.msra.mxu0 %v10758_v8  ;;  %v10821_v25 = vld [vmem:[#allocation14 + $0x558] ss:$12 sps:$4 sm:$0xff]   ;;  %v10832_v30 = vld [vmem:[#allocation14 + $0x6f4] ss:$12 sps:$4 sm:$0xff]   ;;  %v10830_v31 = vld [vmem:[#allocation14 + $0x6f0] ss:$12 sps:$4 sm:$0xff]  }
 0x23b   :  { %4742 = vmatprep.subr.bf16.mxu0 %v10766_v59  ;;  %v10829_v28 = vld [vmem:[#allocation14 + $0x544] ss:$12 sps:$4 sm:$0xff]   ;;  %v10827_v32 = vld [vmem:[#allocation14 + $0x540] ss:$12 sps:$4 sm:$0xff]   ;;  %v10835_v34 = vld [vmem:[#allocation14 + $0x6dc] ss:$12 sps:$4 sm:$0xff]  }
 0x23c   :  { %v10833_v39 = vld [vmem:[#allocation14 + $0x6d8] ss:$12 sps:$4 sm:$0xff]   ;;  %v10836_v1 = vld [vmem:[#allocation14 + $0x828] ss:$12 sps:$4 sm:$0xff]   ;;  %v10842_v59 = vld [vmem:[#allocation14 + $0x6c0] ss:$12 sps:$4 sm:$0xff]  }
 0x23d   :  { %4702 = vmatpush1.bf16.msra.mxu1 %v10755_v18  ;;  %v10838_v33 = vld [vmem:[#allocation14 + $0x82c] ss:$12 sps:$4 sm:$0xff]   ;;  %v10844_v8 = vld [vmem:[#allocation14 + $0x6c4] ss:$12 sps:$4 sm:$0xff]   ;;  %v10847_v18 = vld [vmem:[#allocation14 + $0x814] ss:$12 sps:$4 sm:$0xff]  }
 0x23e   :  { %4703 = vmatprep.subr.bf16.mxu1 %v10763_v62  ;;  %4743 = vmatpush1.bf16.msra.mxu0 %v10764_v40  ;;  %v12375_v10 = vld [vmem:[#allocation4 + $0x30] ss:$-8 sps:$4 sm:$0x3f]   ;;  %v12377_v62 = vld [vmem:[#allocation4 + $0x24] ss:$-16 sps:$4 sm:$0x3f]  }
 0x23f   :  { %4744 = vmatprep.subr.bf16.mxu0 %v10772_v41  ;;  %v10851_v40 = vld [vmem:[#allocation14 + $0x170] ss:$12 sps:$4 sm:$0xff]  }
 0x240   :  { %v10850_v41 = vld [vmem:[#allocation14 + $0x7fc] ss:$12 sps:$4 sm:$0xff]  }
 0x241   :  { %4704 = vmatpush1.bf16.msra.mxu1 %v10761_v22  ;;  %v10845_v22 = vld [vmem:[#allocation14 + $0x810] ss:$12 sps:$4 sm:$0xff]  }
 0x242   :  { %4705 = vmatprep.subr.bf16.mxu1 %v10769_v23  ;;  %4745 = vmatpush1.bf16.msra.mxu0 %v10770_v29  ;;  %v10852_v23 = vld [vmem:[#allocation14 + $0xb0] ss:$12 sps:$4 sm:$0xff]   ;;  %v10856_v29 = vld [vmem:[#allocation14 + $0x158] ss:$12 sps:$4 sm:$0xff]  }
 0x243   :  { %4746 = vmatprep.subr.bf16.mxu0 %v10778_v43  ;;  %v12381_v43 = vld [vmem:[#allocation4 + $0x8] ss:$80 sps:$4 sm:$0x3f]  }
 0x245   :  { %4706 = vmatpush1.bf16.msra.mxu1 %v10767_v42  ;;  %v10848_v42 = vld [vmem:[#allocation14 + $0x7f8] ss:$12 sps:$4 sm:$0xff]  }
 0x246   :  { %4707 = vmatprep.subr.bf16.mxu1 %v10775_v46  ;;  %4747 = vmatpush1.bf16.msra.mxu0 %v10776_v3  ;;  %v10855_v46 = vld [vmem:[#allocation14 + $0x7e4] ss:$12 sps:$4 sm:$0xff]  }
 0x247   :  { %4748 = vmatprep.subr.bf16.mxu0 %v10784_v47  ;;  %v10857_v3 = vld [vmem:[#allocation14 + $0x98] ss:$12 sps:$4 sm:$0xff]   ;;  %v11644_v47 = vld [vmem:[#allocation4 + $0x4c] ss:$-48 sps:$4 sm:$0x3f]  }
 0x249   :  { %4708 = vmatpush1.bf16.msra.mxu1 %v10773_v36  ;;  %v10853_v36 = vld [vmem:[#allocation14 + $0x7e0] ss:$12 sps:$4 sm:$0xff]  }
 0x24a   :  { %4709 = vmatprep.subr.bf16.mxu1 %v10781_v49  ;;  %4749 = vmatpush1.bf16.msra.mxu0 %v10782_v50  ;;  %v10860_v49 = vld [vmem:[#allocation14 + $0x7cc] ss:$12 sps:$4 sm:$0xff]  }
 0x24b   :  { %4750 = vmatprep.subr.bf16.mxu0 %v10790_v38  ;;  %v10862_v50 = vld [vmem:[#allocation14 + $0x80] ss:$12 sps:$4 sm:$0xff]   ;;  %v10858_v38 = vld [vmem:[#allocation14 + $0x7c8] ss:$12 sps:$4 sm:$0xff]  }
 0x24d   :  { %4710 = vmatpush1.bf16.msra.mxu1 %v10779_v15  ;;  %v10861_v15 = vld [vmem:[#allocation14 + $0x140] ss:$12 sps:$4 sm:$0xff]  }
 0x24e   :  { %4711 = vmatprep.subr.bf16.mxu1 %v10787_v26  ;;  %4751 = vmatpush1.bf16.msra.mxu0 %v10788_v54  ;;  %v10866_v26 = vld [vmem:[#allocation14 + $0x128] ss:$12 sps:$4 sm:$0xff]  }
 0x24f   :  { %4752 = vmatprep.subr.bf16.mxu0 %v10796_v0  ;;  %v10865_v54 = vld [vmem:[#allocation14 + $0x7b4] ss:$12 sps:$4 sm:$0xff]   ;;  %v10863_v0 = vld [vmem:[#allocation14 + $0x7b0] ss:$12 sps:$4 sm:$0xff]  }
 0x251   :  { %4712 = vmatpush2.bf16.msra.mxu1 %v10785_v57  ;;  %v10867_v57 = vld [vmem:[#allocation14 + $0x68] ss:$12 sps:$4 sm:$0xff]  }
 0x252   :  { %4713 = vmatprep.subr.bf16.mxu1 %v10793_v63  ;;  %4753 = vmatpush1.bf16.msra.mxu0 %v10794_v35  ;;  %v10870_v63 = vld [vmem:[#allocation14 + $0x79c] ss:$12 sps:$4 sm:$0xff]  }
 0x253   :  { %4754 = vmatprep.subr.bf16.mxu0 %v10802_v4  ;;  %v10872_v35 = vld [vmem:[#allocation14 + $0x50] ss:$12 sps:$4 sm:$0xff]   ;;  %v10868_v4 = vld [vmem:[#allocation14 + $0x798] ss:$12 sps:$4 sm:$0xff]  }
 0x255   :  { %4714 = vmatpush2.bf16.msra.mxu1 %v10791_v5  ;;  %v10871_v5 = vld [vmem:[#allocation14 + $0x110] ss:$12 sps:$4 sm:$0xff]  }
 0x256   :  { %4715 = vmatprep.subr.bf16.mxu1 %v10799_v58  ;;  %4755 = vmatpush2.bf16.msra.mxu0 %v10800_v6  ;;  %v10875_v58 = vld [vmem:[#allocation14 + $0x784] ss:$12 sps:$4 sm:$0xff]  }
 0x257   :  { %4756 = vmatprep.subr.bf16.mxu0 %v10808_v48  ;;  %v10877_v6 = vld [vmem:[#allocation14 + $0x38] ss:$12 sps:$4 sm:$0xff]  }
 0x258   :  { %v10880_v48 = vld [vmem:[#allocation14 + $0x8ec] ss:$12 sps:$4 sm:$0xff]  }
 0x259   :  { %4716 = vmatpush2.bf16.msra.mxu1 %v10797_v45  ;;  %v10876_v45 = vld [vmem:[#allocation14 + $0xf8] ss:$12 sps:$4 sm:$0xff]  }
 0x25a   :  { %4717 = vmatprep.subr.bf16.mxu1 %v10805_v55  ;;  %4757 = vmatpush2.bf16.msra.mxu0 %v10806_v7  ;;  %v10873_v55 = vld [vmem:[#allocation14 + $0x780] ss:$12 sps:$4 sm:$0xff]  }
 0x25b   :  { %4758 = vmatprep.subr.bf16.mxu0 %v10814_v51  ;;  %v10882_v7 = vld [vmem:[#allocation14 + $0x20] ss:$12 sps:$4 sm:$0xff]   ;;  %v10886_v51 = vld [vmem:[#allocation14 + $0xc8] ss:$12 sps:$4 sm:$0xff]  }
 0x25d   :  { %4718 = vmatpush2.bf16.msra.mxu1 %v10803_v44  ;;  %v10881_v44 = vld [vmem:[#allocation14 + $0xe0] ss:$12 sps:$4 sm:$0xff]  }
 0x25e   :  { %4719 = vmatprep.subr.bf16.mxu1 %v10811_v60  ;;  %4759 = vmatpush2.bf16.msra.mxu0 %v10812_v11  ;;  %v10878_v60 = vld [vmem:[#allocation14 + $0x8e8] ss:$12 sps:$4 sm:$0xff]  }
 0x25f   :  { %4760 = vmatprep.subr.bf16.mxu0 %v10820_v13  ;;  %v10885_v11 = vld [vmem:[#allocation14 + $0x8d4] ss:$12 sps:$4 sm:$0xff]   ;;  %v10891_v13 = vld [vmem:[#allocation14 + $0x470] ss:$12 sps:$4 sm:$0xff]  }
 0x261   :  { %4720 = vmatpush2.bf16.msra.mxu1 %v10809_v12  ;;  %v10887_v12 = vld [vmem:[#allocation14 + $0x8] ss:$12 sps:$4 sm:$0xff]  }
 0x262   :  { %4721 = vmatprep.subr.bf16.mxu1 %v10817_v56  ;;  %4761 = vmatpush2.bf16.msra.mxu0 %v10818_v14  ;;  %v10883_v56 = vld [vmem:[#allocation14 + $0x8d0] ss:$12 sps:$4 sm:$0xff]  }
 0x263   :  { %4762 = vmatprep.subr.bf16.mxu0 %v10826_v53  ;;  %v10890_v14 = vld [vmem:[#allocation14 + $0x8bc] ss:$12 sps:$4 sm:$0xff]   ;;  %v10896_v53 = vld [vmem:[#allocation14 + $0x458] ss:$12 sps:$4 sm:$0xff]  }
 0x265   :  { %4722 = vmatpush2.bf16.msra.mxu1 %v10815_v27  ;;  %v10892_v27 = vld [vmem:[#allocation14 + $0x3b0] ss:$12 sps:$4 sm:$0xff]  }
 0x266   :  { %4723 = vmatprep.subr.bf16.mxu1 %v10823_v19  ;;  %4763 = vmatpush2.bf16.msra.mxu0 %v10824_v24  ;;  %v10888_v19 = vld [vmem:[#allocation14 + $0x8b8] ss:$12 sps:$4 sm:$0xff]  }
 0x267   :  { %4764 = vmatprep.subr.bf16.mxu0 %v10832_v30  ;;  %v10895_v24 = vld [vmem:[#allocation14 + $0x8a4] ss:$12 sps:$4 sm:$0xff]   ;;  %v10893_v30 = vld [vmem:[#allocation14 + $0x8a0] ss:$12 sps:$4 sm:$0xff]  }
 0x269   :  { %4724 = vmatpush2.bf16.msra.mxu1 %v10821_v25  ;;  %v10897_v25 = vld [vmem:[#allocation14 + $0x398] ss:$12 sps:$4 sm:$0xff]  }
 0x26a   :  { %4725 = vmatprep.subr.bf16.mxu1 %v10829_v28  ;;  %4765 = vmatpush2.bf16.msra.mxu0 %v10830_v31  ;;  %v11645_v28 = vld [vmem:[#allocation4 + $0x48] ss:$-48 sps:$4 sm:$0x3f]   ;;  %v10901_v31 = vld [vmem:[#allocation14 + $0x440] ss:$12 sps:$4 sm:$0xff]  }
 0x26b   :  { %4766 = vmatprep.subr.bf16.mxu0 %v10835_v34  ;;  %v10902_v34 = vld [vmem:[#allocation14 + $0x380] ss:$12 sps:$4 sm:$0xff]  }
 0x26d   :  { %4726 = vmatpush2.bf16.msra.mxu1 %v10827_v32  ;;  %v10900_v32 = vld [vmem:[#allocation14 + $0x88c] ss:$12 sps:$4 sm:$0xff]  }
 0x26e   :  { %4781 = vmatprep.subr.bf16.mxu1 %v10838_v33  ;;  %4767 = vmatpush2.bf16.msra.mxu0 %v10833_v39  ;;  %v10898_v39 = vld [vmem:[#allocation14 + $0x888] ss:$12 sps:$4 sm:$0xff]  }
 0x26f   :  { %4768 = vmatprep.subr.bf16.mxu0 %v10844_v8  ;;  %v10906_v33 = vld [vmem:[#allocation14 + $0x428] ss:$12 sps:$4 sm:$0xff]  }
 0x270   :  { %4728 = vmatmul.mubr.bf16.vlgmr.msra.gmra.mxu1 %v12375_v10  ;;  %v10907_v8 = vld [vmem:[#allocation14 + $0x368] ss:$12 sps:$4 sm:$0xff]  }
 0x271   :  { %4782 = vmatpush1.bf16.msra.mxu1 %v10836_v1  ;;  %4813 = vmatprep.mubr.bf16.mxu1 %v12377_v62  ;;  %v10905_v1 = vld [vmem:[#allocation14 + $0x874] ss:$12 sps:$4 sm:$0xff]  }
 0x272   :  { %4783 = vmatprep.subr.bf16.mxu1 %v10847_v18  ;;  %4769 = vmatpush2.bf16.msra.mxu0 %v10842_v59  ;;  %v10903_v18 = vld [vmem:[#allocation14 + $0x870] ss:$12 sps:$4 sm:$0xff]  }
 0x273   :  { %10111 = vmatprep.subr.bf16.mxu0 %v10851_v40  ;;  %v10911_v59 = vld [vmem:[#allocation14 + $0x410] ss:$12 sps:$4 sm:$0xff]   ;;  %v10908_v40 = vld [vmem:[#allocation14 + $0x858] ss:$12 sps:$4 sm:$0xff]  }
 0x275   :  { %4784 = vmatpush1.bf16.msra.mxu1 %v10845_v22  ;;  %4771 = vmatmul.mubr.bf16.vlgmr.msra.gmra.mxu0 %v12381_v43  ;;  %v10910_v22 = vld [vmem:[#allocation14 + $0x85c] ss:$12 sps:$4 sm:$0xff]  }
 0x276   :  { %4785 = vmatprep.subr.bf16.mxu1 %v10850_v41  ;;  %10112 = vmatpush3.bf16.msra.mxu0 %v10852_v23  ;;  %v10916_v41 = vld [vmem:[#allocation14 + $0x3f8] ss:$12 sps:$4 sm:$0xff]  }
 0x277   :  { %4856 = vmatprep.mubr.bf16.mxu0 %v11644_v47  ;;  %10113 = vmatprep.subr.bf16.mxu0 %v10856_v29  ;;  %v10915_v23 = vld [vmem:[#allocation14 + $0x844] ss:$12 sps:$4 sm:$0xff]   ;;  %v10913_v29 = vld [vmem:[#allocation14 + $0x840] ss:$12 sps:$4 sm:$0xff]  }
 0x278   :  { %v10920_v47 = vld [vmem:[#allocation14 + $0x230] ss:$12 sps:$4 sm:$0xff]  }
 0x279   :  { %4786 = vmatpush1.bf16.msra.mxu1 %v10848_v42  ;;  %v10917_v42 = vld [vmem:[#allocation14 + $0x338] ss:$12 sps:$4 sm:$0xff]  }
 0x27a   :  { %4787 = vmatprep.subr.bf16.mxu1 %v10855_v46  ;;  %10114 = vmatpush3.bf16.msra.mxu0 %v10857_v3  ;;  %v10919_v46 = vld [vmem:[#allocation14 + $0x3e0] ss:$12 sps:$4 sm:$0xff]  }
 0x27b   :  { %10115 = vmatprep.subr.bf16.mxu0 %v10861_v15  ;;  %v10921_v3 = vld [vmem:[#allocation14 + $0x320] ss:$12 sps:$4 sm:$0xff]   ;;  %v10922_v15 = vld [vmem:[#allocation14 + $0x2d8] ss:$12 sps:$4 sm:$0xff]  }
 0x27d   :  { %4788 = vmatpush1.bf16.msra.mxu1 %v10853_v36  ;;  %v10918_v36 = vld [vmem:[#allocation14 + $0x2f0] ss:$12 sps:$4 sm:$0xff]  }
 0x27e   :  { %4789 = vmatprep.subr.bf16.mxu1 %v10860_v49  ;;  %10116 = vmatpush3.bf16.msra.mxu0 %v10862_v50  ;;  %v12385_v49 = vld [vmem:[#allocation4 + $0x20] ss:$-16 sps:$4 sm:$0x3f]   ;;  %v10923_v50 = vld [vmem:[#allocation14 + $0x3c8] ss:$12 sps:$4 sm:$0xff]  }
 0x27f   :  { %10117 = vmatprep.subr.bf16.mxu0 %v10866_v26  ;;  %v10924_v26 = vld [vmem:[#allocation14 + $0x218] ss:$12 sps:$4 sm:$0xff]  }
 0x281   :  { %4790 = vmatpush1.bf16.msra.mxu1 %v10858_v38  ;;  %v10925_v38 = vld [vmem:[#allocation14 + $0x308] ss:$12 sps:$4 sm:$0xff]  }
 0x282   :  { %4791 = vmatprep.subr.bf16.mxu1 %v10865_v54  ;;  %10118 = vmatpush3.bf16.msra.mxu0 %v10867_v57  ;;  %v10927_v54 = vld [vmem:[#allocation14 + $0x770] ss:$12 sps:$4 sm:$0xff]   ;;  %v10926_v57 = vld [vmem:[#allocation14 + $0x2c0] ss:$12 sps:$4 sm:$0xff]  }
 0x283   :  { %10119 = vmatprep.subr.bf16.mxu0 %v10871_v5  ;;  %v10931_v5 = vld [vmem:[#allocation14 + $0x758] ss:$12 sps:$4 sm:$0xff]  }
 0x285   :  { %4792 = vmatpush1.bf16.msra.mxu1 %v10863_v0  ;;  %v10929_v0 = vld [vmem:[#allocation14 + $0x6b0] ss:$12 sps:$4 sm:$0xff]  }
 0x286   :  { %4793 = vmatprep.subr.bf16.mxu1 %v10870_v63  ;;  %10120 = vmatpush3.bf16.msra.mxu0 %v10872_v35  ;;  %v10928_v63 = vld [vmem:[#allocation14 + $0x200] ss:$12 sps:$4 sm:$0xff]   ;;  %v10930_v35 = vld [vmem:[#allocation14 + $0x2a8] ss:$12 sps:$4 sm:$0xff]  }
 0x287   :  { %10121 = vmatprep.subr.bf16.mxu0 %v10876_v45  ;;  %v10932_v45 = vld [vmem:[#allocation14 + $0x1e8] ss:$12 sps:$4 sm:$0xff]  }
 0x289   :  { %4794 = vmatpush1.bf16.msra.mxu1 %v10868_v4  ;;  %v10933_v4 = vld [vmem:[#allocation14 + $0x698] ss:$12 sps:$4 sm:$0xff]  }
 0x28a   :  { %4795 = vmatprep.subr.bf16.mxu1 %v10875_v58  ;;  %10122 = vmatpush3.bf16.msra.mxu0 %v10877_v6  ;;  %v11646_v58 = vld [vmem:[#allocation4 + $0x50] ss:$-24 sps:$4 sm:$0x3f]  }
 0x28b   :  { %10123 = vmatprep.subr.bf16.mxu0 %v10881_v44  ;;  %v10935_v6 = vld [vmem:[#allocation14 + $0x740] ss:$12 sps:$4 sm:$0xff]   ;;  %v10936_v44 = vld [vmem:[#allocation14 + $0x1d0] ss:$12 sps:$4 sm:$0xff]  }
 0x28d   :  { %4796 = vmatpush1.bf16.msra.mxu1 %v10873_v55  ;;  %v11647_v55 = vld [vmem:[#allocation4 + $0xc] ss:$80 sps:$4 sm:$0x3f]  }
 0x28e   :  { %4797 = vmatprep.subr.bf16.mxu1 %v10880_v48  ;;  %10124 = vmatpush3.bf16.msra.mxu0 %v10882_v7  ;;  %v10934_v48 = vld [vmem:[#allocation14 + $0x290] ss:$12 sps:$4 sm:$0xff]   ;;  %v10939_v7 = vld [vmem:[#allocation14 + $0x728] ss:$12 sps:$4 sm:$0xff]  }
 0x28f   :  { %10125 = vmatprep.subr.bf16.mxu0 %v10886_v51  ;;  %v10941_v51 = vld [vmem:[#allocation14 + $0x668] ss:$12 sps:$4 sm:$0xff]  }
 0x291   :  { %4798 = vmatpush2.bf16.msra.mxu1 %v10878_v60  ;;  %v10938_v60 = vld [vmem:[#allocation14 + $0x278] ss:$12 sps:$4 sm:$0xff]  }
 0x292   :  { %4799 = vmatprep.subr.bf16.mxu1 %v10885_v11  ;;  %10126 = vmatpush3.bf16.msra.mxu0 %v10887_v12  ;;  %v10940_v11 = vld [vmem:[#allocation14 + $0x1b8] ss:$12 sps:$4 sm:$0xff]   ;;  %v10943_v12 = vld [vmem:[#allocation14 + $0x710] ss:$12 sps:$4 sm:$0xff]  }
 0x293   :  { %10155 = vmatprep.subr.bf16.mxu0 %v10891_v13  ;;  %v10945_v13 = vld [vmem:[#allocation14 + $0x650] ss:$12 sps:$4 sm:$0xff]  }
 0x295   :  { %4800 = vmatpush2.bf16.msra.mxu1 %v10883_v56  ;;  %4857 = vmatmul.mubr.bf16.vlgmr.msra.gmra.mxu0 %v11645_v28  ;;  %v10942_v56 = vld [vmem:[#allocation14 + $0x260] ss:$12 sps:$4 sm:$0xff]   ;;  %v10950_v28 = vld [vmem:[#allocation14 + $0x5f0] ss:$12 sps:$4 sm:$0xff]  }
 0x296   :  { %4801 = vmatprep.subr.bf16.mxu1 %v10890_v14  ;;  %10156 = vmatpush3.bf16.msra.mxu0 %v10892_v27  ;;  %v10944_v14 = vld [vmem:[#allocation14 + $0x1a0] ss:$12 sps:$4 sm:$0xff]   ;;  %v10947_v27 = vld [vmem:[#allocation14 + $0x6f8] ss:$12 sps:$4 sm:$0xff]  }
 0x297   :  { %4938 = vmatprep.mubr.bf16.mxu0 %v12372_v37  ;;  %10157 = vmatprep.subr.bf16.mxu0 %v10896_v53  ;;  %v10912_v37 = vld [vmem:[#allocation14 + $0x350] ss:$12 sps:$4 sm:$0xff]   ;;  %v10949_v53 = vld [vmem:[#allocation14 + $0x638] ss:$12 sps:$4 sm:$0xff]  }
 0x299   :  { %4802 = vmatpush2.bf16.msra.mxu1 %v10888_v19  ;;  %v10946_v19 = vld [vmem:[#allocation14 + $0x248] ss:$12 sps:$4 sm:$0xff]  }
 0x29a   :  { %4803 = vmatprep.subr.bf16.mxu1 %v10895_v24  ;;  %10158 = vmatpush3.bf16.msra.mxu0 %v10897_v25  ;;  %v10948_v24 = vld [vmem:[#allocation14 + $0x188] ss:$12 sps:$4 sm:$0xff]   ;;  %v10951_v25 = vld [vmem:[#allocation14 + $0x6e0] ss:$12 sps:$4 sm:$0xff]  }
 0x29b   :  { %10159 = vmatprep.subr.bf16.mxu0 %v10901_v31  ;;  %v10952_v31 = vld [vmem:[#allocation14 + $0x530] ss:$12 sps:$4 sm:$0xff]  }
 0x29d   :  { %4804 = vmatpush2.bf16.msra.mxu1 %v10893_v30  ;;  %v10953_v30 = vld [vmem:[#allocation14 + $0x620] ss:$12 sps:$4 sm:$0xff]  }
 0x29e   :  { %4805 = vmatprep.subr.bf16.mxu1 %v10900_v32  ;;  %10160 = vmatpush3.bf16.msra.mxu0 %v10902_v34  ;;  %v10954_v32 = vld [vmem:[#allocation14 + $0x5d8] ss:$12 sps:$4 sm:$0xff]   ;;  %v10955_v34 = vld [vmem:[#allocation14 + $0x6c8] ss:$12 sps:$4 sm:$0xff]  }
 0x29f   :  { %10161 = vmatprep.subr.bf16.mxu0 %v10906_v33  ;;  %v11648_v33 = vld [vmem:[#allocation4 + $0x34] ss:$-8 sps:$4 sm:$0x3f]  }
 0x2a1   :  { %4806 = vmatpush2.bf16.msra.mxu1 %v10898_v39  ;;  %v10957_v39 = vld [vmem:[#allocation14 + $0x608] ss:$12 sps:$4 sm:$0xff]  }
 0x2a2   :  { %4807 = vmatprep.subr.bf16.mxu1 %v10905_v1  ;;  %10162 = vmatpush3.bf16.msra.mxu0 %v10907_v8  ;;  %v10956_v1 = vld [vmem:[#allocation14 + $0x518] ss:$12 sps:$4 sm:$0xff]  }
 0x2a3   :  { %10163 = vmatprep.subr.bf16.mxu0 %v10911_v59  ;;  %v10988_v8 = vld [vmem:[#allocation17 + $0x74] ss:$8 sps:$4 sm:$0xff]   ;;  %v10986_v59 = vld [vmem:[#allocation17 + $0x70] ss:$8 sps:$4 sm:$0xff]  }
 0x2a5   :  { %4808 = vmatpush2.bf16.msra.mxu1 %v10903_v18  ;;  %v10958_v18 = vld [vmem:[#allocation14 + $0x5c0] ss:$12 sps:$4 sm:$0xff]  }
 0x2a6   :  { %4809 = vmatprep.subr.bf16.mxu1 %v10910_v22  ;;  %10164 = vmatpush3.bf16.msra.mxu0 %v10912_v37  ;;  %v10959_v22 = vld [vmem:[#allocation14 + $0x500] ss:$12 sps:$4 sm:$0xff]   ;;  %v10991_v37 = vld [vmem:[#allocation17 + $0x64] ss:$8 sps:$4 sm:$0xff]  }
 0x2a7   :  { %10165 = vmatprep.subr.bf16.mxu0 %v10916_v41  ;;  %v10961_v41 = vld [vmem:[#allocation14 + $0x4e8] ss:$12 sps:$4 sm:$0xff]  }
 0x2a9   :  { %4810 = vmatpush2.bf16.msra.mxu1 %v10908_v40  ;;  %v10960_v40 = vld [vmem:[#allocation14 + $0x5a8] ss:$12 sps:$4 sm:$0xff]  }
 0x2aa   :  { %4811 = vmatprep.subr.bf16.mxu1 %v10915_v23  ;;  %10166 = vmatpush3.bf16.msra.mxu0 %v10917_v42  ;;  %v10962_v23 = vld [vmem:[#allocation14 + $0x590] ss:$12 sps:$4 sm:$0xff]   ;;  %v10994_v42 = vld [vmem:[#allocation17 + $0x54] ss:$8 sps:$4 sm:$0xff]  }
 0x2ab   :  { %10167 = vmatprep.subr.bf16.mxu0 %v10919_v46  ;;  %v10963_v46 = vld [vmem:[#allocation14 + $0x4d0] ss:$12 sps:$4 sm:$0xff]  }
 0x2ad   :  { %4812 = vmatpush2.bf16.msra.mxu1 %v10913_v29  ;;  %v10992_v29 = vld [vmem:[#allocation17 + $0x50] ss:$8 sps:$4 sm:$0xff]  }
 0x2ae   :  { %10133 = vmatprep.subr.bf16.mxu1 %v10918_v36  ;;  %10168 = vmatpush3.bf16.msra.mxu0 %v10921_v3  ;;  %v10964_v36 = vld [vmem:[#allocation14 + $0x578] ss:$12 sps:$4 sm:$0xff]   ;;  %v10997_v3 = vld [vmem:[#allocation17 + $0x44] ss:$8 sps:$4 sm:$0xff]  }
 0x2af   :  { %10169 = vmatprep.subr.bf16.mxu0 %v10923_v50  ;;  %v10966_v50 = vld [vmem:[#allocation14 + $0x560] ss:$12 sps:$4 sm:$0xff]  }
 0x2b0   :  { %4814 = vmatmul.mubr.bf16.vlgmr.msra.gmra.mxu1 %v12385_v49 }
 0x2b1   :  { %10134 = vmatpush3.bf16.msra.mxu1 %v10920_v47  ;;  %4897 = vmatprep.mubr.bf16.mxu1 %v12368_v21  ;;  %v10937_v21 = vld [vmem:[#allocation14 + $0x680] ss:$12 sps:$4 sm:$0xff]  }
 0x2b2   :  { %10135 = vmatprep.subr.bf16.mxu1 %v10922_v15  ;;  %10170 = vmatpush3.bf16.msra.mxu0 %v10925_v38  ;;  %v10995_v47 = vld [vmem:[#allocation17 + $0x40] ss:$8 sps:$4 sm:$0xff]   ;;  %v11000_v15 = vld [vmem:[#allocation17 + $0x34] ss:$8 sps:$4 sm:$0xff]   ;;  %v10998_v38 = vld [vmem:[#allocation17 + $0x30] ss:$8 sps:$4 sm:$0xff]  }
 0x2b3   :  { %10199 = vmatprep.subr.bf16.mxu0 %v10927_v54  ;;  %v11003_v54 = vld [vmem:[#allocation17 + $0x24] ss:$8 sps:$4 sm:$0xff]  }
 0x2b5   :  { %10136 = vmatpush3.bf16.msra.mxu1 %v10924_v26  ;;  %4939 = vmatmul.mubr.bf16.vlgmr.msra.gmra.mxu0 %v11646_v58  ;;  %v10967_v26 = vld [vmem:[#allocation14 + $0x4a0] ss:$12 sps:$4 sm:$0xff]   ;;  %v10971_v58 = vld [vmem:[#allocation14 + $0x830] ss:$12 sps:$4 sm:$0xff]  }
 0x2b6   :  { %10137 = vmatprep.subr.bf16.mxu1 %v10926_v57  ;;  %10200 = vmatpush3.bf16.msra.mxu0 %v10929_v0  ;;  %v10968_v57 = vld [vmem:[#allocation14 + $0x548] ss:$12 sps:$4 sm:$0xff]   ;;  %v11001_v0 = vld [vmem:[#allocation17 + $0x20] ss:$8 sps:$4 sm:$0xff]  }
 0x2b7   :  { %5020 = vmatprep.mubr.bf16.mxu0 %v11647_v55  ;;  %10201 = vmatprep.subr.bf16.mxu0 %v10931_v5  ;;  %v11006_v5 = vld [vmem:[#allocation17 + $0x14] ss:$8 sps:$4 sm:$0xff]   ;;  %v11007_v55 = vld [vmem:[#allocation17] ss:$8 sps:$4 sm:$0xff]  }
 0x2b9   :  { %10138 = vmatpush3.bf16.msra.mxu1 %v10928_v63  ;;  %v10969_v63 = vld [vmem:[#allocation14 + $0x488] ss:$12 sps:$4 sm:$0xff]  }
 0x2ba   :  { %10139 = vmatprep.subr.bf16.mxu1 %v10930_v35  ;;  %10202 = vmatpush3.bf16.msra.mxu0 %v10933_v4  ;;  %v10970_v35 = vld [vmem:[#allocation14 + $0x8f0] ss:$12 sps:$4 sm:$0xff]  }
 0x2bb   :  { %10203 = vmatprep.subr.bf16.mxu0 %v10935_v6  ;;  %v11004_v4 = vld [vmem:[#allocation17 + $0x10] ss:$8 sps:$4 sm:$0xff]   ;;  %v11009_v6 = vld [vmem:[#allocation17 + $0x4] ss:$8 sps:$4 sm:$0xff]  }
 0x2bd   :  { %10140 = vmatpush3.bf16.msra.mxu1 %v10932_v45  ;;  %v10972_v45 = vld [vmem:[#allocation14 + $0x8d8] ss:$12 sps:$4 sm:$0xff]  }
 0x2be   :  { %10141 = vmatprep.subr.bf16.mxu1 %v10934_v48  ;;  %10204 = vmatpush3.bf16.msra.mxu0 %v10937_v21  ;;  %v10973_v48 = vld [vmem:[#allocation14 + $0x818] ss:$12 sps:$4 sm:$0xff]   ;;  %v10974_v21 = vld [vmem:[#allocation14 + $0x8c0] ss:$12 sps:$4 sm:$0xff]  }
 0x2bf   :  { %10205 = vmatprep.subr.bf16.mxu0 %v10939_v7  ;;  %v11014_v7 = vld [vmem:[#allocation17 + $0xf0] ss:$8 sps:$4 sm:$0xff]  }
 0x2c1   :  { %10142 = vmatpush3.bf16.msra.mxu1 %v10936_v44  ;;  %v11016_v44 = vld [vmem:[#allocation17 + $0xf4] ss:$8 sps:$4 sm:$0xff]  }
 0x2c2   :  { %10143 = vmatprep.subr.bf16.mxu1 %v10938_v60  ;;  %10206 = vmatpush3.bf16.msra.mxu0 %v10941_v51  ;;  %v10975_v60 = vld [vmem:[#allocation14 + $0x800] ss:$12 sps:$4 sm:$0xff]   ;;  %v10976_v51 = vld [vmem:[#allocation14 + $0x8a8] ss:$12 sps:$4 sm:$0xff]  }
 0x2c3   :  { %10207 = vmatprep.subr.bf16.mxu0 %v10943_v12  ;;  %v10977_v12 = vld [vmem:[#allocation14 + $0x7e8] ss:$12 sps:$4 sm:$0xff]  }
 0x2c5   :  { %10144 = vmatpush3.bf16.msra.mxu1 %v10940_v11  ;;  %v11021_v11 = vld [vmem:[#allocation17 + $0xe4] ss:$8 sps:$4 sm:$0xff]  }
 0x2c6   :  { %10145 = vmatprep.subr.bf16.mxu1 %v10942_v56  ;;  %10208 = vmatpush3.bf16.msra.mxu0 %v10945_v13  ;;  %v11024_v56 = vld [vmem:[#allocation17 + $0xd4] ss:$8 sps:$4 sm:$0xff]   ;;  %v11022_v13 = vld [vmem:[#allocation17 + $0xd0] ss:$8 sps:$4 sm:$0xff]  }
 0x2c7   :  { %10209 = vmatprep.subr.bf16.mxu0 %v10947_v27  ;;  %v10980_v27 = vld [vmem:[#allocation14 + $0x878] ss:$12 sps:$4 sm:$0xff]  }
 0x2c9   :  { %10146 = vmatpush3.bf16.msra.mxu1 %v10944_v14  ;;  %v10979_v14 = vld [vmem:[#allocation14 + $0x7d0] ss:$12 sps:$4 sm:$0xff]  }
 0x2ca   :  { %10147 = vmatprep.subr.bf16.mxu1 %v10946_v19  ;;  %10210 = vmatpush3.bf16.msra.mxu0 %v10949_v53  ;;  %v11027_v19 = vld [vmem:[#allocation17 + $0xc4] ss:$8 sps:$4 sm:$0xff]   ;;  %v11025_v53 = vld [vmem:[#allocation17 + $0xc0] ss:$8 sps:$4 sm:$0xff]  }
 0x2cb   :  { %10211 = vmatprep.subr.bf16.mxu0 %v10951_v25  ;;  %v10982_v25 = vld [vmem:[#allocation14 + $0x860] ss:$12 sps:$4 sm:$0xff]  }
 0x2cd   :  { %10148 = vmatpush3.bf16.msra.mxu1 %v10948_v24  ;;  %v10981_v24 = vld [vmem:[#allocation14 + $0x7b8] ss:$12 sps:$4 sm:$0xff]  }
 0x2ce   :  { %10177 = vmatprep.subr.bf16.mxu1 %v10950_v28  ;;  %10212 = vmatpush3.bf16.msra.mxu0 %v10953_v30  ;;  %v11030_v28 = vld [vmem:[#allocation17 + $0xb4] ss:$8 sps:$4 sm:$0xff]   ;;  %v11028_v30 = vld [vmem:[#allocation17 + $0xb0] ss:$8 sps:$4 sm:$0xff]  }
 0x2cf   :  { %10213 = vmatprep.subr.bf16.mxu0 %v10955_v34  ;;  %v11033_v34 = vld [vmem:[#allocation17 + $0xa4] ss:$8 sps:$4 sm:$0xff]  }
 0x2d0   :  { %4898 = vmatmul.mubr.bf16.vlgmr.msra.gmra.mxu1 %v12366_v20  ;;  %v10989_v20 = vld [vmem:[#allocation17 + $0x60] ss:$8 sps:$4 sm:$0xff]  }
 0x2d1   :  { %10178 = vmatpush3.bf16.msra.mxu1 %v10952_v31  ;;  %4979 = vmatprep.mubr.bf16.mxu1 %v11648_v33  ;;  %v10983_v31 = vld [vmem:[#allocation14 + $0x7a0] ss:$12 sps:$4 sm:$0xff]   ;;  %v10985_v33 = vld [vmem:[#allocation14 + $0x788] ss:$12 sps:$4 sm:$0xff]  }
 0x2d2   :  { %10179 = vmatprep.subr.bf16.mxu1 %v10954_v32  ;;  %10214 = vmatpush3.bf16.msra.mxu0 %v10957_v39  ;;  %v10984_v32 = vld [vmem:[#allocation14 + $0x848] ss:$12 sps:$4 sm:$0xff]   ;;  %v11031_v39 = vld [vmem:[#allocation17 + $0xa0] ss:$8 sps:$4 sm:$0xff]  }
 0x2d3   :  { %6191 = vmatprep.subr.bf16.mxu0 %v10988_v8  ;;  %v11034_v8 = vld [vmem:[#allocation17 + $0x90] ss:$8 sps:$4 sm:$0xff]  }
 0x2d5   :  { %10180 = vmatpush3.bf16.msra.mxu1 %v10956_v1  ;;  %5021 = vmatmul.mubr.bf16.vlgmr.msra.gmra.mxu0 %v12381_v43  ;;  %v10965_v43 = vld [vmem:[#allocation14 + $0x4b8] ss:$12 sps:$4 sm:$0xff]  }
 0x2d6   :  { %10181 = vmatprep.subr.bf16.mxu1 %v10958_v18  ;;  %6192 = vmatpush1.bf16.msra.mxu0 %v10986_v59  ;;  %v11036_v1 = vld [vmem:[#allocation17 + $0x94] ss:$8 sps:$4 sm:$0xff]   ;;  %v11039_v18 = vld [vmem:[#allocation17 + $0x84] ss:$8 sps:$4 sm:$0xff]   ;;  %v11037_v59 = vld [vmem:[#allocation17 + $0x80] ss:$8 sps:$4 sm:$0xff]  }
 0x2d7   :  { %6193 = vmatprep.subr.bf16.mxu0 %v10991_v37  ;;  %v11042_v37 = vld [vmem:[#allocation17 + $0x170] ss:$8 sps:$4 sm:$0xff]  }
 0x2d9   :  { %10182 = vmatpush3.bf16.msra.mxu1 %v10959_v22  ;;  %v11044_v22 = vld [vmem:[#allocation17 + $0x174] ss:$8 sps:$4 sm:$0xff]  }
 0x2da   :  { %10183 = vmatprep.subr.bf16.mxu1 %v10960_v40  ;;  %6194 = vmatpush1.bf16.msra.mxu0 %v10989_v20  ;;  %v11047_v40 = vld [vmem:[#allocation17 + $0x164] ss:$8 sps:$4 sm:$0xff]   ;;  %v11045_v20 = vld [vmem:[#allocation17 + $0x160] ss:$8 sps:$4 sm:$0xff]  }
 0x2db   :  { %6195 = vmatprep.subr.bf16.mxu0 %v10994_v42  ;;  %v11048_v42 = vld [vmem:[#allocation17 + $0x150] ss:$8 sps:$4 sm:$0xff]  }
 0x2dd   :  { %10184 = vmatpush3.bf16.msra.mxu1 %v10961_v41  ;;  %v11050_v41 = vld [vmem:[#allocation17 + $0x154] ss:$8 sps:$4 sm:$0xff]  }
 0x2de   :  { %10185 = vmatprep.subr.bf16.mxu1 %v10962_v23  ;;  %6196 = vmatpush1.bf16.msra.mxu0 %v10992_v29  ;;  %v11053_v23 = vld [vmem:[#allocation17 + $0x274] ss:$8 sps:$4 sm:$0xff]   ;;  %v11056_v29 = vld [vmem:[#allocation17 + $0x144] ss:$8 sps:$4 sm:$0xff]  }
 0x2df   :  { %6197 = vmatprep.subr.bf16.mxu0 %v10997_v3  ;;  %v11068_v3 = vld [vmem:[#allocation17 + $0x124] ss:$8 sps:$4 sm:$0xff]  }
 0x2e1   :  { %10186 = vmatpush3.bf16.msra.mxu1 %v10963_v46  ;;  %v11062_v46 = vld [vmem:[#allocation17 + $0x134] ss:$8 sps:$4 sm:$0xff]  }
 0x2e2   :  { %10187 = vmatprep.subr.bf16.mxu1 %v10964_v36  ;;  %6198 = vmatpush1.bf16.msra.mxu0 %v10995_v47  ;;  %v11060_v36 = vld [vmem:[#allocation17 + $0x130] ss:$8 sps:$4 sm:$0xff]   ;;  %v11066_v47 = vld [vmem:[#allocation17 + $0x120] ss:$8 sps:$4 sm:$0xff]  }
 0x2e3   :  { %6199 = vmatprep.subr.bf16.mxu0 %v11000_v15  ;;  %v4600_v15 = vpop.f32.mrf.mxu0 }
 0x2e5   :  { %10188 = vmatpush3.bf16.msra.mxu1 %v10965_v43  ;;  %v11074_v43 = vld [vmem:[#allocation17 + $0x114] ss:$8 sps:$4 sm:$0xff]  }
 0x2e6   :  { %10189 = vmatprep.subr.bf16.mxu1 %v10966_v50  ;;  %6200 = vmatpush1.bf16.msra.mxu0 %v10998_v38  ;;  %v11072_v50 = vld [vmem:[#allocation17 + $0x110] ss:$8 sps:$4 sm:$0xff]   ;;  %v4602_v38 = vpop.f32.mrf.mxu0 }
 0x2e7   :  { %6201 = vmatprep.subr.bf16.mxu0 %v11003_v54  ;;  %v11080_v54 = vld [vmem:[#allocation17 + $0x104] ss:$8 sps:$4 sm:$0xff]  }
 0x2e9   :  { %10190 = vmatpush3.bf16.msra.mxu1 %v10967_v26  ;;  %v11078_v26 = vld [vmem:[#allocation17 + $0x100] ss:$8 sps:$4 sm:$0xff]  }
 0x2ea   :  { %10191 = vmatprep.subr.bf16.mxu1 %v10968_v57  ;;  %6202 = vmatpush1.bf16.msra.mxu0 %v11001_v0  ;;  %v4604_v57 = vpop.f32.mrf.mxu0 }
 0x2eb   :  { %6203 = vmatprep.subr.bf16.mxu0 %v11006_v5 }
 0x2ec   :  { %v4606_v5 = vpop.f32.mrf.mxu0 }
 0x2ed   :  { %10192 = vmatpush3.bf16.msra.mxu1 %v10969_v63  ;;  %v11088_v63 = vld [vmem:[#allocation17 + $0x1f4] ss:$8 sps:$4 sm:$0xff]  }
 0x2ee   :  { %10221 = vmatprep.subr.bf16.mxu1 %v10970_v35  ;;  %6204 = vmatpush1.bf16.msra.mxu0 %v11004_v4  ;;  %v11086_v35 = vld [vmem:[#allocation17 + $0x1f0] ss:$8 sps:$4 sm:$0xff]  }
 0x2ef   :  { %6205 = vmatprep.subr.bf16.mxu0 %v11009_v6  ;;  %v11093_v6 = vld [vmem:[#allocation17 + $0x1e0] ss:$8 sps:$4 sm:$0xff]  }
 0x2f0   :  { %4980 = vmatmul.mubr.bf16.vlgmr.msra.gmra.mxu1 %v12375_v10  ;;  %v11019_v10 = vld [vmem:[#allocation17 + $0xe0] ss:$8 sps:$4 sm:$0xff]   ;;  %v4643_v0 = vpop.f32.mrf.mxu1 }
 0x2f1   :  { %10222 = vmatpush3.bf16.msra.mxu1 %v10971_v58  ;;  %5061 = vmatprep.mubr.bf16.mxu1 %v12377_v62  ;;  %v10978_v62 = vld [vmem:[#allocation14 + $0x890] ss:$12 sps:$4 sm:$0xff]  }
 0x2f2   :  { %10223 = vmatprep.subr.bf16.mxu1 %v10972_v45  ;;  %6206 = vmatpush1.bf16.msra.mxu0 %v11007_v55  ;;  %v4645_v4 = vpop.f32.mrf.mxu1  ;;  %v11095_v45 = vld [vmem:[#allocation17 + $0x1e4] ss:$8 sps:$4 sm:$0xff]  }
 0x2f3   :  { %6207 = vmatprep.subr.bf16.mxu0 %v11016_v44  ;;  %v11099_v44 = vld [vmem:[#allocation17 + $0x1d0] ss:$8 sps:$4 sm:$0xff]  }
 0x2f4   :  { %v4647_v55 = vpop.f32.mrf.mxu1 }
 0x2f5   :  { %10224 = vmatpush3.bf16.msra.mxu1 %v10973_v48  ;;  %v4686_v58 = vpop.f32.mrf.mxu0 }
 0x2f6   :  { %10225 = vmatprep.subr.bf16.mxu1 %v10974_v21  ;;  %6208 = vmatpush2.bf16.msra.mxu0 %v11014_v7  ;;  %v11101_v21 = vld [vmem:[#allocation17 + $0x1d4] ss:$8 sps:$4 sm:$0xff]  }
 0x2f7   :  { %6209 = vmatprep.subr.bf16.mxu0 %v11021_v11  ;;  %v4688_v48 = vpop.f32.mrf.mxu0  ;;  %v12394_v7 = vld [vmem:[#allocation15] sm:$0x7]  ;;  %v11107_v11 = vld [vmem:[#allocation17 + $0x1c4] ss:$8 sps:$4 sm:$0xff]  }
 0x2f9   :  { %10226 = vmatpush3.bf16.msra.mxu1 %v10975_v60  ;;  %v4649_v60 = vpop.f32.mrf.mxu1 }
 0x2fa   :  { %10227 = vmatprep.subr.bf16.mxu1 %v10976_v51  ;;  %6210 = vmatpush2.bf16.msra.mxu0 %v11019_v10  ;;  %v4690_v51 = vpop.f32.mrf.mxu0 }
 0x2fb   :  { %6211 = vmatprep.subr.bf16.mxu0 %v11024_v56 }
 0x2fc   :  { %v4692_v56 = vpop.f32.mrf.mxu0 }
 0x2fd   :  { %10228 = vmatpush3.bf16.msra.mxu1 %v10977_v12  ;;  %v11105_v12 = vld [vmem:[#allocation17 + $0x1c0] ss:$8 sps:$4 sm:$0xff]  }
 0x2fe   :  { %10229 = vmatprep.subr.bf16.mxu1 %v10978_v62  ;;  %6212 = vmatpush2.bf16.msra.mxu0 %v11022_v13  ;;  %v2958_v62 = vrot.slane %v12394_v7, %v12292_v17  ;;  %v2962_v13 = vrot.slane %v12394_v7, %v12297_v52 }
 0x2ff   :  { %6213 = vmatprep.subr.bf16.mxu0 %v11027_v19 }
 0x301   :  { %10230 = vmatpush3.bf16.msra.mxu1 %v10979_v14  ;;  %v11113_v14 = vld [vmem:[#allocation17 + $0x1b4] ss:$8 sps:$4 sm:$0xff]  }
 0x302   :  { %10231 = vmatprep.subr.bf16.mxu1 %v10980_v27  ;;  %6214 = vmatpush2.bf16.msra.mxu0 %v11025_v53  ;;  %v11111_v53 = vld [vmem:[#allocation17 + $0x1b0] ss:$8 sps:$4 sm:$0xff]  }
 0x303   :  { %6215 = vmatprep.subr.bf16.mxu0 %v11030_v28 }
 0x305   :  { %10232 = vmatpush3.bf16.msra.mxu1 %v10981_v24  ;;  %v4601_v24 = vadd.f32 %v4600_v15, %v2958_v62 }
 0x306   :  { %10233 = vmatprep.subr.bf16.mxu1 %v10982_v25  ;;  %6216 = vmatpush2.bf16.msra.mxu0 %v11028_v30  ;;  %v4603_v25 = vadd.f32 %v4602_v38, %v2962_v13  ;;  %v11119_v30 = vld [vmem:[#allocation17 + $0x1a4] ss:$8 sps:$4 sm:$0xff]  }
 0x307   :  { %6217 = vmatprep.subr.bf16.mxu0 %v11033_v34  ;;  %v4644_v28 = vadd.f32 %v4643_v0, %v4601_v24  ;;  %v11117_v34 = vld [vmem:[#allocation17 + $0x1a0] ss:$8 sps:$4 sm:$0xff]  }
 0x309   :  { %10234 = vmatpush3.bf16.msra.mxu1 %v10983_v31 }
 0x30a   :  { %10235 = vmatprep.subr.bf16.mxu1 %v10984_v32  ;;  %6218 = vmatpush2.bf16.msra.mxu0 %v11031_v39  ;;  %v4605_v39 = vadd.f32 %v4604_v57, %v2958_v62 }
 0x30b   :  { %6219 = vmatprep.subr.bf16.mxu0 %v11036_v1  ;;  %v4687_v1 = vadd.f32 %v4686_v58, %v4644_v28 }
 0x30d   :  { %10236 = vmatpush3.bf16.msra.mxu1 %v10985_v33  ;;  %v4646_v33 = vadd.f32 %v4645_v4, %v4603_v25 }
 0x30e   :  { %6220 = vmatpush2.bf16.msra.mxu0 %v11034_v8  ;;  %6232 = vmatprep.subr.bf16.mxu1 %v11044_v22  ;;  %v4607_v8 = vadd.f32 %v4606_v5, %v2962_v13 }
 0x30f   :  { %6221 = vmatprep.subr.bf16.mxu0 %v11039_v18  ;;  %v4648_v18 = vadd.f32 %v4647_v55, %v4605_v39 }
 0x310   :  { %5062 = vmatmul.mubr.bf16.vlgmr.msra.gmra.mxu1 %v12385_v49  ;;  %v11054_v49 = vld [vmem:[#allocation17 + $0x140] ss:$8 sps:$4 sm:$0xff]  }
 0x311   :  { %6233 = vmatpush1.bf16.msra.mxu1 %v11042_v37  ;;  %v11125_v37 = vld [vmem:[#allocation17 + $0x194] ss:$8 sps:$4 sm:$0xff]  }
 0x312   :  { %6222 = vmatpush2.bf16.msra.mxu0 %v11037_v59  ;;  %6234 = vmatprep.subr.bf16.mxu1 %v11047_v40  ;;  %v4689_v59 = vadd.f32 %v4688_v48, %v4646_v33 }
 0x313   :  { %6273 = vmatprep.subr.bf16.mxu0 %v11053_v23  ;;  %v4650_v23 = vadd.f32 %v4649_v60, %v4607_v8 }
 0x315   :  { %6235 = vmatpush1.bf16.msra.mxu1 %v11045_v20 }
 0x316   :  { %6236 = vmatprep.subr.bf16.mxu1 %v11050_v41  ;;  %v11123_v41 = vld [vmem:[#allocation17 + $0x190] ss:$8 sps:$4 sm:$0xff]  }
 0x319   :  { %6237 = vmatpush1.bf16.msra.mxu1 %v11048_v42  ;;  %v4691_v42 = vadd.f32 %v4690_v51, %v4648_v18 }
 0x31a   :  { %6238 = vmatprep.subr.bf16.mxu1 %v11056_v29 }
 0x31d   :  { %6239 = vmatpush1.bf16.msra.mxu1 %v11054_v49 }
 0x31e   :  { %6240 = vmatprep.subr.bf16.mxu1 %v11062_v46  ;;  %v11131_v46 = vld [vmem:[#allocation17 + $0x184] ss:$8 sps:$4 sm:$0xff]  }
 0x321   :  { %6241 = vmatpush1.bf16.msra.mxu1 %v11060_v36 }
 0x322   :  { %6242 = vmatprep.subr.bf16.mxu1 %v11068_v3  ;;  %v11129_v3 = vld [vmem:[#allocation17 + $0x180] ss:$8 sps:$4 sm:$0xff]  }
 0x325   :  { %6243 = vmatpush1.bf16.msra.mxu1 %v11066_v47  ;;  %v4693_v47 = vadd.f32 %v4692_v56, %v4650_v23  ;;  %v11059_v23 = vld [vmem:[#allocation17 + $0x264] ss:$8 sps:$4 sm:$0xff]  }
 0x326   :  { %6244 = vmatprep.subr.bf16.mxu1 %v11074_v43 }
 0x329   :  { %6245 = vmatpush1.bf16.msra.mxu1 %v11072_v50 }
 0x32a   :  { %6246 = vmatprep.subr.bf16.mxu1 %v11080_v54 }
 0x32d   :  { %6247 = vmatpush1.bf16.msra.mxu1 %v11078_v26 }
 0x32e   :  { %6248 = vmatprep.subr.bf16.mxu1 %v11088_v63 }
 0x330   :  { %v4729_v10 = vpop.f32.mrf.mxu1 }
 0x331   :  { %6249 = vmatpush2.bf16.msra.mxu1 %v11086_v35  ;;  %v4730_v22 = vadd.f32 %v4729_v10, %v4687_v1 }
 0x332   :  { %6250 = vmatprep.subr.bf16.mxu1 %v11095_v45  ;;  %v4731_v27 = vpop.f32.mrf.mxu1  ;;  %v11139_v45 = vld [vmem:[#allocation17 + $0x374] ss:$8 sps:$4 sm:$0xff]  }
 0x333   :  { %v4732_v29 = vadd.f32 %v4731_v27, %v4689_v59 }
 0x334   :  { %v4733_v31 = vpop.f32.mrf.mxu1 }
 0x335   :  { %6251 = vmatpush2.bf16.msra.mxu1 %v11093_v6  ;;  %v4772_v19 = vpop.f32.mrf.mxu0  ;;  %v4734_v43 = vadd.f32 %v4733_v31, %v4691_v42  ;;  %v11057_v42 = vld [vmem:[#allocation17 + $0x260] ss:$8 sps:$4 sm:$0xff]  }
 0x336   :  { %6252 = vmatprep.subr.bf16.mxu1 %v11101_v21  ;;  %v4735_v40 = vpop.f32.mrf.mxu1  ;;  %v4773_v49 = vadd.f32 %v4772_v19, %v4730_v22 }
 0x337   :  { %v4774_v32 = vpop.f32.mrf.mxu0  ;;  %v4736_v54 = vadd.f32 %v4735_v40, %v4693_v47  ;;  %v11075_v47 = vld [vmem:[#allocation17 + $0x230] ss:$8 sps:$4 sm:$0xff]  }
 0x338   :  { %v4775_v15 = vadd.f32 %v4774_v32, %v4732_v29  ;;  %v11065_v29 = vld [vmem:[#allocation17 + $0x254] ss:$8 sps:$4 sm:$0xff]  }
 0x339   :  { %6253 = vmatpush2.bf16.msra.mxu1 %v11099_v44  ;;  %v4776_v20 = vpop.f32.mrf.mxu0 }
 0x33a   :  { %6254 = vmatprep.subr.bf16.mxu1 %v11107_v11  ;;  %v4777_v57 = vadd.f32 %v4776_v20, %v4734_v43  ;;  %v11085_v43 = vld [vmem:[#allocation17 + $0x224] ss:$8 sps:$4 sm:$0xff]  }
 0x33b   :  { %v4778_v38 = vpop.f32.mrf.mxu0 }
 0x33c   :  { %v4779_v5 = vadd.f32 %v4778_v38, %v4736_v54  ;;  %v11090_v38 = vld [vmem:[#allocation17 + $0x210] ss:$8 sps:$4 sm:$0xff]   ;;  %v11098_v54 = vld [vmem:[#allocation17 + $0x204] ss:$8 sps:$4 sm:$0xff]  }
 0x33d   :  { %6255 = vmatpush2.bf16.msra.mxu1 %v11105_v12 }
 0x33e   :  { %6256 = vmatprep.subr.bf16.mxu1 %v11113_v14 }
 0x341   :  { %6257 = vmatpush2.bf16.msra.mxu1 %v11111_v53 }
 0x342   :  { %6258 = vmatprep.subr.bf16.mxu1 %v11119_v30 }
 0x345   :  { %6259 = vmatpush2.bf16.msra.mxu1 %v11117_v34 }
 0x346   :  { %6260 = vmatprep.subr.bf16.mxu1 %v11125_v37 }
 0x349   :  { %6261 = vmatpush2.bf16.msra.mxu1 %v11123_v41  ;;  %v11051_v41 = vld [vmem:[#allocation17 + $0x270] ss:$8 sps:$4 sm:$0xff]  }
 0x34a   :  { %6262 = vmatprep.subr.bf16.mxu1 %v11131_v46  ;;  %v11071_v46 = vld [vmem:[#allocation17 + $0x244] ss:$8 sps:$4 sm:$0xff]  }
 0x34d   :  { %6263 = vmatpush2.bf16.msra.mxu1 %v11129_v3  ;;  %v11077_v3 = vld [vmem:[#allocation17 + $0x234] ss:$8 sps:$4 sm:$0xff]  }
 0x34e   :  { %6314 = vmatprep.subr.bf16.mxu1 %v11139_v45  ;;  %v11108_v45 = vld [vmem:[#allocation17 + $0x2e0] ss:$8 sps:$4 sm:$0xff]  }
 0x370   :  { %v4815_v36 = vpop.f32.mrf.mxu1 }
 0x371   :  { %v4816_v50 = vadd.f32 %v4815_v36, %v4773_v49  ;;  %v11063_v49 = vld [vmem:[#allocation17 + $0x250] ss:$8 sps:$4 sm:$0xff]   ;;  %v11069_v36 = vld [vmem:[#allocation17 + $0x240] ss:$8 sps:$4 sm:$0xff]  }
 0x372   :  { %v4817_v26 = vpop.f32.mrf.mxu1 }
 0x373   :  { %v4818_v0 = vadd.f32 %v4817_v26, %v4775_v15  ;;  %v5070_v35 = vmax.f32 %v4816_v50, 0.0  ;;  %v11083_v15 = vld [vmem:[#allocation17 + $0x220] ss:$8 sps:$4 sm:$0xff]   ;;  %v11092_v50 = vld [vmem:[#allocation17 + $0x214] ss:$8 sps:$4 sm:$0xff]   ;;  %v10127_v26 = vpop.f32.mrf.mxu0 }
 0x374   :  { %v4819_v63 = vpop.f32.mrf.mxu1 }
 0x375   :  { %v5071_v4 = vmax.f32 %v4818_v0, 0.0  ;;  %v4820_v58 = vadd.f32 %v4819_v63, %v4777_v57  ;;  %v11096_v57 = vld [vmem:[#allocation17 + $0x200] ss:$8 sps:$4 sm:$0xff]   ;;  %v10128_v0 = vpop.f32.mrf.mxu0  ;;  %v11104_v63 = vld [vmem:[#allocation17 + $0x2f4] ss:$8 sps:$4 sm:$0xff]  }
 0x376   :  { %v4821_v6 = vpop.f32.mrf.mxu1 }
 0x377   :  { %v9994_v55 = vpack.c.bf16 %v5071_v4, %v5070_v35  ;;  %v4822_v48 = vadd.f32 %v4821_v6, %v4779_v5  ;;  %v5073_v21 = vmax.f32 %v4820_v58, 0.0  ;;  %v11102_v5 = vld [vmem:[#allocation17 + $0x2f0] ss:$8 sps:$4 sm:$0xff]   ;;  %v10130_v35 = vpop.f32.mrf.mxu0  ;;  %v11110_v58 = vld [vmem:[#allocation17 + $0x2e4] ss:$8 sps:$4 sm:$0xff]  }
 0x379   :  { %5096 = vst [vmem:[#allocation5] sm:$0xff] %v9994_v55  ;;  %v5074_v44 = vmax.f32 %v4822_v48, 0.0  ;;  %v10131_v6 = vpop.f32.mrf.mxu0  ;;  %v11116_v48 = vld [vmem:[#allocation17 + $0x2d4] ss:$8 sps:$4 sm:$0xff]  }
 0x37b   :  { %v9996_v60 = vpack.c.bf16 %v5074_v44, %v5073_v21  ;;  %v10171_v21 = vpop.f32.mrf.mxu0  ;;  %v11114_v44 = vld [vmem:[#allocation17 + $0x2d0] ss:$8 sps:$4 sm:$0xff]  }
 0x37d   :  { %5098 = vst [vmem:[#allocation5 + $0xc] sm:$0x33] %v9996_v60 }
 0x380   :  { %v5100_v51 = vld [vmem:[#allocation5] sm:$0x33]  ;;  %v5172_v62 = vld [vmem:[#allocation5] sm:$0x88] }
 0x381   :  { %v5104_v11 = vld [vmem:[#allocation5] sm:$0x66]  ;;  %5167 = vst [vmem:[#allocation6] sm:$0x33] %v5100_v51  ;;  %v9532_v19 = vrot.slane %v5172_v62, 9 }
 0x382   :  { %v9510_v10 = vcombine.low %v5104_v11, %v5104_v11  ;;  %v9511_v12 = vcombine.high %v5104_v11, %v5104_v11  ;;  %v11122_v51 = vld [vmem:[#allocation17 + $0x2c4] ss:$8 sps:$4 sm:$0xff]   ;;  %v10172_v11 = vpop.f32.mrf.mxu0 }
 0x384   :  { %v5148_v56 = vrot.slane %v9510_v10, 1  ;;  %v5149_v13 = vrot.slane %v9511_v12, 1  ;;  %v5174_v14 = vld [vmem:[#allocation5 + $0xc] sm:$0x11]  ;;  %v11120_v10 = vld [vmem:[#allocation17 + $0x2c0] ss:$8 sps:$4 sm:$0xff]  }
 0x385   :  { %v5176_v27 = vld [vmem:[#allocation5 + $0xc] sm:$0x33]  ;;  %v5250_v31 = vrot.slane %v5174_v14, 5 }
 0x386   :  { %v12400_v53 = vcombine.low %v5172_v62, %v5176_v27  ;;  %v12402_v24 = vcombine.high %v5172_v62, %v5176_v27  ;;  %v9520_v28 = vcombine.low %v5176_v27, %v5176_v27  ;;  %v9521_v30 = vcombine.high %v5176_v27, %v5176_v27  ;;  %v11128_v62 = vld [vmem:[#allocation17 + $0x2b4] ss:$8 sps:$4 sm:$0xff]   ;;  %v11126_v14 = vld [vmem:[#allocation17 + $0x2b0] ss:$8 sps:$4 sm:$0xff]   ;;  %v11134_v27 = vld [vmem:[#allocation17 + $0x2a4] ss:$8 sps:$4 sm:$0xff]  }
 0x387   :  { %v9515_v32 = vcombine.low %v5148_v56, %v5149_v13  ;;  %v5251_v33 = vsel %vm12404_vm2, %v9532_v19, %v5250_v31  ;;  %v10174_v56 = vpop.f32.mrf.mxu0  ;;  %v2966_v19 = vrot.slane %v12394_v7, %v12324_v9 }
 0x388   :  { %v5220_v34 = vrot.slane %v9520_v28, 5  ;;  %v5221_v39 = vrot.slane %v9521_v30, 5  ;;  %5273 = vst [vmem:[#allocation6] sm:$0xcc] %v5251_v33  ;;  %v10129_v28 = vadd.f32 %v10128_v0, %v10127_v26  ;;  %v11142_v33 = vld [vmem:[#allocation17 + $0x294] ss:$8 sps:$4 sm:$0xff]  }
 0x389   :  { %5170 = vst [vmem:[#allocation6 + $0x18] sm:$0x33] %v9515_v32  ;;  %v10175_v30 = vpop.f32.mrf.mxu0 }
 0x38a   :  { %v9525_v1 = vcombine.low %v5220_v34, %v5221_v39  ;;  %v9530_v8 = vcombine.high %v5220_v34, %v5221_v39  ;;  %v11132_v34 = vld [vmem:[#allocation17 + $0x2a0] ss:$8 sps:$4 sm:$0xff]  }
 0x38c   :  { %v9535_v18 = vrot.slane %v9525_v1, 9  ;;  %v5262_v59 = vrot.slane %v9530_v8, 5  ;;  %v4859_v1 = vadd.f32 %v10129_v28, %v2966_v19  ;;  %v10132_v8 = vadd.f32 %v10131_v6, %v10130_v35 }
 0x38e   :  { %v5263_v22 = vsel %vm12404_vm2, %v9535_v18, %v5262_v59  ;;  %v4862_v7 = vadd.f32 %v10132_v8, %v2966_v19  ;;  %v5206_v8 = vshll.u32 %v12402_v24, 16 }
 0x38f   :  { %5276 = vst [vmem:[#allocation6 + $0x18] sm:$0xcc] %v5263_v22  ;;  %v5278_v37 = vld [vmem:[#allocation6] sm:$0xff] }
 0x390   :  { %v9537_v40 = vcombine.low %v5278_v37, %v5278_v37  ;;  %v9538_v20 = vcombine.high %v5278_v37, %v5278_v37  ;;  %v10149_v4 = vpop.f32.mrf.mxu1  ;;  %v11140_v37 = vld [vmem:[#allocation17 + $0x290] ss:$8 sps:$4 sm:$0xff]  }
 0x392   :  { %6223 = vmatprep.mubr.bf16.mxu0 %v9538_v20  ;;  %v10150_v55 = vpop.f32.mrf.mxu1  ;;  %v11150_v20 = vld [vmem:[#allocation17 + $0x284] ss:$8 sps:$4 sm:$0xff]  }
 0x393   :  { %6224 = vmatmul.mubr.bf16.vlgmr.msra.gmra.mxu0 %v9537_v40  ;;  %v10151_v32 = vadd.f32 %v10150_v55, %v10149_v4 }
 0x394   :  { %6274 = vmatpush1.bf16.msra.mxu0 %v11051_v41  ;;  %v10152_v60 = vpop.f32.mrf.mxu1  ;;  %v10173_v41 = vadd.f32 %v10172_v11, %v10171_v21 }
 0x395   :  { %6275 = vmatprep.subr.bf16.mxu0 %v11059_v23  ;;  %v10215_v39 = vpop.f32.mrf.mxu0  ;;  %v4900_v59 = vadd.f32 %v10151_v32, %v4859_v1 }
 0x396   :  { %v10153_v12 = vpop.f32.mrf.mxu1 }
 0x397   :  { %v10154_v22 = vadd.f32 %v10153_v12, %v10152_v60  ;;  %v10216_v40 = vpop.f32.mrf.mxu0 }
 0x398   :  { %6276 = vmatpush1.bf16.msra.mxu0 %v11057_v42 }
 0x399   :  { %6277 = vmatprep.subr.bf16.mxu0 %v11065_v29  ;;  %v4903_v29 = vadd.f32 %v10154_v22, %v4862_v7 }
 0x39c   :  { %6278 = vmatpush1.bf16.msra.mxu0 %v11063_v49  ;;  %v4941_v49 = vadd.f32 %v10173_v41, %v4900_v59 }
 0x39d   :  { %6279 = vmatprep.subr.bf16.mxu0 %v11071_v46  ;;  %v11148_v46 = vld [vmem:[#allocation17 + $0x280] ss:$8 sps:$4 sm:$0xff]  }
 0x3a0   :  { %6280 = vmatpush1.bf16.msra.mxu0 %v11069_v36  ;;  %v10218_v36 = vpop.f32.mrf.mxu0 }
 0x3a1   :  { %6281 = vmatprep.subr.bf16.mxu0 %v11077_v3  ;;  %v11158_v3 = vld [vmem:[#allocation17 + $0x474] ss:$8 sps:$4 sm:$0xff]  }
 0x3a4   :  { %6282 = vmatpush1.bf16.msra.mxu0 %v11075_v47  ;;  %v10176_v47 = vadd.f32 %v10175_v30, %v10174_v56  ;;  %v5197_v30 = vshrl.u32 %v12400_v53, 16 }
 0x3a5   :  { %6283 = vmatprep.subr.bf16.mxu0 %v11085_v43 }
 0x3a6   :  { %v4944_v26 = vadd.f32 %v10176_v47, %v4903_v29  ;;  %v5208_v29 = vrot.slane %v5206_v8, 1  ;;  %v11179_v8 = vld [vmem:[#allocation17 + $0x314] ss:$8 sps:$4 sm:$0xff]  }
 0x3a8   :  { %6284 = vmatpush1.bf16.msra.mxu0 %v11083_v15 }
 0x3a9   :  { %6285 = vmatprep.subr.bf16.mxu0 %v11092_v50 }
 0x3ac   :  { %6286 = vmatpush1.bf16.msra.mxu0 %v11090_v38  ;;  %v10217_v38 = vadd.f32 %v10216_v40, %v10215_v39 }
 0x3ad   :  { %6287 = vmatprep.subr.bf16.mxu0 %v11098_v54  ;;  %v5102_v54 = vld [vmem:[#allocation5] sm:$0x77] }
 0x3b0   :  { %6288 = vmatpush1.bf16.msra.mxu0 %v11096_v57  ;;  %v10193_v13 = vpop.f32.mrf.mxu1  ;;  %v10219_v57 = vpop.f32.mrf.mxu0 }
 0x3b1   :  { %6289 = vmatprep.subr.bf16.mxu0 %v11104_v63 }
 0x3b2   :  { %v10194_v31 = vpop.f32.mrf.mxu1 }
 0x3b3   :  { %v10195_v23 = vadd.f32 %v10194_v31, %v10193_v13 }
 0x3b4   :  { %6290 = vmatpush2.bf16.msra.mxu0 %v11102_v5  ;;  %v10196_v18 = vpop.f32.mrf.mxu1 }
 0x3b5   :  { %6291 = vmatprep.subr.bf16.mxu0 %v11110_v58  ;;  %v4982_v43 = vadd.f32 %v10195_v23, %v4941_v49  ;;  %v9507_v58 = vcombine.low %v5102_v54, %v5102_v54 }
 0x3b6   :  { %v10197_v42 = vpop.f32.mrf.mxu1 }
 0x3b7   :  { %v10198_v15 = vadd.f32 %v10197_v42, %v10196_v18  ;;  %v5023_v5 = vadd.f32 %v10217_v38, %v4982_v43  ;;  %v5122_v60 = vshll.u32 %v9507_v58, 16 }
 0x3b8   :  { %6292 = vmatpush2.bf16.msra.mxu0 %v11108_v45  ;;  %v10220_v45 = vadd.f32 %v10219_v57, %v10218_v36 }
 0x3b9   :  { %6293 = vmatprep.subr.bf16.mxu0 %v11116_v48  ;;  %v4985_v63 = vadd.f32 %v10198_v15, %v4944_v26  ;;  %v5124_v56 = vrot.slane %v5122_v60, 1  ;;  %v5204_v15 = vshrl.u32 %v12402_v24, 16  ;;  %v11145_v60 = vld [vmem:[#allocation17 + $0x360] ss:$8 sps:$4 sm:$0xff]  }
 0x3bb   :  { %v5026_v21 = vadd.f32 %v10220_v45, %v4985_v63  ;;  %v12421_v45 = vld [vmem:[#allocation6 + $0x18] sm:$0xff] }
 0x3bc   :  { %6294 = vmatpush2.bf16.msra.mxu0 %v11114_v44 }
 0x3bd   :  { %6295 = vmatprep.subr.bf16.mxu0 %v11122_v51 }
 0x3c0   :  { %6296 = vmatpush2.bf16.msra.mxu0 %v11120_v10  ;;  %v5199_v10 = vshll.u32 %v12400_v53, 16 }
 0x3c1   :  { %6297 = vmatprep.subr.bf16.mxu0 %v11128_v62  ;;  %v9508_v62 = vcombine.high %v5102_v54, %v5102_v54 }
 0x3c3   :  { %v5129_v19 = vshll.u32 %v9508_v62, 16  ;;  %v5127_v40 = vshrl.u32 %v9508_v62, 16  ;;  %v11156_v62 = vld [vmem:[#allocation17 + $0x470] ss:$8 sps:$4 sm:$0xff]  }
 0x3c4   :  { %6298 = vmatpush2.bf16.msra.mxu0 %v11126_v14  ;;  %v5120_v14 = vshrl.u32 %v9507_v58, 16 }
 0x3c5   :  { %6299 = vmatprep.subr.bf16.mxu0 %v11134_v27  ;;  %v5201_v27 = vrot.slane %v5199_v10, 1  ;;  %v5131_v1 = vrot.slane %v5129_v19, 1  ;;  %v11151_v10 = vld [vmem:[#allocation17 + $0x350] ss:$8 sps:$4 sm:$0xff]   ;;  %v11167_v19 = vld [vmem:[#allocation17 + $0x334] ss:$8 sps:$4 sm:$0xff]  }
 0x3c6   :  { %v5125_v28 = vor.u32 %v5124_v56, %v5120_v14  ;;  %v11161_v56 = vld [vmem:[#allocation17 + $0x344] ss:$8 sps:$4 sm:$0xff]   ;;  %v11159_v14 = vld [vmem:[#allocation17 + $0x340] ss:$8 sps:$4 sm:$0xff]  }
 0x3c8   :  { %6300 = vmatpush2.bf16.msra.mxu0 %v11132_v34 }
 0x3c9   :  { %6301 = vmatprep.subr.bf16.mxu0 %v11142_v33  ;;  %v5202_v33 = vor.u32 %v5201_v27, %v5197_v30  ;;  %v11162_v27 = vld [vmem:[#allocation17 + $0x460] ss:$8 sps:$4 sm:$0xff]   ;;  %v11907_v30 = vmov 0  }
 0x3cc   :  { %6302 = vmatpush2.bf16.msra.mxu0 %v11140_v37 }
 0x3cd   :  { %6303 = vmatprep.subr.bf16.mxu0 %v11150_v20 }
 0x3d0   :  { %v10237_v50 = vpop.f32.mrf.mxu1  ;;  %6304 = vmatpush2.bf16.msra.mxu0 %v11148_v46  ;;  %v5132_v46 = vor.u32 %v5131_v1, %v5127_v40  ;;  %v11174_v1 = vld [vmem:[#allocation17 + $0x440] ss:$8 sps:$4 sm:$0xff]   ;;  %v11188_v40 = vld [vmem:[#allocation17 + $0x424] ss:$8 sps:$4 sm:$0xff]  }
 0x3d1   :  { %6355 = vmatprep.subr.bf16.mxu0 %v11158_v3 }
 0x3d2   :  { %v10238_v0 = vpop.f32.mrf.mxu1 }
 0x3d3   :  { %v10239_v35 = vadd.f32 %v10238_v0, %v10237_v50  ;;  %v5209_v0 = vor.u32 %v5208_v29, %v5204_v15  ;;  %v11197_v29 = vld [vmem:[#allocation17 + $0x3e4] ss:$8 sps:$4 sm:$0xff]  }
 0x3d4   :  { %v10240_v4 = vpop.f32.mrf.mxu1  ;;  %v11207_v15 = vld [vmem:[#allocation17 + $0x3c4] ss:$8 sps:$4 sm:$0xff]  }
 0x3d5   :  { %v5064_v6 = vadd.f32 %v10239_v35, %v5023_v5 }
 0x3d6   :  { %v10241_v55 = vpop.f32.mrf.mxu1 }
 0x3d7   :  { %v5072_v48 = vmax.f32 %v5064_v6, 0.0  ;;  %v10242_v44 = vadd.f32 %v10241_v55, %v10240_v4 }
 0x3d9   :  { %v9995_v51 = vpack.c.bf16 %v5072_v48, %v5072_v48  ;;  %v5067_v11 = vadd.f32 %v10242_v44, %v5026_v21  ;;  %v11137_v48 = vld [vmem:[#allocation17 + $0x370] ss:$8 sps:$4 sm:$0xff]   ;;  %v11147_v21 = vld [vmem:[#allocation17 + $0x364] ss:$8 sps:$4 sm:$0xff]   ;;  %v9544_v44 = vcombine.high %v12421_v45, %v12421_v45 }
 0x3db   :  { %5097 = vst [vmem:[#allocation5 + $0x8] sm:$0xf] %v9995_v51  ;;  %v5075_v12 = vmax.f32 %v5067_v11, 0.0  ;;  %v11153_v51 = vld [vmem:[#allocation17 + $0x354] ss:$8 sps:$4 sm:$0xff]  }
 0x3dd   :  { %v9997_v13 = vpack.c.bf16 %v5075_v12, %v5075_v12 }
 0x3df   :  { %5099 = vst [vmem:[#allocation5 + $0x14] sm:$0x3] %v9997_v13  ;;  %v11164_v13 = vld [vmem:[#allocation17 + $0x464] ss:$8 sps:$4 sm:$0xff]  }
 0x3e2   :  { %v5101_v31 = vld [vmem:[#allocation5 + $0x8] sm:$0x3]  ;;  %v5173_v18 = vld [vmem:[#allocation5 + $0x8] sm:$0x8] }
 0x3e3   :  { %v11081_v32 = vld [vmem:[#allocation5 + $0x8] ss:$0 sps:$4 sm:$0x77]   ;;  %v9513_v39 = vcombine.low %v5101_v31, %v5125_v28  ;;  %v9523_v37 = vcombine.low %v5173_v18, %v5202_v33  ;;  %v11165_v31 = vld [vmem:[#allocation17 + $0x330] ss:$8 sps:$4 sm:$0xff]  }
 0x3e4   :  { %v11082_v34 = vld [vmem:[#allocation5 + $0x8] ss:$0 sps:$4 sm:$0x66]   ;;  %v5136_v59 = vshll.u32 %v11081_v32, 16  ;;  %v5134_v41 = vshrl.u32 %v11081_v32, 16 }
 0x3e5   :  { %v5150_v22 = vrot.slane %v11082_v34, 1  ;;  %5168 = vst [vmem:[#allocation6 + $0x8] sm:$0x33] %v9513_v39  ;;  %v9533_v36 = vrot.slane %v9523_v37, 9  ;;  %v11170_v28 = vld [vmem:[#allocation17 + $0x454] ss:$8 sps:$4 sm:$0xff]  }
 0x3e6   :  { %v5175_v20 = vld [vmem:[#allocation5 + $0x14] sm:$0x1]  ;;  %v5138_v23 = vrot.slane %v5136_v59, 1  ;;  %v11168_v32 = vld [vmem:[#allocation17 + $0x450] ss:$8 sps:$4 sm:$0xff]  }
 0x3e7   :  { %v5177_v7 = vld [vmem:[#allocation5 + $0x14] sm:$0x3]  ;;  %v9516_v42 = vcombine.low %v5150_v22, %v5150_v22  ;;  %v9528_v49 = vsel %vm8943_vm7, %v5175_v20, %v5202_v33  ;;  %v11173_v34 = vld [vmem:[#allocation17 + $0x324] ss:$8 sps:$4 sm:$0xff]   ;;  %v11177_v59 = vld [vmem:[#allocation17 + $0x310] ss:$8 sps:$4 sm:$0xff]  }
 0x3e8   :  { %v9519_v53 = vcombine.low %v5173_v18, %v5177_v7  ;;  %v5254_v47 = vrot.slane %v9528_v49, 5  ;;  %v5139_v43 = vor.u32 %v5138_v23, %v5134_v41  ;;  %v11176_v39 = vld [vmem:[#allocation17 + $0x444] ss:$8 sps:$4 sm:$0xff]   ;;  %v11171_v33 = vld [vmem:[#allocation17 + $0x320] ss:$8 sps:$4 sm:$0xff]   ;;  %vm6498_vm7 = vcmask 1045509  }
 0x3e9   :  { %5171 = vst [vmem:[#allocation6 + $0x20] sm:$0x3] %v9516_v42  ;;  %v11182_v18 = vld [vmem:[#allocation17 + $0x434] ss:$8 sps:$4 sm:$0xff]   ;;  %v11180_v22 = vld [vmem:[#allocation17 + $0x430] ss:$8 sps:$4 sm:$0xff]   ;;  %vm12442_vm9 = vmand %vm6498_vm7, %vm6499_vm6 }
 0x3ea   :  { %v5213_v3 = vshll.u32 %v9519_v53, 16  ;;  %v5211_v50 = vshrl.u32 %v9519_v53, 16  ;;  %v5255_v26 = vsel %vm12404_vm2, %v9533_v36, %v5254_v47  ;;  %v9514_v54 = vcombine.low %v5132_v46, %v5139_v43  ;;  %v11185_v37 = vld [vmem:[#allocation17 + $0x304] ss:$8 sps:$4 sm:$0xff]   ;;  %v11183_v20 = vld [vmem:[#allocation17 + $0x300] ss:$8 sps:$4 sm:$0xff]   ;;  %vm6501_vm11 = vmor %vm12442_vm9, %vm12082_vm1 }
 0x3eb   :  { %5274 = vst [vmem:[#allocation6 + $0x8] sm:$0xcc] %v5255_v26  ;;  %v11186_v7 = vld [vmem:[#allocation17 + $0x420] ss:$8 sps:$4 sm:$0xff]   ;;  %v11191_v41 = vld [vmem:[#allocation17 + $0x3f4] ss:$8 sps:$4 sm:$0xff]   ;;  %vm12457_vm10 = vmand %vm6498_vm7, %vm6606_vm15 }
 0x3ec   :  { %v5215_v38 = vrot.slane %v5213_v3, 1  ;;  %5169 = vst [vmem:[#allocation6 + $0x10] sm:$0x33] %v9514_v54  ;;  %v11194_v23 = vld [vmem:[#allocation17 + $0x414] ss:$8 sps:$4 sm:$0xff]   ;;  %vm12468_vm5 = vmor %vm6504_vm12, %vm6501_vm11 }
 0x3ed   :  { %v11189_v42 = vld [vmem:[#allocation17 + $0x3f0] ss:$8 sps:$4 sm:$0xff]   ;;  %v11200_v49 = vld [vmem:[#allocation17 + $0x404] ss:$8 sps:$4 sm:$0xff]   ;;  %v11195_v46 = vld [vmem:[#allocation17 + $0x3e0] ss:$8 sps:$4 sm:$0xff]  }
 0x3ee   :  { %v5216_v57 = vor.u32 %v5215_v38, %v5211_v50  ;;  %v11192_v53 = vld [vmem:[#allocation17 + $0x410] ss:$8 sps:$4 sm:$0xff]   ;;  %v11198_v36 = vld [vmem:[#allocation17 + $0x400] ss:$8 sps:$4 sm:$0xff]   ;;  %v11203_v3 = vld [vmem:[#allocation17 + $0x3d4] ss:$8 sps:$4 sm:$0xff]  }
 0x3ef   :  { %v11201_v47 = vld [vmem:[#allocation17 + $0x3d0] ss:$8 sps:$4 sm:$0xff]   ;;  %v11205_v50 = vld [vmem:[#allocation17 + $0x3c0] ss:$8 sps:$4 sm:$0xff]   ;;  %v11210_v38 = vld [vmem:[#allocation17 + $0x3b4] ss:$8 sps:$4 sm:$0xff]  }
 0x3f0   :  { %v9524_v63 = vcombine.low %v5209_v0, %v5216_v57  ;;  %v9529_v5 = vcombine.high %v5209_v0, %v5216_v57  ;;  %v11204_v43 = vld [vmem:[#allocation6 + $0x20] ss:$0 sps:$4 sm:$0xff]   ;;  %v11208_v26 = vld [vmem:[#allocation17 + $0x3b0] ss:$8 sps:$4 sm:$0xff]   ;;  %v11211_v57 = vld [vmem:[#allocation17 + $0x3a0] ss:$8 sps:$4 sm:$0xff]  }
 0x3f1   :  { %v11213_v54 = vld [vmem:[#allocation17 + $0x3a4] ss:$8 sps:$4 sm:$0xff]   ;;  %v11216_v0 = vld [vmem:[#allocation17 + $0x394] ss:$8 sps:$4 sm:$0xff]   ;;  %vm6608_vm7 = vmor %vm12457_vm10, %vm12152_vm13  ;;  %vm6612_vm6 = vsmask.f32 7966 }
 0x3f2   :  { %v9534_v35 = vrot.slane %v9524_v63, 9  ;;  %v5258_v4 = vrot.slane %v9529_v5, 5  ;;  %v5279_v58 = vld [vmem:[#allocation6 + $0x8] sm:$0xff]  ;;  %vm6610_vm1 = vmand %vm6502_vm0, %vm6609_vm8 }
 0x3f3   :  { %v9539_v6 = vcombine.low %v5279_v58, %v5279_v58  ;;  %v9540_v55 = vcombine.high %v5279_v58, %v5279_v58  ;;  %v11214_v63 = vld [vmem:[#allocation17 + $0x390] ss:$8 sps:$4 sm:$0xff]   ;;  %v11219_v5 = vld [vmem:[#allocation17 + $0x384] ss:$8 sps:$4 sm:$0xff]   ;;  %vm6611_vm13 = vmor %vm6610_vm1, %vm6608_vm7 }
 0x3f4   :  { %v5259_v24 = vsel %vm12404_vm2, %v9534_v35, %v5258_v4  ;;  %v11217_v35 = vld [vmem:[#allocation17 + $0x380] ss:$8 sps:$4 sm:$0xff]   ;;  %v9543_v4 = vcombine.low %v12421_v45, %v12421_v45  ;;  %vm12474_vm2 = vmand %vm6506_vm3, %vm6507_vm14 }
 0x3f5   :  { %5275 = vst [vmem:[#allocation6 + $0x10] sm:$0xcc] %v5259_v24  ;;  %6264 = vmatprep.mubr.bf16.mxu1 %v9540_v55  ;;  %v11229_v45 = vld [vmem:[#allocation20 + $0x2c0] ss:$16 sps:$4 sm:$0xff]   ;;  %vm6509_vm4 = vmor %vm12474_vm2, %vm12468_vm5 }
 0x3f6   :  { %6265 = vmatmul.mubr.bf16.vlgmr.msra.gmra.mxu1 %v9539_v6  ;;  %vm6613_vm0 = vmand %vm6506_vm3, %vm6612_vm6 }
 0x3f7   :  { %6315 = vmatpush1.bf16.msra.mxu1 %v11137_v48  ;;  %6346 = vmatprep.mubr.bf16.mxu1 %v9544_v44  ;;  %v11222_v48 = vld [vmem:[#allocation20 + $0xe4] ss:$16 sps:$4 sm:$0xff]   ;;  %vm6614_vm15 = vmor %vm6613_vm0, %vm6611_vm13 }
 0x3f8   :  { %6316 = vmatprep.subr.bf16.mxu1 %v11147_v21  ;;  %v11220_v21 = vld [vmem:[#allocation20 + $0xe0] ss:$16 sps:$4 sm:$0xff]   ;;  %v11225_v44 = vld [vmem:[#allocation20 + $0x2e4] ss:$16 sps:$4 sm:$0xff]  }
 0x3fb   :  { %6317 = vmatpush1.bf16.msra.mxu1 %v11145_v60  ;;  %v11223_v60 = vld [vmem:[#allocation20 + $0x2e0] ss:$16 sps:$4 sm:$0xff]  }
 0x3fc   :  { %v5280_v11 = vld [vmem:[#allocation6 + $0x10] sm:$0xff]  ;;  %6318 = vmatprep.subr.bf16.mxu1 %v11153_v51 }
 0x3fd   :  { %v9541_v25 = vcombine.low %v5280_v11, %v5280_v11  ;;  %v9542_v12 = vcombine.high %v5280_v11, %v5280_v11  ;;  %v11226_v51 = vld [vmem:[#allocation20 + $0xc0] ss:$16 sps:$4 sm:$0xff]   ;;  %v11228_v11 = vld [vmem:[#allocation20 + $0xc4] ss:$16 sps:$4 sm:$0xff]  }
 0x3ff   :  { %6305 = vmatprep.mubr.bf16.mxu0 %v9542_v12  ;;  %6319 = vmatpush1.bf16.msra.mxu1 %v11151_v10  ;;  %v11231_v10 = vld [vmem:[#allocation20 + $0x2c4] ss:$16 sps:$4 sm:$0xff]   ;;  %v11240_v12 = vld [vmem:[#allocation20 + $0xa0] ss:$16 sps:$4 sm:$0xff]  }
 0x400   :  { %6306 = vmatmul.mubr.bf16.vlgmr.msra.gmra.mxu0 %v9541_v25  ;;  %6320 = vmatprep.subr.bf16.mxu1 %v11161_v56  ;;  %v11242_v25 = vld [vmem:[#allocation20 + $0xa4] ss:$16 sps:$4 sm:$0xff]   ;;  %v11243_v56 = vld [vmem:[#allocation20 + $0x2a0] ss:$16 sps:$4 sm:$0xff]  }
 0x401   :  { %6356 = vmatpush1.bf16.msra.mxu0 %v11156_v62  ;;  %6387 = vmatprep.mubr.bf16.mxu0 %v11907_v30  ;;  %v11245_v62 = vld [vmem:[#allocation20 + $0x2a4] ss:$16 sps:$4 sm:$0xff]   ;;  %v11252_v30 = vld [vmem:[#allocation20 + $0x60] ss:$16 sps:$4 sm:$0xff]  }
 0x402   :  { %6357 = vmatprep.subr.bf16.mxu0 %v11164_v13  ;;  %v11248_v13 = vld [vmem:[#allocation20 + $0x84] ss:$16 sps:$4 sm:$0xff]  }
 0x403   :  { %6321 = vmatpush1.bf16.msra.mxu1 %v11159_v14  ;;  %v11246_v14 = vld [vmem:[#allocation20 + $0x80] ss:$16 sps:$4 sm:$0xff]  }
 0x404   :  { %6322 = vmatprep.subr.bf16.mxu1 %v11167_v19  ;;  %v11249_v19 = vld [vmem:[#allocation20 + $0x280] ss:$16 sps:$4 sm:$0xff]  }
 0x405   :  { %6358 = vmatpush1.bf16.msra.mxu0 %v11162_v27  ;;  %v11251_v27 = vld [vmem:[#allocation20 + $0x284] ss:$16 sps:$4 sm:$0xff]  }
 0x406   :  { %6359 = vmatprep.subr.bf16.mxu0 %v11170_v28  ;;  %v11254_v28 = vld [vmem:[#allocation20 + $0x64] ss:$16 sps:$4 sm:$0xff]  }
 0x407   :  { %6323 = vmatpush1.bf16.msra.mxu1 %v11165_v31  ;;  %v11257_v31 = vld [vmem:[#allocation20 + $0x264] ss:$16 sps:$4 sm:$0xff]  }
 0x408   :  { %6324 = vmatprep.subr.bf16.mxu1 %v11173_v34  ;;  %v11260_v34 = vld [vmem:[#allocation20 + $0x44] ss:$16 sps:$4 sm:$0xff]  }
 0x409   :  { %6360 = vmatpush1.bf16.msra.mxu0 %v11168_v32  ;;  %v11255_v32 = vld [vmem:[#allocation20 + $0x260] ss:$16 sps:$4 sm:$0xff]  }
 0x40a   :  { %6361 = vmatprep.subr.bf16.mxu0 %v11176_v39  ;;  %v11258_v39 = vld [vmem:[#allocation20 + $0x40] ss:$16 sps:$4 sm:$0xff]  }
 0x40b   :  { %6325 = vmatpush1.bf16.msra.mxu1 %v11171_v33  ;;  %v11263_v33 = vld [vmem:[#allocation20 + $0x244] ss:$16 sps:$4 sm:$0xff]  }
 0x40c   :  { %6326 = vmatprep.subr.bf16.mxu1 %v11179_v8  ;;  %v11266_v8 = vld [vmem:[#allocation20 + $0x24] ss:$16 sps:$4 sm:$0xff]  }
 0x40d   :  { %6362 = vmatpush1.bf16.msra.mxu0 %v11174_v1  ;;  %v11261_v1 = vld [vmem:[#allocation20 + $0x240] ss:$16 sps:$4 sm:$0xff]  }
 0x40e   :  { %6363 = vmatprep.subr.bf16.mxu0 %v11182_v18  ;;  %v11264_v18 = vld [vmem:[#allocation20 + $0x20] ss:$16 sps:$4 sm:$0xff]  }
 0x40f   :  { %6327 = vmatpush1.bf16.msra.mxu1 %v11177_v59  ;;  %v11269_v59 = vld [vmem:[#allocation20 + $0x224] ss:$16 sps:$4 sm:$0xff]  }
 0x410   :  { %6328 = vmatprep.subr.bf16.mxu1 %v11185_v37  ;;  %v11272_v37 = vld [vmem:[#allocation20 + $0x4] ss:$16 sps:$4 sm:$0xff]  }
 0x411   :  { %6364 = vmatpush1.bf16.msra.mxu0 %v11180_v22  ;;  %v11267_v22 = vld [vmem:[#allocation20 + $0x220] ss:$16 sps:$4 sm:$0xff]  }
 0x412   :  { %6365 = vmatprep.subr.bf16.mxu0 %v11188_v40  ;;  %v11270_v40 = vld [vmem:[#allocation20] ss:$16 sps:$4 sm:$0xff]  }
 0x413   :  { %6329 = vmatpush1.bf16.msra.mxu1 %v11183_v20  ;;  %v11275_v20 = vld [vmem:[#allocation20 + $0x204] ss:$16 sps:$4 sm:$0xff]  }
 0x414   :  { %6330 = vmatprep.subr.bf16.mxu1 %v11191_v41  ;;  %v11278_v41 = vld [vmem:[#allocation20 + $0x1e4] ss:$16 sps:$4 sm:$0xff]  }
 0x415   :  { %6366 = vmatpush1.bf16.msra.mxu0 %v11186_v7  ;;  %v11273_v7 = vld [vmem:[#allocation20 + $0x200] ss:$16 sps:$4 sm:$0xff]  }
 0x416   :  { %6367 = vmatprep.subr.bf16.mxu0 %v11194_v23  ;;  %v11276_v23 = vld [vmem:[#allocation20 + $0x1e0] ss:$16 sps:$4 sm:$0xff]  }
 0x417   :  { %6331 = vmatpush2.bf16.msra.mxu1 %v11189_v42  ;;  %v11281_v42 = vld [vmem:[#allocation20 + $0x3e4] ss:$16 sps:$4 sm:$0xff]  }
 0x418   :  { %6332 = vmatprep.subr.bf16.mxu1 %v11197_v29  ;;  %v11284_v29 = vld [vmem:[#allocation20 + $0x1c4] ss:$16 sps:$4 sm:$0xff]  }
 0x419   :  { %6368 = vmatpush1.bf16.msra.mxu0 %v11192_v53  ;;  %v11279_v53 = vld [vmem:[#allocation20 + $0x3e0] ss:$16 sps:$4 sm:$0xff]  }
 0x41a   :  { %6369 = vmatprep.subr.bf16.mxu0 %v11200_v49  ;;  %v11282_v49 = vld [vmem:[#allocation20 + $0x1c0] ss:$16 sps:$4 sm:$0xff]  }
 0x41b   :  { %6333 = vmatpush2.bf16.msra.mxu1 %v11195_v46  ;;  %v11287_v46 = vld [vmem:[#allocation20 + $0x3c4] ss:$16 sps:$4 sm:$0xff]  }
 0x41c   :  { %6334 = vmatprep.subr.bf16.mxu1 %v11203_v3  ;;  %v11290_v3 = vld [vmem:[#allocation20 + $0x1a4] ss:$16 sps:$4 sm:$0xff]  }
 0x41d   :  { %6370 = vmatpush1.bf16.msra.mxu0 %v11198_v36  ;;  %v11285_v36 = vld [vmem:[#allocation20 + $0x3c0] ss:$16 sps:$4 sm:$0xff]  }
 0x41e   :  { %8276 = vmatprep.subr.bf16.mxu0 %v11225_v44  ;;  %v11317_v44 = vld [vmem:[#allocation20 + $0x324] ss:$16 sps:$4 sm:$0xff]  }
 0x41f   :  { %6335 = vmatpush2.bf16.msra.mxu1 %v11201_v47  ;;  %v11288_v47 = vld [vmem:[#allocation20 + $0x1a0] ss:$16 sps:$4 sm:$0xff]  }
 0x420   :  { %6388 = vmatmul.mubr.bf16.vlgmr.msra.gmra.mxu0 %v11204_v43  ;;  %6336 = vmatprep.subr.bf16.mxu1 %v11207_v15  ;;  %v11293_v43 = vld [vmem:[#allocation20 + $0x3a4] ss:$16 sps:$4 sm:$0xff]   ;;  %v11291_v15 = vld [vmem:[#allocation20 + $0x3a0] ss:$16 sps:$4 sm:$0xff]  }
 0x421   :  { %8277 = vmatpush1.bf16.msra.mxu0 %v11223_v60  ;;  %v11320_v60 = vld [vmem:[#allocation20 + $0x104] ss:$16 sps:$4 sm:$0xff]  }
 0x422   :  { %8278 = vmatprep.subr.bf16.mxu0 %v11231_v10  ;;  %v11318_v10 = vld [vmem:[#allocation20 + $0x100] ss:$16 sps:$4 sm:$0xff]  }
 0x423   :  { %6337 = vmatpush2.bf16.msra.mxu1 %v11205_v50  ;;  %v11296_v50 = vld [vmem:[#allocation20 + $0x184] ss:$16 sps:$4 sm:$0xff]  }
 0x424   :  { %6338 = vmatprep.subr.bf16.mxu1 %v11210_v38  ;;  %v11294_v38 = vld [vmem:[#allocation20 + $0x180] ss:$16 sps:$4 sm:$0xff]  }
 0x425   :  { %8279 = vmatpush1.bf16.msra.mxu0 %v11229_v45  ;;  %v11321_v45 = vld [vmem:[#allocation20 + $0x300] ss:$16 sps:$4 sm:$0xff]  }
 0x426   :  { %8280 = vmatprep.subr.bf16.mxu0 %v11245_v62 }
 0x427   :  { %6339 = vmatpush2.bf16.msra.mxu1 %v11208_v26  ;;  %v11299_v26 = vld [vmem:[#allocation20 + $0x384] ss:$16 sps:$4 sm:$0xff]  }
 0x428   :  { %6340 = vmatprep.subr.bf16.mxu1 %v11213_v54  ;;  %v11297_v54 = vld [vmem:[#allocation20 + $0x380] ss:$16 sps:$4 sm:$0xff]  }
 0x429   :  { %8281 = vmatpush1.bf16.msra.mxu0 %v11243_v56 }
 0x42a   :  { %8282 = vmatprep.subr.bf16.mxu0 %v11251_v27 }
 0x42b   :  { %6341 = vmatpush2.bf16.msra.mxu1 %v11211_v57  ;;  %v11302_v57 = vld [vmem:[#allocation20 + $0x164] ss:$16 sps:$4 sm:$0xff]  }
 0x42c   :  { %6342 = vmatprep.subr.bf16.mxu1 %v11216_v0  ;;  %v11300_v0 = vld [vmem:[#allocation20 + $0x160] ss:$16 sps:$4 sm:$0xff]  }
 0x42d   :  { %8283 = vmatpush1.bf16.msra.mxu0 %v11249_v19 }
 0x42e   :  { %8284 = vmatprep.subr.bf16.mxu0 %v11257_v31 }
 0x42f   :  { %6343 = vmatpush2.bf16.msra.mxu1 %v11214_v63  ;;  %v11305_v63 = vld [vmem:[#allocation20 + $0x364] ss:$16 sps:$4 sm:$0xff]  }
 0x430   :  { %6344 = vmatprep.subr.bf16.mxu1 %v11219_v5  ;;  %v11303_v5 = vld [vmem:[#allocation20 + $0x360] ss:$16 sps:$4 sm:$0xff]  }
 0x431   :  { %8285 = vmatpush1.bf16.msra.mxu0 %v11255_v32 }
 0x432   :  { %8286 = vmatprep.subr.bf16.mxu0 %v11263_v33  ;;  %v5427_v33 = vld [vmem:[#allocation18] sm:$0x3] }
 0x433   :  { %6345 = vmatpush2.bf16.msra.mxu1 %v11217_v35  ;;  %v11308_v35 = vld [vmem:[#allocation20 + $0x144] ss:$16 sps:$4 sm:$0xff]  }
 0x434   :  { %8235 = vmatprep.subr.bf16.mxu1 %v11222_v48  ;;  %v11312_v48 = vld [vmem:[#allocation20 + $0x120] ss:$16 sps:$4 sm:$0xff]  }
 0x435   :  { %8287 = vmatpush1.bf16.msra.mxu0 %v11261_v1  ;;  %v5432_v1 = vrot.slane %v5427_v33, %v12292_v17 }
 0x436   :  { %6347 = vmatmul.mubr.bf16.vlgmr.msra.gmra.mxu1 %v9543_v4  ;;  %8288 = vmatprep.subr.bf16.mxu0 %v11269_v59  ;;  %v11306_v4 = vld [vmem:[#allocation20 + $0x140] ss:$16 sps:$4 sm:$0xff]  }
 0x437   :  { %8236 = vmatpush1.bf16.msra.mxu1 %v11220_v21  ;;  %v11314_v21 = vld [vmem:[#allocation20 + $0x124] ss:$16 sps:$4 sm:$0xff]  }
 0x438   :  { %8237 = vmatprep.subr.bf16.mxu1 %v11228_v11  ;;  %v11323_v11 = vld [vmem:[#allocation20 + $0x304] ss:$16 sps:$4 sm:$0xff]  }
 0x439   :  { %8289 = vmatpush1.bf16.msra.mxu0 %v11267_v22 }
 0x43a   :  { %8290 = vmatprep.subr.bf16.mxu0 %v11275_v20 }
 0x43b   :  { %8238 = vmatpush1.bf16.msra.mxu1 %v11226_v51  ;;  %v11315_v51 = vld [vmem:[#allocation20 + $0x320] ss:$16 sps:$4 sm:$0xff]  }
 0x43c   :  { %8239 = vmatprep.subr.bf16.mxu1 %v11242_v25  ;;  %v11326_v25 = vld [vmem:[#allocation20 + $0x4e4] ss:$16 sps:$4 sm:$0xff]  }
 0x43d   :  { %8291 = vmatpush1.bf16.msra.mxu0 %v11273_v7 }
 0x43e   :  { %8292 = vmatprep.subr.bf16.mxu0 %v11281_v42 }
 0x43f   :  { %8240 = vmatpush1.bf16.msra.mxu1 %v11240_v12  ;;  %v11329_v12 = vld [vmem:[#allocation20 + $0x6e4] ss:$16 sps:$4 sm:$0xff]  }
 0x440   :  { %8241 = vmatprep.subr.bf16.mxu1 %v11248_v13 }
 0x441   :  { %8293 = vmatpush2.bf16.msra.mxu0 %v11279_v53 }
 0x442   :  { %8294 = vmatprep.subr.bf16.mxu0 %v11287_v46 }
 0x443   :  { %8242 = vmatpush1.bf16.msra.mxu1 %v11246_v14 }
 0x444   :  { %8243 = vmatprep.subr.bf16.mxu1 %v11254_v28 }
 0x445   :  { %8295 = vmatpush2.bf16.msra.mxu0 %v11285_v36 }
 0x446   :  { %8296 = vmatprep.subr.bf16.mxu0 %v11293_v43  ;;  %v11908_v43 = vmov 1966171168  }
 0x447   :  { %8244 = vmatpush1.bf16.msra.mxu1 %v11252_v30 }
 0x448   :  { %8245 = vmatprep.subr.bf16.mxu1 %v11260_v34 }
 0x449   :  { %8297 = vmatpush2.bf16.msra.mxu0 %v11291_v15  ;;  %v6440_v15 = vunpack.c.l.s4 %v11908_v43 }
 0x44a   :  { %8298 = vmatprep.subr.bf16.mxu0 %v11299_v26 }
 0x44b   :  { %8246 = vmatpush1.bf16.msra.mxu1 %v11258_v39 }
 0x44c   :  { %8247 = vmatprep.subr.bf16.mxu1 %v11266_v8  ;;  %v5436_v8 = vrot.slane %v5427_v33, %v12297_v52 }
 0x44d   :  { %8299 = vmatpush2.bf16.msra.mxu0 %v11297_v54 }
 0x44e   :  { %8300 = vmatprep.subr.bf16.mxu0 %v11305_v63 }
 0x44f   :  { %8248 = vmatpush1.bf16.msra.mxu1 %v11264_v18 }
 0x450   :  { %8249 = vmatprep.subr.bf16.mxu1 %v11272_v37 }
 0x451   :  { %8301 = vmatpush2.bf16.msra.mxu0 %v11303_v5 }
 0x453   :  { %v12429_v58 = vpop.f32.mrf.mxu0  ;;  %8250 = vmatpush1.bf16.msra.mxu1 %v11270_v40 }
 0x454   :  { %8251 = vmatprep.subr.bf16.mxu1 %v11278_v41  ;;  %v6226_v18 = vadd.f32 %v12429_v58, %v5432_v1  ;;  %v6441_v58 = vunpack.c.0.s8 %v6440_v15 }
 0x455   :  { %v12431_v24 = vpop.f32.mrf.mxu0 }
 0x456   :  { %v6228_v59 = vadd.f32 %v12431_v24, %v5436_v8 }
 0x457   :  { %v6229_v6 = vpop.f32.mrf.mxu0  ;;  %8252 = vmatpush2.bf16.msra.mxu1 %v11276_v23 }
 0x458   :  { %8253 = vmatprep.subr.bf16.mxu1 %v11284_v29  ;;  %v11309_v6 = vld [vmem:[#allocation20 + $0x340] ss:$16 sps:$4 sm:$0xff]  }
 0x459   :  { %v6230_v55 = vpop.f32.mrf.mxu0 }
 0x45a   :  { %v11311_v55 = vld [vmem:[#allocation20 + $0x344] ss:$16 sps:$4 sm:$0xff]  }
 0x45b   :  { %8254 = vmatpush2.bf16.msra.mxu1 %v11282_v49  ;;  %8302 = vmatprep.subr.bf16.mxu0 %v11311_v55 }
 0x45c   :  { %8255 = vmatprep.subr.bf16.mxu1 %v11290_v3  ;;  %8303 = vmatpush2.bf16.msra.mxu0 %v11309_v6 }
 0x45d   :  { %8304 = vmatprep.subr.bf16.mxu0 %v11317_v44 }
 0x45f   :  { %8256 = vmatpush2.bf16.msra.mxu1 %v11288_v47 }
 0x460   :  { %8257 = vmatprep.subr.bf16.mxu1 %v11296_v50  ;;  %8305 = vmatpush2.bf16.msra.mxu0 %v11315_v51 }
 0x461   :  { %8306 = vmatprep.subr.bf16.mxu0 %v11323_v11 }
 0x463   :  { %8258 = vmatpush2.bf16.msra.mxu1 %v11294_v38  ;;  %v12438_v38 = vsub.s32 %v6441_v58, %v12289_v2 }
 0x464   :  { %8259 = vmatprep.subr.bf16.mxu1 %v11302_v57  ;;  %8307 = vmatpush2.bf16.msra.mxu0 %v11321_v45 }
 0x465   :  { %8358 = vmatprep.subr.bf16.mxu0 %v11329_v12 }
 0x467   :  { %8260 = vmatpush2.bf16.msra.mxu1 %v11300_v0 }
 0x468   :  { %8261 = vmatprep.subr.bf16.mxu1 %v11308_v35 }
 0x46b   :  { %8262 = vmatpush2.bf16.msra.mxu1 %v11306_v4 }
 0x46c   :  { %8263 = vmatprep.subr.bf16.mxu1 %v11314_v21 }
 0x46f   :  { %8264 = vmatpush2.bf16.msra.mxu1 %v11312_v48 }
 0x470   :  { %8265 = vmatprep.subr.bf16.mxu1 %v11320_v60 }
 0x473   :  { %8266 = vmatpush2.bf16.msra.mxu1 %v11318_v10 }
 0x474   :  { %8317 = vmatprep.subr.bf16.mxu1 %v11326_v25 }
 0x4b6   :  { %v6266_v62 = vpop.f32.mrf.mxu1 }
 0x4b7   :  { %v6267_v22 = vadd.f32 %v6266_v62, %v6226_v18  ;;  %v11368_v18 = vld [vmem:[#allocation20 + $0x404] ss:$16 sps:$4 sm:$0xff]  }
 0x4b8   :  { %v6268_v56 = vpop.f32.mrf.mxu1 }
 0x4b9   :  { %v6269_v37 = vadd.f32 %v6268_v56, %v6228_v59 }
 0x4ba   :  { %v6270_v13 = vpop.f32.mrf.mxu1 }
 0x4bc   :  { %v6271_v14 = vpop.f32.mrf.mxu1 }
 0x4c0   :  { %v6307_v27 = vpop.f32.mrf.mxu0 }
 0x4c1   :  { %v6308_v40 = vadd.f32 %v6307_v27, %v6267_v22 }
 0x4c2   :  { %v6309_v19 = vpop.f32.mrf.mxu0 }
 0x4c3   :  { %v6310_v7 = vadd.f32 %v6309_v19, %v6269_v37 }
 0x4c4   :  { %v6311_v28 = vpop.f32.mrf.mxu0 }
 0x4c6   :  { %v6312_v30 = vpop.f32.mrf.mxu0 }
 0x4e0   :  { %v6389_v31 = vpop.f32.mrf.mxu0 }
 0x4e2   :  { %v6391_v32 = vpop.f32.mrf.mxu0 }
 0x4e4   :  { %v6393_v34 = vpop.f32.mrf.mxu0 }
 0x4e6   :  { %v6394_v39 = vpop.f32.mrf.mxu0 }
 0x4f6   :  { %v6348_v20 = vpop.f32.mrf.mxu1 }
 0x4f7   :  { %v6349_v41 = vadd.f32 %v6348_v20, %v6308_v40  ;;  %v11374_v40 = vld [vmem:[#allocation20 + $0x5e4] ss:$16 sps:$4 sm:$0xff]  }
 0x4f8   :  { %v6350_v23 = vpop.f32.mrf.mxu1 }
 0x4f9   :  { %v6390_v42 = vadd.f32 %v6389_v31, %v6349_v41  ;;  %v6351_v53 = vadd.f32 %v6350_v23, %v6310_v7  ;;  %v11372_v41 = vld [vmem:[#allocation20 + $0x5e0] ss:$16 sps:$4 sm:$0xff]  }
 0x4fa   :  { %v6352_v29 = vpop.f32.mrf.mxu1 }
 0x4fb   :  { %v6392_v49 = vadd.f32 %v6391_v32, %v6351_v53  ;;  %v6396_v36 = vmax.f32 %v6390_v42, 0.0 }
 0x4fc   :  { %v6353_v46 = vpop.f32.mrf.mxu1 }
 0x4fd   :  { %v6397_v3 = vmax.f32 %v6392_v49, 0.0 }
 0x4ff   :  { %v9998_v47 = vpack.c.bf16 %v6397_v3, %v6396_v36 }
 0x501   :  { %6406 = vst [vmem:[#allocation7] sm:$0xff] %v9998_v47  ;;  %v6510_v47 = vld [vmem:[#allocation8] sm:$0xff] }
 0x508   :  { %v6407_v24 = vld [vmem:[#allocation7] sm:$0x11]  ;;  %v6408_v50 = vld [vmem:[#allocation7] sm:$0x22]  ;;  %v6513_v26 = vld [vmem:[#allocation7] sm:$0x44] }
 0x509   :  { %v9691_v54 = vcombine.low %v6407_v24, %v6407_v24  ;;  %v9692_v57 = vcombine.high %v6407_v24, %v6407_v24  ;;  %v9693_v0 = vcombine.low %v6408_v50, %v6408_v50  ;;  %v9694_v63 = vcombine.high %v6408_v50, %v6408_v50  ;;  %v6514_v5 = vld [vmem:[#allocation7] sm:$0x88] }
 0x50a   :  { %v9695_v35 = vcombine.low %v6513_v26, %v6513_v26  ;;  %v9696_v4 = vcombine.high %v6513_v26, %v6513_v26  ;;  %v9697_v6 = vcombine.low %v6514_v5, %v6514_v5  ;;  %v9698_v62 = vcombine.high %v6514_v5, %v6514_v5  ;;  %v11324_v5 = vld [vmem:[#allocation20 + $0x4e0] ss:$16 sps:$4 sm:$0xff]  }
 0x50b   :  { %v6415_v48 = vshrl.u32 %v9691_v54, 16  ;;  %v6418_v21 = vshrl.u32 %v9692_v57, 16  ;;  %v6425_v44 = vrot.slane %v9693_v0, 1  ;;  %v6426_v60 = vrot.slane %v9694_v63, 1 }
 0x50c   :  { %v6428_v51 = vshrl.u32 %v9693_v0, 16  ;;  %v6432_v11 = vshrl.u32 %v9694_v63, 16  ;;  %v6521_v10 = vshrl.u32 %v9695_v35, 16  ;;  %v6524_v45 = vshrl.u32 %v9696_v4, 16 }
 0x50d   :  { %v6436_v25 = vcombine.low %v6415_v48, %v6418_v21  ;;  %v6437_v12 = vcombine.low %v6425_v44, %v6426_v60  ;;  %v6531_v56 = vrot.slane %v9697_v6, 1  ;;  %v6534_v27 = vshrl.u32 %v9697_v6, 16  ;;  %v11327_v48 = vld [vmem:[#allocation20 + $0x6e0] ss:$16 sps:$4 sm:$0xff]   ;;  %v11332_v21 = vld [vmem:[#allocation20 + $0x4c4] ss:$16 sps:$4 sm:$0xff]  }
 0x50e   :  { %v6430_v13 = vrot.slane %v6428_v51, 1  ;;  %v6434_v14 = vrot.slane %v6432_v11, 1  ;;  %v6542_v19 = vcombine.low %v6521_v10, %v6524_v45  ;;  %v6532_v30 = vrot.slane %v9698_v62, 1  ;;  %v11335_v60 = vld [vmem:[#allocation20 + $0x6c4] ss:$16 sps:$4 sm:$0xff]  }
 0x50f   :  { %v6452_v28 = vrot.slane %v6436_v25, %v12438_v38  ;;  %v6538_v31 = vshrl.u32 %v9698_v62, 16  ;;  %v6445_v34 = vrot.slane %v6407_v24, %v12438_v38  ;;  %v6536_v39 = vrot.slane %v6534_v27, 1  ;;  %v11330_v51 = vld [vmem:[#allocation20 + $0x4c0] ss:$16 sps:$4 sm:$0xff]   ;;  %v11341_v45 = vld [vmem:[#allocation20 + $0x6a4] ss:$16 sps:$4 sm:$0xff]  }
 0x510   :  { %v6438_v32 = vcombine.low %v6430_v13, %v6434_v14  ;;  %v6543_v1 = vcombine.low %v6531_v56, %v6532_v30  ;;  %v6558_v8 = vrot.slane %v6542_v19, %v12438_v38  ;;  %v6459_v59 = vrot.slane %v6437_v12, %v12438_v38  ;;  %v11333_v10 = vld [vmem:[#allocation20 + $0x6c0] ss:$16 sps:$4 sm:$0xff]   ;;  %v11344_v12 = vld [vmem:[#allocation20 + $0x484] ss:$16 sps:$4 sm:$0xff]  }
 0x511   :  { %v6540_v33 = vrot.slane %v6538_v31, 1  ;;  %v6467_v37 = vcombine.low %v6445_v34, %v6452_v28  ;;  %v6551_v7 = vrot.slane %v6513_v26, %v12438_v38  ;;  %v11336_v25 = vld [vmem:[#allocation20 + $0x4a0] ss:$16 sps:$4 sm:$0xff]   ;;  %v11347_v56 = vld [vmem:[#allocation20 + $0x684] ss:$16 sps:$4 sm:$0xff]  }
 0x512   :  { %v6466_v22 = vrot.slane %v6438_v32, %v12438_v38  ;;  %v6565_v16 = vrot.slane %v6543_v1, %v12438_v38  ;;  %v11339_v62 = vld [vmem:[#allocation20 + $0x6a0] ss:$16 sps:$4 sm:$0xff]   ;;  %v11350_v14 = vld [vmem:[#allocation20 + $0x464] ss:$16 sps:$4 sm:$0xff]  }
 0x513   :  { %v6544_v20 = vcombine.low %v6536_v39, %v6540_v33  ;;  %v6573_v53 = vcombine.low %v6551_v7, %v6558_v8  ;;  %v6475_v29 = vrot.slane %v6467_v37, %v12438_v38  ;;  %v11342_v13 = vld [vmem:[#allocation20 + $0x480] ss:$16 sps:$4 sm:$0xff]   ;;  %v11353_v19 = vld [vmem:[#allocation20 + $0x664] ss:$16 sps:$4 sm:$0xff]  }
 0x514   :  { %v6468_v23 = vcombine.low %v6459_v59, %v6466_v22  ;;  %v11345_v27 = vld [vmem:[#allocation20 + $0x680] ss:$16 sps:$4 sm:$0xff]   ;;  %v11356_v30 = vld [vmem:[#allocation20 + $0x444] ss:$16 sps:$4 sm:$0xff]  }
 0x515   :  { %v6572_v42 = vrot.slane %v6544_v20, %v12438_v38  ;;  %v6581_v36 = vrot.slane %v6573_v53, %v12438_v38  ;;  %v11348_v28 = vld [vmem:[#allocation20 + $0x460] ss:$16 sps:$4 sm:$0xff]   ;;  %v11359_v32 = vld [vmem:[#allocation20 + $0x644] ss:$16 sps:$4 sm:$0xff]  }
 0x516   :  { %v6482_v49 = vrot.slane %v6468_v23, %v12438_v38  ;;  %v11351_v31 = vld [vmem:[#allocation20 + $0x660] ss:$16 sps:$4 sm:$0xff]   ;;  %v11362_v39 = vld [vmem:[#allocation20 + $0x424] ss:$16 sps:$4 sm:$0xff]  }
 0x517   :  { %v6574_v46 = vcombine.low %v6565_v16, %v6572_v42  ;;  %v11354_v34 = vld [vmem:[#allocation20 + $0x440] ss:$16 sps:$4 sm:$0xff]   ;;  %v11365_v1 = vld [vmem:[#allocation20 + $0x624] ss:$16 sps:$4 sm:$0xff]  }
 0x518   :  { %v6483_v61 = vcombine.low %v6475_v29, %v6482_v49  ;;  %v11357_v33 = vld [vmem:[#allocation20 + $0x640] ss:$16 sps:$4 sm:$0xff]   ;;  %v11371_v22 = vld [vmem:[#allocation20 + $0x604] ss:$16 sps:$4 sm:$0xff]  }
 0x519   :  { %v6588_v3 = vrot.slane %v6574_v46, %v12438_v38  ;;  %v11360_v8 = vld [vmem:[#allocation20 + $0x420] ss:$16 sps:$4 sm:$0xff]   ;;  %v11377_v7 = vld [vmem:[#allocation20 + $0x7e4] ss:$16 sps:$4 sm:$0xff]  }
 0x51a   :  { %v6511_v15 = vsel %vm6509_vm4, %v6483_v61, %v6510_v47  ;;  %v11363_v59 = vld [vmem:[#allocation20 + $0x620] ss:$16 sps:$4 sm:$0xff]   ;;  %v11380_v23 = vld [vmem:[#allocation20 + $0x5c4] ss:$16 sps:$4 sm:$0xff]  }
 0x51b   :  { %v6589_v43 = vcombine.high %v6581_v36, %v6588_v3  ;;  %v11366_v37 = vld [vmem:[#allocation20 + $0x400] ss:$16 sps:$4 sm:$0xff]   ;;  %v11383_v42 = vld [vmem:[#allocation20 + $0x7c4] ss:$16 sps:$4 sm:$0xff]  }
 0x51c   :  { %v11369_v20 = vld [vmem:[#allocation20 + $0x600] ss:$16 sps:$4 sm:$0xff]   ;;  %v11386_v29 = vld [vmem:[#allocation20 + $0x5a4] ss:$16 sps:$4 sm:$0xff]  }
 0x51d   :  { %v6591_v58 = vshll.u32 %v6589_v43, 16  ;;  %v11375_v16 = vld [vmem:[#allocation20 + $0x7e0] ss:$16 sps:$4 sm:$0xff]   ;;  %v11389_v46 = vld [vmem:[#allocation20 + $0x7a4] ss:$16 sps:$4 sm:$0xff]  }
 0x51e   :  { %v11378_v53 = vld [vmem:[#allocation20 + $0x5c0] ss:$16 sps:$4 sm:$0xff]   ;;  %v11392_v36 = vld [vmem:[#allocation20 + $0x584] ss:$16 sps:$4 sm:$0xff]  }
 0x51f   :  { %v6616_v24 = vsel %vm6614_vm15, %v6591_v58, %v6511_v15  ;;  %v11381_v49 = vld [vmem:[#allocation20 + $0x7c0] ss:$16 sps:$4 sm:$0xff]   ;;  %v11395_v47 = vld [vmem:[#allocation20 + $0x784] ss:$16 sps:$4 sm:$0xff]  }
 0x520   :  { %6617 = vst [vmem:[#allocation8] sm:$0xff] %v6616_v24  ;;  %v6905_v50 = vrot.slane %v6616_v24, %v12438_v38  ;;  %v6898_v26 = vcombine.high %v6616_v24, %v6616_v24  ;;  %v11384_v61 = vld [vmem:[#allocation20 + $0x5a0] ss:$16 sps:$4 sm:$0xff]   ;;  %v11398_v15 = vld [vmem:[#allocation20 + $0x564] ss:$16 sps:$4 sm:$0xff]  }
 0x521   :  { %v11387_v3 = vld [vmem:[#allocation20 + $0x7a0] ss:$16 sps:$4 sm:$0xff]   ;;  %v11401_v24 = vld [vmem:[#allocation20 + $0x764] ss:$16 sps:$4 sm:$0xff]  }
 0x522   :  { %v6913_v54 = vcombine.high %v6905_v50, %v6905_v50  ;;  %v6912_v57 = vrot.slane %v6898_v26, %v12438_v38  ;;  %v12497_v0 = vrot.slane %v6905_v50, %v12438_v38  ;;  %v11390_v43 = vld [vmem:[#allocation20 + $0x580] ss:$16 sps:$4 sm:$0xff]   ;;  %v11404_v26 = vld [vmem:[#allocation20 + $0x544] ss:$16 sps:$4 sm:$0xff]  }
 0x523   :  { %v11393_v58 = vld [vmem:[#allocation20 + $0x780] ss:$16 sps:$4 sm:$0xff]  }
 0x524   :  { %v12500_v63 = vrot.slane %v6913_v54, %v12438_v38  ;;  %v6914_v35 = vcombine.high %v6912_v57, %v6912_v57  ;;  %v12503_v4 = vrot.slane %v6912_v57, %v12438_v38  ;;  %v12516_v44 = vcombine.high %v12497_v0, %v12497_v0  ;;  %v11396_v50 = vld [vmem:[#allocation20 + $0x560] ss:$16 sps:$4 sm:$0xff]   ;;  %v11407_v57 = vld [vmem:[#allocation20 + $0x744] ss:$16 sps:$4 sm:$0xff]  }
 0x525   :  { %v11399_v54 = vld [vmem:[#allocation20 + $0x760] ss:$16 sps:$4 sm:$0xff]  }
 0x526   :  { %8267 = vmatprep.mubr.bf16.mxu1 %v12500_v63  ;;  %v12508_v6 = vcombine.high %v12500_v63, %v12500_v63  ;;  %v12511_v55 = vrot.slane %v6914_v35, %v12438_v38  ;;  %v11338_v38 = vld [vmem:[#allocation20 + $0x4a4] ss:$16 sps:$4 sm:$0xff]  }
 0x527   :  { %8268 = vmatmul.mubr.bf16.vlgmr.msra.gmra.mxu1 %v12497_v0  ;;  %v11410_v35 = vld [vmem:[#allocation20 + $0x524] ss:$16 sps:$4 sm:$0xff]  }
 0x528   :  { %8318 = vmatpush1.bf16.msra.mxu1 %v11324_v5  ;;  %8308 = vmatprep.mubr.bf16.mxu0 %v12508_v6  ;;  %v12521_v11 = vcombine.high %v12511_v55, %v12511_v55  ;;  %v11402_v5 = vld [vmem:[#allocation20 + $0x540] ss:$16 sps:$4 sm:$0xff]  }
 0x529   :  { %8349 = vmatprep.mubr.bf16.mxu1 %v12511_v55  ;;  %8309 = vmatmul.mubr.bf16.vlgmr.msra.gmra.mxu0 %v12516_v44 }
 0x52a   :  { %8359 = vmatpush1.bf16.msra.mxu0 %v11327_v48  ;;  %8319 = vmatprep.subr.bf16.mxu1 %v11332_v21  ;;  %v11405_v48 = vld [vmem:[#allocation20 + $0x740] ss:$16 sps:$4 sm:$0xff]   ;;  %v11413_v21 = vld [vmem:[#allocation20 + $0x724] ss:$16 sps:$4 sm:$0xff]  }
 0x52b   :  { %8390 = vmatprep.mubr.bf16.mxu0 %v12521_v11  ;;  %8360 = vmatprep.subr.bf16.mxu0 %v11335_v60  ;;  %v11408_v60 = vld [vmem:[#allocation20 + $0x520] ss:$16 sps:$4 sm:$0xff]  }
 0x52c   :  { %8320 = vmatpush1.bf16.msra.mxu1 %v11330_v51  ;;  %v11416_v51 = vld [vmem:[#allocation20 + $0x504] ss:$16 sps:$4 sm:$0xff]  }
 0x52d   :  { %8321 = vmatprep.subr.bf16.mxu1 %v11338_v38  ;;  %v11411_v38 = vld [vmem:[#allocation20 + $0x720] ss:$16 sps:$4 sm:$0xff]  }
 0x52e   :  { %8361 = vmatpush1.bf16.msra.mxu0 %v11333_v10  ;;  %v11419_v10 = vld [vmem:[#allocation20 + $0x704] ss:$16 sps:$4 sm:$0xff]  }
 0x52f   :  { %8362 = vmatprep.subr.bf16.mxu0 %v11341_v45  ;;  %v11414_v45 = vld [vmem:[#allocation20 + $0x500] ss:$16 sps:$4 sm:$0xff]  }
 0x530   :  { %8322 = vmatpush1.bf16.msra.mxu1 %v11336_v25  ;;  %v11422_v25 = vld [vmem:[#allocation20 + $0xec] ss:$16 sps:$4 sm:$0xff]  }
 0x531   :  { %8323 = vmatprep.subr.bf16.mxu1 %v11344_v12  ;;  %v11417_v12 = vld [vmem:[#allocation20 + $0x700] ss:$16 sps:$4 sm:$0xff]  }
 0x532   :  { %8363 = vmatpush1.bf16.msra.mxu0 %v11339_v62  ;;  %v11425_v62 = vld [vmem:[#allocation20 + $0x2ec] ss:$16 sps:$4 sm:$0xff]  }
 0x533   :  { %8364 = vmatprep.subr.bf16.mxu0 %v11347_v56  ;;  %v11420_v56 = vld [vmem:[#allocation20 + $0xe8] ss:$16 sps:$4 sm:$0xff]  }
 0x534   :  { %8324 = vmatpush1.bf16.msra.mxu1 %v11342_v13  ;;  %v11428_v13 = vld [vmem:[#allocation20 + $0xcc] ss:$16 sps:$4 sm:$0xff]  }
 0x535   :  { %8325 = vmatprep.subr.bf16.mxu1 %v11350_v14  ;;  %v11423_v14 = vld [vmem:[#allocation20 + $0x2e8] ss:$16 sps:$4 sm:$0xff]  }
 0x536   :  { %8365 = vmatpush1.bf16.msra.mxu0 %v11345_v27  ;;  %v12529_v27 = vcombine.high %v12503_v4, %v12503_v4 }
 0x537   :  { %8366 = vmatprep.subr.bf16.mxu0 %v11353_v19  ;;  %v11431_v19 = vld [vmem:[#allocation20 + $0x2cc] ss:$16 sps:$4 sm:$0xff]  }
 0x538   :  { %8326 = vmatpush1.bf16.msra.mxu1 %v11348_v28  ;;  %v11426_v28 = vld [vmem:[#allocation20 + $0xc8] ss:$16 sps:$4 sm:$0xff]  }
 0x539   :  { %8327 = vmatprep.subr.bf16.mxu1 %v11356_v30  ;;  %v11434_v30 = vld [vmem:[#allocation20 + $0xac] ss:$16 sps:$4 sm:$0xff]  }
 0x53a   :  { %8367 = vmatpush1.bf16.msra.mxu0 %v11351_v31  ;;  %v11429_v31 = vld [vmem:[#allocation20 + $0x2c8] ss:$16 sps:$4 sm:$0xff]  }
 0x53b   :  { %8368 = vmatprep.subr.bf16.mxu0 %v11359_v32  ;;  %v11437_v32 = vld [vmem:[#allocation20 + $0x2ac] ss:$16 sps:$4 sm:$0xff]  }
 0x53c   :  { %8328 = vmatpush1.bf16.msra.mxu1 %v11354_v34  ;;  %v11432_v34 = vld [vmem:[#allocation20 + $0xa8] ss:$16 sps:$4 sm:$0xff]  }
 0x53d   :  { %8329 = vmatprep.subr.bf16.mxu1 %v11362_v39  ;;  %v11440_v39 = vld [vmem:[#allocation20 + $0x8c] ss:$16 sps:$4 sm:$0xff]  }
 0x53e   :  { %8369 = vmatpush1.bf16.msra.mxu0 %v11357_v33  ;;  %v11435_v33 = vld [vmem:[#allocation20 + $0x2a8] ss:$16 sps:$4 sm:$0xff]  }
 0x53f   :  { %8370 = vmatprep.subr.bf16.mxu0 %v11365_v1  ;;  %v11443_v1 = vld [vmem:[#allocation20 + $0x28c] ss:$16 sps:$4 sm:$0xff]  }
 0x540   :  { %8330 = vmatpush1.bf16.msra.mxu1 %v11360_v8  ;;  %v11446_v8 = vld [vmem:[#allocation20 + $0x6c] ss:$16 sps:$4 sm:$0xff]  }
 0x541   :  { %8331 = vmatprep.subr.bf16.mxu1 %v11368_v18  ;;  %v11441_v18 = vld [vmem:[#allocation20 + $0x288] ss:$16 sps:$4 sm:$0xff]  }
 0x542   :  { %8371 = vmatpush1.bf16.msra.mxu0 %v11363_v59  ;;  %v11449_v59 = vld [vmem:[#allocation20 + $0x26c] ss:$16 sps:$4 sm:$0xff]  }
 0x543   :  { %8372 = vmatprep.subr.bf16.mxu0 %v11371_v22  ;;  %v11452_v22 = vld [vmem:[#allocation20 + $0x4c] ss:$16 sps:$4 sm:$0xff]  }
 0x544   :  { %8332 = vmatpush1.bf16.msra.mxu1 %v11366_v37  ;;  %v11447_v37 = vld [vmem:[#allocation20 + $0x268] ss:$16 sps:$4 sm:$0xff]  }
 0x545   :  { %8333 = vmatprep.subr.bf16.mxu1 %v11374_v40  ;;  %v11455_v40 = vld [vmem:[#allocation20 + $0x24c] ss:$16 sps:$4 sm:$0xff]  }
 0x546   :  { %8373 = vmatpush1.bf16.msra.mxu0 %v11369_v20  ;;  %v11450_v20 = vld [vmem:[#allocation20 + $0x48] ss:$16 sps:$4 sm:$0xff]  }
 0x547   :  { %8374 = vmatprep.subr.bf16.mxu0 %v11377_v7  ;;  %v11458_v7 = vld [vmem:[#allocation20 + $0x2c] ss:$16 sps:$4 sm:$0xff]  }
 0x548   :  { %8334 = vmatpush2.bf16.msra.mxu1 %v11372_v41  ;;  %v11453_v41 = vld [vmem:[#allocation20 + $0x248] ss:$16 sps:$4 sm:$0xff]  }
 0x549   :  { %8335 = vmatprep.subr.bf16.mxu1 %v11380_v23  ;;  %v11461_v23 = vld [vmem:[#allocation20 + $0x22c] ss:$16 sps:$4 sm:$0xff]  }
 0x54a   :  { %8375 = vmatpush2.bf16.msra.mxu0 %v11375_v16  ;;  %v11456_v16 = vld [vmem:[#allocation20 + $0x28] ss:$16 sps:$4 sm:$0xff]  }
 0x54b   :  { %8376 = vmatprep.subr.bf16.mxu0 %v11383_v42  ;;  %v11464_v42 = vld [vmem:[#allocation20 + $0xc] ss:$16 sps:$4 sm:$0xff]  }
 0x54c   :  { %8336 = vmatpush2.bf16.msra.mxu1 %v11378_v53  ;;  %v11459_v53 = vld [vmem:[#allocation20 + $0x228] ss:$16 sps:$4 sm:$0xff]  }
 0x54d   :  { %8337 = vmatprep.subr.bf16.mxu1 %v11386_v29  ;;  %v11467_v29 = vld [vmem:[#allocation20 + $0x20c] ss:$16 sps:$4 sm:$0xff]  }
 0x54e   :  { %8377 = vmatpush2.bf16.msra.mxu0 %v11381_v49  ;;  %v11462_v49 = vld [vmem:[#allocation20 + $0x8] ss:$16 sps:$4 sm:$0xff]  }
 0x54f   :  { %8378 = vmatprep.subr.bf16.mxu0 %v11389_v46  ;;  %v11470_v46 = vld [vmem:[#allocation20 + $0x1ec] ss:$16 sps:$4 sm:$0xff]  }
 0x550   :  { %8338 = vmatpush2.bf16.msra.mxu1 %v11384_v61  ;;  %v11465_v61 = vld [vmem:[#allocation20 + $0x208] ss:$16 sps:$4 sm:$0xff]  }
 0x551   :  { %8339 = vmatprep.subr.bf16.mxu1 %v11392_v36  ;;  %v11473_v36 = vld [vmem:[#allocation20 + $0x3ec] ss:$16 sps:$4 sm:$0xff]  }
 0x552   :  { %8379 = vmatpush2.bf16.msra.mxu0 %v11387_v3  ;;  %v11468_v3 = vld [vmem:[#allocation20 + $0x1e8] ss:$16 sps:$4 sm:$0xff]  }
 0x553   :  { %8380 = vmatprep.subr.bf16.mxu0 %v11395_v47  ;;  %v11476_v47 = vld [vmem:[#allocation20 + $0x1cc] ss:$16 sps:$4 sm:$0xff]  }
 0x554   :  { %8340 = vmatpush2.bf16.msra.mxu1 %v11390_v43  ;;  %v11471_v43 = vld [vmem:[#allocation20 + $0x3e8] ss:$16 sps:$4 sm:$0xff]  }
 0x555   :  { %8341 = vmatprep.subr.bf16.mxu1 %v11398_v15  ;;  %v11479_v15 = vld [vmem:[#allocation20 + $0x3cc] ss:$16 sps:$4 sm:$0xff]  }
 0x556   :  { %8381 = vmatpush2.bf16.msra.mxu0 %v11393_v58  ;;  %v11474_v58 = vld [vmem:[#allocation20 + $0x1c8] ss:$16 sps:$4 sm:$0xff]  }
 0x557   :  { %8382 = vmatprep.subr.bf16.mxu0 %v11401_v24  ;;  %v11482_v24 = vld [vmem:[#allocation20 + $0x1ac] ss:$16 sps:$4 sm:$0xff]  }
 0x558   :  { %8342 = vmatpush2.bf16.msra.mxu1 %v11396_v50  ;;  %v11477_v50 = vld [vmem:[#allocation20 + $0x3c8] ss:$16 sps:$4 sm:$0xff]  }
 0x559   :  { %8343 = vmatprep.subr.bf16.mxu1 %v11404_v26  ;;  %v11485_v26 = vld [vmem:[#allocation20 + $0x3ac] ss:$16 sps:$4 sm:$0xff]  }
 0x55a   :  { %8383 = vmatpush2.bf16.msra.mxu0 %v11399_v54  ;;  %v11480_v54 = vld [vmem:[#allocation20 + $0x1a8] ss:$16 sps:$4 sm:$0xff]  }
 0x55b   :  { %8384 = vmatprep.subr.bf16.mxu0 %v11407_v57  ;;  %v11488_v57 = vld [vmem:[#allocation20 + $0x18c] ss:$16 sps:$4 sm:$0xff]  }
 0x55c   :  { %8344 = vmatpush2.bf16.msra.mxu1 %v11402_v5  ;;  %v11483_v5 = vld [vmem:[#allocation20 + $0x3a8] ss:$16 sps:$4 sm:$0xff]  }
 0x55d   :  { %8345 = vmatprep.subr.bf16.mxu1 %v11410_v35  ;;  %v11491_v35 = vld [vmem:[#allocation20 + $0x38c] ss:$16 sps:$4 sm:$0xff]  }
 0x55e   :  { %8385 = vmatpush2.bf16.msra.mxu0 %v11405_v48  ;;  %v11486_v48 = vld [vmem:[#allocation20 + $0x188] ss:$16 sps:$4 sm:$0xff]  }
 0x55f   :  { %8386 = vmatprep.subr.bf16.mxu0 %v11413_v21  ;;  %v11494_v21 = vld [vmem:[#allocation20 + $0x16c] ss:$16 sps:$4 sm:$0xff]  }
 0x560   :  { %8346 = vmatpush2.bf16.msra.mxu1 %v11408_v60  ;;  %v11489_v60 = vld [vmem:[#allocation20 + $0x388] ss:$16 sps:$4 sm:$0xff]  }
 0x561   :  { %8347 = vmatprep.subr.bf16.mxu1 %v11416_v51  ;;  %v11497_v51 = vld [vmem:[#allocation20 + $0x36c] ss:$16 sps:$4 sm:$0xff]  }
 0x562   :  { %8387 = vmatpush2.bf16.msra.mxu0 %v11411_v38  ;;  %v11492_v38 = vld [vmem:[#allocation20 + $0x168] ss:$16 sps:$4 sm:$0xff]  }
 0x563   :  { %8388 = vmatprep.subr.bf16.mxu0 %v11419_v10  ;;  %v11500_v10 = vld [vmem:[#allocation20 + $0x14c] ss:$16 sps:$4 sm:$0xff]  }
 0x564   :  { %8348 = vmatpush2.bf16.msra.mxu1 %v11414_v45  ;;  %v11495_v45 = vld [vmem:[#allocation20 + $0x368] ss:$16 sps:$4 sm:$0xff]  }
 0x565   :  { %8399 = vmatprep.subr.bf16.mxu1 %v11422_v25  ;;  %v11503_v25 = vld [vmem:[#allocation20 + $0x34c] ss:$16 sps:$4 sm:$0xff]  }
 0x566   :  { %8389 = vmatpush2.bf16.msra.mxu0 %v11417_v12  ;;  %v11498_v12 = vld [vmem:[#allocation20 + $0x148] ss:$16 sps:$4 sm:$0xff]  }
 0x567   :  { %8350 = vmatmul.mubr.bf16.vlgmr.msra.gmra.mxu1 %v12503_v4  ;;  %8440 = vmatprep.subr.bf16.mxu0 %v11425_v62  ;;  %v11506_v62 = vld [vmem:[#allocation20 + $0x12c] ss:$16 sps:$4 sm:$0xff]  }
 0x568   :  { %8400 = vmatpush1.bf16.msra.mxu1 %v11420_v56  ;;  %8431 = vmatprep.mubr.bf16.mxu1 %v12500_v63  ;;  %v11438_v63 = vld [vmem:[#allocation20 + $0x88] ss:$16 sps:$4 sm:$0xff]  }
 0x569   :  { %8391 = vmatmul.mubr.bf16.vlgmr.msra.gmra.mxu0 %v12529_v27  ;;  %8401 = vmatprep.subr.bf16.mxu1 %v11428_v13  ;;  %v11501_v56 = vld [vmem:[#allocation20 + $0x348] ss:$16 sps:$4 sm:$0xff]   ;;  %v11509_v13 = vld [vmem:[#allocation20 + $0x32c] ss:$16 sps:$4 sm:$0xff]  }
 0x56a   :  { %8441 = vmatpush1.bf16.msra.mxu0 %v11423_v14  ;;  %8472 = vmatprep.mubr.bf16.mxu0 %v12508_v6  ;;  %v11444_v6 = vld [vmem:[#allocation20 + $0x68] ss:$16 sps:$4 sm:$0xff]  }
 0x56b   :  { %8442 = vmatprep.subr.bf16.mxu0 %v11431_v19  ;;  %v11504_v14 = vld [vmem:[#allocation20 + $0x128] ss:$16 sps:$4 sm:$0xff]   ;;  %v11512_v19 = vld [vmem:[#allocation20 + $0x10c] ss:$16 sps:$4 sm:$0xff]  }
 0x56c   :  { %8402 = vmatpush1.bf16.msra.mxu1 %v11426_v28  ;;  %v11507_v28 = vld [vmem:[#allocation20 + $0x328] ss:$16 sps:$4 sm:$0xff]  }
 0x56d   :  { %8403 = vmatprep.subr.bf16.mxu1 %v11434_v30  ;;  %v11515_v30 = vld [vmem:[#allocation20 + $0x30c] ss:$16 sps:$4 sm:$0xff]  }
 0x56e   :  { %8443 = vmatpush1.bf16.msra.mxu0 %v11429_v31  ;;  %v11510_v31 = vld [vmem:[#allocation20 + $0x108] ss:$16 sps:$4 sm:$0xff]  }
 0x56f   :  { %8444 = vmatprep.subr.bf16.mxu0 %v11437_v32  ;;  %v11518_v32 = vld [vmem:[#allocation20 + $0x4ec] ss:$16 sps:$4 sm:$0xff]  }
 0x570   :  { %8404 = vmatpush1.bf16.msra.mxu1 %v11432_v34  ;;  %v11513_v34 = vld [vmem:[#allocation20 + $0x308] ss:$16 sps:$4 sm:$0xff]  }
 0x571   :  { %8405 = vmatprep.subr.bf16.mxu1 %v11440_v39  ;;  %v11521_v39 = vld [vmem:[#allocation20 + $0x6ec] ss:$16 sps:$4 sm:$0xff]  }
 0x572   :  { %8445 = vmatpush1.bf16.msra.mxu0 %v11435_v33  ;;  %v11516_v33 = vld [vmem:[#allocation20 + $0x4e8] ss:$16 sps:$4 sm:$0xff]  }
 0x573   :  { %8446 = vmatprep.subr.bf16.mxu0 %v11443_v1  ;;  %v11524_v1 = vld [vmem:[#allocation20 + $0x4cc] ss:$16 sps:$4 sm:$0xff]  }
 0x574   :  { %8406 = vmatpush1.bf16.msra.mxu1 %v11438_v63  ;;  %v11519_v63 = vld [vmem:[#allocation20 + $0x6e8] ss:$16 sps:$4 sm:$0xff]  }
 0x575   :  { %8407 = vmatprep.subr.bf16.mxu1 %v11446_v8  ;;  %v11527_v8 = vld [vmem:[#allocation20 + $0x6cc] ss:$16 sps:$4 sm:$0xff]  }
 0x576   :  { %8447 = vmatpush1.bf16.msra.mxu0 %v11441_v18  ;;  %v11522_v18 = vld [vmem:[#allocation20 + $0x4c8] ss:$16 sps:$4 sm:$0xff]  }
 0x577   :  { %8448 = vmatprep.subr.bf16.mxu0 %v11449_v59  ;;  %v11530_v59 = vld [vmem:[#allocation20 + $0x4ac] ss:$16 sps:$4 sm:$0xff]  }
 0x578   :  { %8408 = vmatpush1.bf16.msra.mxu1 %v11444_v6  ;;  %v11525_v6 = vld [vmem:[#allocation20 + $0x6c8] ss:$16 sps:$4 sm:$0xff]  }
 0x579   :  { %8409 = vmatprep.subr.bf16.mxu1 %v11452_v22  ;;  %v11533_v22 = vld [vmem:[#allocation20 + $0x6ac] ss:$16 sps:$4 sm:$0xff]  }
 0x57a   :  { %8449 = vmatpush1.bf16.msra.mxu0 %v11447_v37  ;;  %v11528_v37 = vld [vmem:[#allocation20 + $0x4a8] ss:$16 sps:$4 sm:$0xff]  }
 0x57b   :  { %8450 = vmatprep.subr.bf16.mxu0 %v11455_v40  ;;  %v11531_v40 = vld [vmem:[#allocation20 + $0x6a8] ss:$16 sps:$4 sm:$0xff]  }
 0x57c   :  { %8410 = vmatpush1.bf16.msra.mxu1 %v11450_v20  ;;  %v11539_v20 = vld [vmem:[#allocation20 + $0x68c] ss:$16 sps:$4 sm:$0xff]  }
 0x57d   :  { %8411 = vmatprep.subr.bf16.mxu1 %v11458_v7  ;;  %v11537_v7 = vld [vmem:[#allocation20 + $0x688] ss:$16 sps:$4 sm:$0xff]  }
 0x57e   :  { %8451 = vmatpush1.bf16.msra.mxu0 %v11453_v41  ;;  %v11545_v41 = vld [vmem:[#allocation20 + $0x66c] ss:$16 sps:$4 sm:$0xff]  }
 0x57f   :  { %8452 = vmatprep.subr.bf16.mxu0 %v11461_v23  ;;  %v11548_v23 = vld [vmem:[#allocation20 + $0x44c] ss:$16 sps:$4 sm:$0xff]  }
 0x580   :  { %8412 = vmatpush1.bf16.msra.mxu1 %v11456_v16  ;;  %v11543_v16 = vld [vmem:[#allocation20 + $0x668] ss:$16 sps:$4 sm:$0xff]  }
 0x581   :  { %8413 = vmatprep.subr.bf16.mxu1 %v11464_v42  ;;  %v11551_v42 = vld [vmem:[#allocation20 + $0x64c] ss:$16 sps:$4 sm:$0xff]  }
 0x582   :  { %8453 = vmatpush1.bf16.msra.mxu0 %v11459_v53  ;;  %v11546_v53 = vld [vmem:[#allocation20 + $0x448] ss:$16 sps:$4 sm:$0xff]  }
 0x583   :  { %8454 = vmatprep.subr.bf16.mxu0 %v11467_v29  ;;  %v11554_v29 = vld [vmem:[#allocation20 + $0x42c] ss:$16 sps:$4 sm:$0xff]  }
 0x584   :  { %8414 = vmatpush1.bf16.msra.mxu1 %v11462_v49  ;;  %v11549_v49 = vld [vmem:[#allocation20 + $0x648] ss:$16 sps:$4 sm:$0xff]  }
 0x585   :  { %8415 = vmatprep.subr.bf16.mxu1 %v11470_v46  ;;  %v11557_v46 = vld [vmem:[#allocation20 + $0x62c] ss:$16 sps:$4 sm:$0xff]  }
 0x586   :  { %8455 = vmatpush1.bf16.msra.mxu0 %v11465_v61  ;;  %v11552_v61 = vld [vmem:[#allocation20 + $0x428] ss:$16 sps:$4 sm:$0xff]  }
 0x587   :  { %8456 = vmatprep.subr.bf16.mxu0 %v11473_v36  ;;  %v11560_v36 = vld [vmem:[#allocation20 + $0x40c] ss:$16 sps:$4 sm:$0xff]  }
 0x588   :  { %8416 = vmatpush2.bf16.msra.mxu1 %v11468_v3  ;;  %v11555_v3 = vld [vmem:[#allocation20 + $0x628] ss:$16 sps:$4 sm:$0xff]  }
 0x589   :  { %8417 = vmatprep.subr.bf16.mxu1 %v11476_v47  ;;  %v11563_v47 = vld [vmem:[#allocation20 + $0x60c] ss:$16 sps:$4 sm:$0xff]  }
 0x58a   :  { %8457 = vmatpush2.bf16.msra.mxu0 %v11471_v43  ;;  %v11558_v43 = vld [vmem:[#allocation20 + $0x408] ss:$16 sps:$4 sm:$0xff]  }
 0x58b   :  { %8458 = vmatprep.subr.bf16.mxu0 %v11479_v15  ;;  %v11566_v15 = vld [vmem:[#allocation20 + $0x5ec] ss:$16 sps:$4 sm:$0xff]  }
 0x58c   :  { %8418 = vmatpush2.bf16.msra.mxu1 %v11474_v58  ;;  %v11561_v58 = vld [vmem:[#allocation20 + $0x608] ss:$16 sps:$4 sm:$0xff]  }
 0x58d   :  { %8419 = vmatprep.subr.bf16.mxu1 %v11482_v24  ;;  %v11569_v24 = vld [vmem:[#allocation20 + $0x7ec] ss:$16 sps:$4 sm:$0xff]  }
 0x58e   :  { %8459 = vmatpush2.bf16.msra.mxu0 %v11477_v50  ;;  %v11564_v50 = vld [vmem:[#allocation20 + $0x5e8] ss:$16 sps:$4 sm:$0xff]  }
 0x58f   :  { %8460 = vmatprep.subr.bf16.mxu0 %v11485_v26  ;;  %v11572_v26 = vld [vmem:[#allocation20 + $0x5cc] ss:$16 sps:$4 sm:$0xff]  }
 0x590   :  { %8420 = vmatpush2.bf16.msra.mxu1 %v11480_v54  ;;  %v11567_v54 = vld [vmem:[#allocation20 + $0x7e8] ss:$16 sps:$4 sm:$0xff]  }
 0x591   :  { %8421 = vmatprep.subr.bf16.mxu1 %v11488_v57  ;;  %v11575_v57 = vld [vmem:[#allocation20 + $0x7cc] ss:$16 sps:$4 sm:$0xff]  }
 0x592   :  { %8461 = vmatpush2.bf16.msra.mxu0 %v11483_v5  ;;  %v11570_v5 = vld [vmem:[#allocation20 + $0x5c8] ss:$16 sps:$4 sm:$0xff]  }
 0x593   :  { %8462 = vmatprep.subr.bf16.mxu0 %v11491_v35  ;;  %v11578_v35 = vld [vmem:[#allocation20 + $0x5ac] ss:$16 sps:$4 sm:$0xff]  }
 0x594   :  { %8422 = vmatpush2.bf16.msra.mxu1 %v11486_v48  ;;  %v11573_v48 = vld [vmem:[#allocation20 + $0x7c8] ss:$16 sps:$4 sm:$0xff]  }
 0x595   :  { %8423 = vmatprep.subr.bf16.mxu1 %v11494_v21  ;;  %v11581_v21 = vld [vmem:[#allocation20 + $0x7ac] ss:$16 sps:$4 sm:$0xff]  }
 0x596   :  { %8463 = vmatpush2.bf16.msra.mxu0 %v11489_v60  ;;  %v11576_v60 = vld [vmem:[#allocation20 + $0x5a8] ss:$16 sps:$4 sm:$0xff]  }
 0x597   :  { %8464 = vmatprep.subr.bf16.mxu0 %v11497_v51  ;;  %v11584_v51 = vld [vmem:[#allocation20 + $0x58c] ss:$16 sps:$4 sm:$0xff]  }
 0x598   :  { %8424 = vmatpush2.bf16.msra.mxu1 %v11492_v38  ;;  %v11579_v38 = vld [vmem:[#allocation20 + $0x7a8] ss:$16 sps:$4 sm:$0xff]  }
 0x599   :  { %8425 = vmatprep.subr.bf16.mxu1 %v11500_v10  ;;  %v11587_v10 = vld [vmem:[#allocation20 + $0x78c] ss:$16 sps:$4 sm:$0xff]  }
 0x59a   :  { %8465 = vmatpush2.bf16.msra.mxu0 %v11495_v45  ;;  %v11582_v45 = vld [vmem:[#allocation20 + $0x588] ss:$16 sps:$4 sm:$0xff]  }
 0x59b   :  { %8466 = vmatprep.subr.bf16.mxu0 %v11503_v25  ;;  %v11590_v25 = vld [vmem:[#allocation20 + $0x56c] ss:$16 sps:$4 sm:$0xff]  }
 0x59c   :  { %8426 = vmatpush2.bf16.msra.mxu1 %v11498_v12  ;;  %v11585_v12 = vld [vmem:[#allocation20 + $0x788] ss:$16 sps:$4 sm:$0xff]  }
 0x59d   :  { %8427 = vmatprep.subr.bf16.mxu1 %v11506_v62  ;;  %v11593_v62 = vld [vmem:[#allocation20 + $0x76c] ss:$16 sps:$4 sm:$0xff]  }
 0x59e   :  { %8467 = vmatpush2.bf16.msra.mxu0 %v11501_v56  ;;  %v11588_v56 = vld [vmem:[#allocation20 + $0x568] ss:$16 sps:$4 sm:$0xff]  }
 0x59f   :  { %8468 = vmatprep.subr.bf16.mxu0 %v11509_v13  ;;  %v11596_v13 = vld [vmem:[#allocation20 + $0x54c] ss:$16 sps:$4 sm:$0xff]  }
 0x5a0   :  { %8428 = vmatpush2.bf16.msra.mxu1 %v11504_v14  ;;  %v11591_v14 = vld [vmem:[#allocation20 + $0x768] ss:$16 sps:$4 sm:$0xff]  }
 0x5a1   :  { %8429 = vmatprep.subr.bf16.mxu1 %v11512_v19  ;;  %v11599_v19 = vld [vmem:[#allocation20 + $0x74c] ss:$16 sps:$4 sm:$0xff]  }
 0x5a2   :  { %8469 = vmatpush2.bf16.msra.mxu0 %v11507_v28  ;;  %v11594_v28 = vld [vmem:[#allocation20 + $0x548] ss:$16 sps:$4 sm:$0xff]  }
 0x5a3   :  { %8470 = vmatprep.subr.bf16.mxu0 %v11515_v30  ;;  %v11602_v30 = vld [vmem:[#allocation20 + $0x52c] ss:$16 sps:$4 sm:$0xff]  }
 0x5a4   :  { %8430 = vmatpush2.bf16.msra.mxu1 %v11510_v31  ;;  %v11597_v31 = vld [vmem:[#allocation20 + $0x748] ss:$16 sps:$4 sm:$0xff]  }
 0x5a5   :  { %8481 = vmatprep.subr.bf16.mxu1 %v11518_v32  ;;  %v11605_v32 = vld [vmem:[#allocation20 + $0x72c] ss:$16 sps:$4 sm:$0xff]  }
 0x5a6   :  { %8471 = vmatpush2.bf16.msra.mxu0 %v11513_v34  ;;  %v11600_v34 = vld [vmem:[#allocation20 + $0x528] ss:$16 sps:$4 sm:$0xff]  }
 0x5a7   :  { %8432 = vmatmul.mubr.bf16.vlgmr.msra.gmra.mxu1 %v12497_v0  ;;  %8522 = vmatprep.subr.bf16.mxu0 %v11521_v39  ;;  %v11536_v0 = vld [vmem:[#allocation20 + $0x48c] ss:$16 sps:$4 sm:$0xff]  }
 0x5a8   :  { %8482 = vmatpush1.bf16.msra.mxu1 %v11516_v33  ;;  %8513 = vmatprep.mubr.bf16.mxu1 %v12511_v55  ;;  %v11534_v55 = vld [vmem:[#allocation20 + $0x488] ss:$16 sps:$4 sm:$0xff]   ;;  %v11608_v39 = vld [vmem:[#allocation20 + $0x50c] ss:$16 sps:$4 sm:$0xff]  }
 0x5a9   :  { %8473 = vmatmul.mubr.bf16.vlgmr.msra.gmra.mxu0 %v12516_v44  ;;  %8483 = vmatprep.subr.bf16.mxu1 %v11524_v1  ;;  %v11542_v44 = vld [vmem:[#allocation20 + $0x46c] ss:$16 sps:$4 sm:$0xff]   ;;  %v11603_v33 = vld [vmem:[#allocation20 + $0x728] ss:$16 sps:$4 sm:$0xff]  }
 0x5aa   :  { %8523 = vmatpush1.bf16.msra.mxu0 %v11519_v63  ;;  %8554 = vmatprep.mubr.bf16.mxu0 %v12521_v11  ;;  %v11540_v11 = vld [vmem:[#allocation20 + $0x468] ss:$16 sps:$4 sm:$0xff]   ;;  %v11611_v1 = vld [vmem:[#allocation20 + $0x70c] ss:$16 sps:$4 sm:$0xff]  }
 0x5ab   :  { %8524 = vmatprep.subr.bf16.mxu0 %v11527_v8  ;;  %v11606_v63 = vld [vmem:[#allocation20 + $0x508] ss:$16 sps:$4 sm:$0xff]   ;;  %v11612_v8 = vld [vmem:[#allocation23 + $0x78] sm:$0xff]  }
 0x5ac   :  { %8484 = vmatpush1.bf16.msra.mxu1 %v11522_v18  ;;  %v11609_v18 = vld [vmem:[#allocation20 + $0x708] ss:$16 sps:$4 sm:$0xff]  }
 0x5ad   :  { %8485 = vmatprep.subr.bf16.mxu1 %v11530_v59  ;;  %v11613_v59 = vld [vmem:[#allocation23 + $0x38] sm:$0xff]  }
 0x5ae   :  { %8525 = vmatpush1.bf16.msra.mxu0 %v11525_v6  ;;  %v11614_v6 = vld [vmem:[#allocation23 + $0x70] sm:$0xff]  }
 0x5af   :  { %8526 = vmatprep.subr.bf16.mxu0 %v11533_v22 }
 0x5b0   :  { %8486 = vmatpush1.bf16.msra.mxu1 %v11528_v37  ;;  %v11615_v37 = vld [vmem:[#allocation23 + $0x30] sm:$0xff]  }
 0x5b1   :  { %8487 = vmatprep.subr.bf16.mxu1 %v11536_v0 }
 0x5b2   :  { %8527 = vmatpush1.bf16.msra.mxu0 %v11531_v40 }
 0x5b3   :  { %8528 = vmatprep.subr.bf16.mxu0 %v11539_v20  ;;  %v11616_v20 = vld [vmem:[#allocation23 + $0x68] sm:$0xff]  }
 0x5b4   :  { %8488 = vmatpush1.bf16.msra.mxu1 %v11534_v55 }
 0x5b5   :  { %8489 = vmatprep.subr.bf16.mxu1 %v11542_v44 }
 0x5b6   :  { %8529 = vmatpush1.bf16.msra.mxu0 %v11537_v7  ;;  %v11617_v7 = vld [vmem:[#allocation23 + $0x28] sm:$0xff]  }
 0x5b7   :  { %8530 = vmatprep.subr.bf16.mxu0 %v11545_v41 }
 0x5b8   :  { %8490 = vmatpush1.bf16.msra.mxu1 %v11540_v11 }
 0x5b9   :  { %8491 = vmatprep.subr.bf16.mxu1 %v11548_v23  ;;  %v11618_v23 = vld [vmem:[#allocation23 + $0x60] sm:$0xff]  }
 0x5ba   :  { %8531 = vmatpush1.bf16.msra.mxu0 %v11543_v16 }
 0x5bb   :  { %8532 = vmatprep.subr.bf16.mxu0 %v11551_v42  ;;  %v11628_v42 = vld [vmem:[#allocation23 + $0xf8] sm:$0xff]  }
 0x5bc   :  { %8492 = vmatpush1.bf16.msra.mxu1 %v11546_v53  ;;  %v11630_v53 = vld [vmem:[#allocation23 + $0xf0] sm:$0xff]  }
 0x5bd   :  { %8493 = vmatprep.subr.bf16.mxu1 %v11554_v29  ;;  %v11619_v29 = vld [vmem:[#allocation23 + $0x20] sm:$0xff]  }
 0x5be   :  { %8533 = vmatpush1.bf16.msra.mxu0 %v11549_v49  ;;  %v11631_v49 = vld [vmem:[#allocation23 + $0xb0] sm:$0xff]  }
 0x5bf   :  { %8534 = vmatprep.subr.bf16.mxu0 %v11557_v46  ;;  %v11632_v46 = vld [vmem:[#allocation23 + $0xe8] sm:$0xff]  }
 0x5c0   :  { %8494 = vmatpush1.bf16.msra.mxu1 %v11552_v61  ;;  %v11621_v61 = vld [vmem:[#allocation23 + $0x18] sm:$0xff]  }
 0x5c1   :  { %8495 = vmatprep.subr.bf16.mxu1 %v11560_v36  ;;  %v11622_v36 = vld [vmem:[#allocation23 + $0x50] sm:$0xff]  }
 0x5c2   :  { %8535 = vmatpush1.bf16.msra.mxu0 %v11555_v3  ;;  %v11633_v3 = vld [vmem:[#allocation23 + $0xa8] sm:$0xff]  }
 0x5c3   :  { %8536 = vmatprep.subr.bf16.mxu0 %v11563_v47  ;;  %v11634_v47 = vld [vmem:[#allocation23 + $0xe0] sm:$0xff]  }
 0x5c4   :  { %8496 = vmatpush1.bf16.msra.mxu1 %v11558_v43  ;;  %v11623_v43 = vld [vmem:[#allocation23 + $0x10] sm:$0xff]  }
 0x5c5   :  { %8497 = vmatprep.subr.bf16.mxu1 %v11566_v15  ;;  %v11624_v15 = vld [vmem:[#allocation23 + $0x48] sm:$0xff]  }
 0x5c6   :  { %8537 = vmatpush1.bf16.msra.mxu0 %v11561_v58  ;;  %v11635_v58 = vld [vmem:[#allocation23 + $0xa0] sm:$0xff]  }
 0x5c7   :  { %8538 = vmatprep.subr.bf16.mxu0 %v11569_v24  ;;  %v11636_v24 = vld [vmem:[#allocation23 + $0xd8] sm:$0xff]  }
 0x5c8   :  { %8498 = vmatpush2.bf16.msra.mxu1 %v11564_v50  ;;  %v11625_v50 = vld [vmem:[#allocation23 + $0x8] sm:$0xff]  }
 0x5c9   :  { %8499 = vmatprep.subr.bf16.mxu1 %v11572_v26  ;;  %v11626_v26 = vld [vmem:[#allocation23 + $0x40] sm:$0xff]  }
 0x5ca   :  { %8539 = vmatpush2.bf16.msra.mxu0 %v11567_v54  ;;  %v11637_v54 = vld [vmem:[#allocation23 + $0x98] sm:$0xff]  }
 0x5cb   :  { %8540 = vmatprep.subr.bf16.mxu0 %v11575_v57  ;;  %v11627_v57 = vld [vmem:[#allocation23] sm:$0xff]  }
 0x5cc   :  { %8500 = vmatpush2.bf16.msra.mxu1 %v11570_v5  ;;  %v6875_v5 = vld [vmem:[#allocation21] sm:$0xf] }
 0x5cd   :  { %8501 = vmatprep.subr.bf16.mxu1 %v11578_v35  ;;  %v6880_v35 = vrot.slane %v6875_v5, %v12292_v17 }
 0x5ce   :  { %8541 = vmatpush2.bf16.msra.mxu0 %v11573_v48  ;;  %v6884_v48 = vrot.slane %v6875_v5, %v12297_v52 }
 0x5cf   :  { %8542 = vmatprep.subr.bf16.mxu0 %v11581_v21 }
 0x5d0   :  { %8502 = vmatpush2.bf16.msra.mxu1 %v11576_v60 }
 0x5d1   :  { %8503 = vmatprep.subr.bf16.mxu1 %v11584_v51 }
 0x5d2   :  { %8543 = vmatpush2.bf16.msra.mxu0 %v11579_v38 }
 0x5d3   :  { %8544 = vmatprep.subr.bf16.mxu0 %v11587_v10  ;;  %v11638_v10 = vld [vmem:[#allocation23 + $0xd0] sm:$0xff]  }
 0x5d4   :  { %8504 = vmatpush2.bf16.msra.mxu1 %v11582_v45 }
 0x5d5   :  { %8505 = vmatprep.subr.bf16.mxu1 %v11590_v25 }
 0x5d6   :  { %8545 = vmatpush2.bf16.msra.mxu0 %v11585_v12  ;;  %v11639_v12 = vld [vmem:[#allocation23 + $0x90] sm:$0xff]  }
 0x5d7   :  { %8546 = vmatprep.subr.bf16.mxu0 %v11593_v62 }
 0x5d8   :  { %8506 = vmatpush2.bf16.msra.mxu1 %v11588_v56 }
 0x5d9   :  { %8507 = vmatprep.subr.bf16.mxu1 %v11596_v13 }
 0x5da   :  { %8547 = vmatpush2.bf16.msra.mxu0 %v11591_v14 }
 0x5db   :  { %8548 = vmatprep.subr.bf16.mxu0 %v11599_v19 }
 0x5dc   :  { %8508 = vmatpush2.bf16.msra.mxu1 %v11594_v28 }
 0x5dd   :  { %8509 = vmatprep.subr.bf16.mxu1 %v11602_v30  ;;  %v11640_v30 = vld [vmem:[#allocation23 + $0xc8] sm:$0xff]  }
 0x5de   :  { %8549 = vmatpush2.bf16.msra.mxu0 %v11597_v31  ;;  %v11641_v31 = vld [vmem:[#allocation23 + $0x88] sm:$0xff]  }
 0x5df   :  { %8550 = vmatprep.subr.bf16.mxu0 %v11605_v32 }
 0x5e0   :  { %8510 = vmatpush2.bf16.msra.mxu1 %v11600_v34 }
 0x5e1   :  { %8511 = vmatprep.subr.bf16.mxu1 %v11608_v39 }
 0x5e2   :  { %8551 = vmatpush2.bf16.msra.mxu0 %v11603_v33 }
 0x5e3   :  { %8552 = vmatprep.subr.bf16.mxu0 %v11611_v1  ;;  %v11642_v1 = vld [vmem:[#allocation23 + $0xc0] sm:$0xff]  }
 0x5e4   :  { %8512 = vmatpush2.bf16.msra.mxu1 %v11606_v63 }
 0x5e5   :  { %10243 = vmatprep.subr.bf16.mxu1 %v11612_v8  ;;  %v11643_v8 = vld [vmem:[#allocation23 + $0x80] sm:$0xff]  }
 0x5e6   :  { %8553 = vmatpush2.bf16.msra.mxu0 %v11609_v18 }
 0x5e7   :  { %8514 = vmatmul.mubr.bf16.vlgmr.msra.gmra.mxu1 %v12503_v4  ;;  %v8269_v22 = vpop.f32.mrf.mxu1  ;;  %v11629_v4 = vld [vmem:[#allocation23 + $0xb8] sm:$0xff]   ;;  %10265 = vmatprep.subr.bf16.mxu0 %v11628_v42 }
 0x5e8   :  { %10244 = vmatpush3.bf16.msra.mxu1 %v11613_v59  ;;  %v8270_v21 = vadd.f32 %v8269_v22, %v6880_v35  ;;  %v9955_v35 = vld [vmem:[#allocation24] ss:$0 sm:$0xff] }
 0x5e9   :  { %8555 = vmatmul.mubr.bf16.vlgmr.msra.gmra.mxu0 %v12529_v27  ;;  %v8271_v0 = vpop.f32.mrf.mxu1  ;;  %v8310_v40 = vpop.f32.mrf.mxu0  ;;  %10245 = vmatprep.subr.bf16.mxu1 %v11614_v6  ;;  %v11620_v27 = vld [vmem:[#allocation23 + $0x58] sm:$0xff]  }
 0x5ea   :  { %10266 = vmatpush3.bf16.msra.mxu0 %v11629_v4  ;;  %v8272_v60 = vadd.f32 %v8271_v0, %v6884_v48  ;;  %v8311_v51 = vadd.f32 %v8310_v40, %v8270_v21 }
 0x5eb   :  { %v8273_v55 = vpop.f32.mrf.mxu1  ;;  %v8312_v44 = vpop.f32.mrf.mxu0  ;;  %10267 = vmatprep.subr.bf16.mxu0 %v11630_v53 }
 0x5ec   :  { %10246 = vmatpush3.bf16.msra.mxu1 %v11615_v37  ;;  %v8313_v45 = vadd.f32 %v8312_v44, %v8272_v60  ;;  %v6891_v44 = vsub.s32 3, %v12289_v2 }
 0x5ed   :  { %v8274_v41 = vpop.f32.mrf.mxu1  ;;  %v8314_v11 = vpop.f32.mrf.mxu0  ;;  %10247 = vmatprep.subr.bf16.mxu1 %v11616_v20 }
 0x5ee   :  { %10268 = vmatpush3.bf16.msra.mxu0 %v11631_v49  ;;  %v6892_v41 = vrot.slane %v6875_v5, %v6891_v44 }
 0x5ef   :  { %v8315_v16 = vpop.f32.mrf.mxu0  ;;  %10269 = vmatprep.subr.bf16.mxu0 %v11632_v46 }
 0x5f0   :  { %10248 = vmatpush3.bf16.msra.mxu1 %v11617_v7  ;;  %v6888_v7 = vrot.slane %v6875_v5, %v12324_v9 }
 0x5f1   :  { %10249 = vmatprep.subr.bf16.mxu1 %v11618_v23 }
 0x5f2   :  { %10270 = vmatpush3.bf16.msra.mxu0 %v11633_v3 }
 0x5f3   :  { %10271 = vmatprep.subr.bf16.mxu0 %v11634_v47 }
 0x5f4   :  { %10250 = vmatpush3.bf16.msra.mxu1 %v11619_v29 }
 0x5f5   :  { %10251 = vmatprep.subr.bf16.mxu1 %v11620_v27 }
 0x5f6   :  { %10272 = vmatpush3.bf16.msra.mxu0 %v11635_v58 }
 0x5f7   :  { %10273 = vmatprep.subr.bf16.mxu0 %v11636_v24 }
 0x5f8   :  { %10252 = vmatpush3.bf16.msra.mxu1 %v11621_v61 }
 0x5f9   :  { %10253 = vmatprep.subr.bf16.mxu1 %v11622_v36 }
 0x5fa   :  { %10274 = vmatpush3.bf16.msra.mxu0 %v11637_v54 }
 0x5fb   :  { %10275 = vmatprep.subr.bf16.mxu0 %v11638_v10 }
 0x5fc   :  { %10254 = vmatpush3.bf16.msra.mxu1 %v11623_v43 }
 0x5fd   :  { %10255 = vmatprep.subr.bf16.mxu1 %v11624_v15 }
 0x5fe   :  { %10276 = vmatpush3.bf16.msra.mxu0 %v11639_v12 }
 0x5ff   :  { %10277 = vmatprep.subr.bf16.mxu0 %v11640_v30 }
 0x600   :  { %10256 = vmatpush3.bf16.msra.mxu1 %v11625_v50 }
 0x601   :  { %10257 = vmatprep.subr.bf16.mxu1 %v11626_v26 }
 0x602   :  { %10278 = vmatpush3.bf16.msra.mxu0 %v11641_v31 }
 0x603   :  { %10279 = vmatprep.subr.bf16.mxu0 %v11642_v1 }
 0x604   :  { %10258 = vmatpush3.bf16.msra.mxu1 %v11627_v57 }
 0x606   :  { %10280 = vmatpush3.bf16.msra.mxu0 %v11643_v8 }
 0x627   :  { %v8351_v38 = vpop.f32.mrf.mxu1 }
 0x628   :  { %v8352_v25 = vadd.f32 %v8351_v38, %v8311_v51 }
 0x629   :  { %v8353_v62 = vpop.f32.mrf.mxu1  ;;  %v8392_v56 = vpop.f32.mrf.mxu0 }
 0x62a   :  { %v8354_v13 = vadd.f32 %v8353_v62, %v8313_v45  ;;  %v8393_v14 = vadd.f32 %v8392_v56, %v8352_v25 }
 0x62b   :  { %v8355_v19 = vpop.f32.mrf.mxu1  ;;  %v8394_v28 = vpop.f32.mrf.mxu0 }
 0x62c   :  { %v8395_v17 = vadd.f32 %v8394_v28, %v8354_v13  ;;  %v8563_v52 = vmax.f32 %v8393_v14, 0.0 }
 0x62d   :  { %v8356_v32 = vpop.f32.mrf.mxu1  ;;  %v8396_v34 = vpop.f32.mrf.mxu0 }
 0x62e   :  { %v8564_v39 = vmax.f32 %v8395_v17, 0.0  ;;  %v8567_v18 = vpack.c.bf16 %v8563_v52, %v8563_v52 }
 0x62f   :  { %v8397_v33 = vpop.f32.mrf.mxu0 }
 0x630   :  { %v8568_v63 = vpack.c.bf16 %v8564_v39, %v8564_v39 }
 0x632   :  { %8866 = vmatprep.mubr.bf16.mxu1 %v8568_v63 }
 0x633   :  { %8867 = vmatmul.mubr.bf16.vlgmr.msra.gmra.mxu1 %v8567_v18 }
 0x667   :  { %v8433_v59 = vpop.f32.mrf.mxu1 }
 0x668   :  { %v8434_v11 = vadd.f32 %v8433_v59, %v6888_v7 }
 0x669   :  { %v8435_v6 = vpop.f32.mrf.mxu1  ;;  %v8474_v22 = vpop.f32.mrf.mxu0 }
 0x66a   :  { %v8436_v23 = vadd.f32 %v8435_v6, %v6892_v41  ;;  %v8475_v16 = vadd.f32 %v8474_v22, %v8434_v11 }
 0x66b   :  { %v8437_v37 = vpop.f32.mrf.mxu1  ;;  %v8476_v0 = vpop.f32.mrf.mxu0 }
 0x66c   :  { %v8477_v4 = vadd.f32 %v8476_v0, %v8436_v23 }
 0x66d   :  { %v8438_v40 = vpop.f32.mrf.mxu1  ;;  %v8478_v20 = vpop.f32.mrf.mxu0 }
 0x66f   :  { %v8479_v55 = vpop.f32.mrf.mxu0 }
 0x6a7   :  { %v8515_v42 = vpop.f32.mrf.mxu1 }
 0x6a8   :  { %v8516_v53 = vadd.f32 %v8515_v42, %v8475_v16 }
 0x6a9   :  { %v8517_v29 = vpop.f32.mrf.mxu1  ;;  %v8556_v27 = vpop.f32.mrf.mxu0 }
 0x6aa   :  { %v8518_v49 = vadd.f32 %v8517_v29, %v8477_v4  ;;  %v8557_v46 = vadd.f32 %v8556_v27, %v8516_v53 }
 0x6ab   :  { %v8519_v61 = vpop.f32.mrf.mxu1  ;;  %v8558_v36 = vpop.f32.mrf.mxu0 }
 0x6ac   :  { %v8559_v3 = vadd.f32 %v8558_v36, %v8518_v49  ;;  %v8565_v47 = vmax.f32 %v8557_v46, 0.0 }
 0x6ad   :  { %v8520_v43 = vpop.f32.mrf.mxu1  ;;  %v8560_v15 = vpop.f32.mrf.mxu0 }
 0x6ae   :  { %v8566_v2 = vmax.f32 %v8559_v3, 0.0  ;;  %v8569_v24 = vpack.c.bf16 %v8565_v47, %v8565_v47 }
 0x6af   :  { %v8561_v58 = vpop.f32.mrf.mxu0 }
 0x6b0   :  { %v8570_v9 = vpack.c.bf16 %v8566_v2, %v8566_v2 }
 0x6b2   :  { %8906 = vmatprep.mubr.bf16.mxu0 %v8570_v9 }
 0x6b3   :  { %8907 = vmatmul.mubr.bf16.vlgmr.msra.gmra.mxu0 %v8569_v24 }
 0x6f3   :  { %v10259_v50 = vpop.f32.mrf.mxu1 }
 0x6f5   :  { %v10260_v26 = vpop.f32.mrf.mxu1 }
 0x6f6   :  { %v10261_v54 = vadd.f32 %v10260_v26, %v10259_v50 }
 0x6f7   :  { %v10262_v57 = vpop.f32.mrf.mxu1 }
 0x6f8   :  { %v8869_v60 = vadd.f32 %v10261_v54, %v9955_v35 }
 0x6f9   :  { %v10263_v5 = vpop.f32.mrf.mxu1 }
 0x773   :  { %v10281_v48 = vpop.f32.mrf.mxu0 }
 0x775   :  { %v10282_v21 = vpop.f32.mrf.mxu0 }
 0x776   :  { %v10283_v51 = vadd.f32 %v10282_v21, %v10281_v48 }
 0x777   :  { %v10284_v38 = vpop.f32.mrf.mxu0 }
 0x778   :  { %v8909_v10 = vadd.f32 %v10283_v51, %v8869_v60 }
 0x779   :  { %v10285_v45 = vpop.f32.mrf.mxu0 }
 0x77a   :  { %8914 = vst [vmem:[#allocation26] sm:$0x3] %v8909_v10 }
 0x77b   :  { %11866 = shalt.err (!%p11863_p12)
}
 0x77c   :  { %8924 = dma.vmem_to_hbm [thread:$0]  %s8922_s21, 32, %s12558_s11, [#allocation11]  }
 0x77d   :  { %11887 = dma.done.wait [#allocation11], 32  }
 0x77e   :  { %11888 = vsyncadd [#allocation11], 4294967264 }
 0x77f   :  { %8928 = vsyncpa [#allocation10], 1 }
 0x780   :  { %8929 = vsyncpa [#allocation13], 1 }
 0x781   :  { %8930 = vsyncpa [#allocation16], 1 }
 0x782   :  { %8931 = vsyncpa [#allocation19], 1 }
 0x783   :  { %8932 = vsyncpa [#allocation22], 1 }
 0x784   :  { %8933 = vsyncpa [#allocation25], 1 }
 0x785   :  { %8934 = vsyncpa [#allocation11], 1 }

</bundles_post_ra>
